<compile_context>
chip_gen: v7x
topology: tpu7x:2x2x1
jax: 0.10.0
libtpu: 0.0.40
codegen_flags: <defaults>
</compile_context>

<pallas_src>
import jax
import jax.numpy as jnp
import numpy as np
from jax.experimental import pallas as pl
from jax.experimental.pallas import tpu as pltpu


# ---------------- Fused Pallas kernel (one batch element per grid step) ----------------

def _fused_kernel(xp_ref, w1_ref, b1_ref, wa_ref, ba_ref,
                  w2_ref, b2_ref, wfc_ref, bfc_ref, out_ref, yap_ref):
    # xp_ref : (1, H+2, W+2, Cin) f32   padded input for this batch element
    # w1_ref : (9*Cin, C1)        bf16  conv1 weights (tap-major rows)
    # b1_ref : (1, C1)            f32
    # wa_ref : (C1, C1)           bf16  64 stacked 1x1 attention convs
    # ba_ref : (1, C1)            f32
    # w2_ref : (9*C1, C2)         bf16  conv2 weights (tap-major rows)
    # b2_ref : (1, C2)            f32
    # wfc_ref: (C2, NC)           f32
    # bfc_ref: (1, NC)            f32
    # out_ref: (1, 1, NC)         f32
    # yap_ref: VMEM scratch (H+2, W+2, C1) f32 -- padded attention activations
    _, Hp, Wp, Cin = xp_ref.shape
    H, W = Hp - 2, Wp - 2
    C1 = wa_ref.shape[0]

    xp = xp_ref[0]                                              # (Hp, Wp, Cin)

    # ---- conv1 as a single im2col matmul (K = 9*Cin) ----
    cols1 = jnp.concatenate(
        [xp[dy:dy + H, dx:dx + W, :].reshape(H * W, Cin)
         for dy in range(3) for dx in range(3)], axis=-1)        # (H*W, 9*Cin)
    y1 = jnp.dot(cols1.astype(jnp.bfloat16), w1_ref[...],
                 preferred_element_type=jnp.float32) + b1_ref[...]
    y1 = jnp.maximum(y1, 0.0)                                    # relu, (H*W, C1)

    # ---- spatial multi-scale attention: stacked 1x1 convs + softmax over H*W ----
    scores = jnp.dot(y1.astype(jnp.bfloat16), wa_ref[...],
                     preferred_element_type=jnp.float32) + ba_ref[...]
    m = jnp.max(scores, axis=0, keepdims=True)                   # (1, C1)
    e = jnp.exp(scores - m)
    denom = jnp.sum(e, axis=0, keepdims=True)
    attn = e * pl.reciprocal(denom, approx=True)                 # softmax over H*W
    ya = y1 * attn                                               # (H*W, C1)

    # ---- keep ya in VMEM: zero halo, write interior (no HBM round trip / pad) ----
    yap_ref[...] = jnp.zeros_like(yap_ref)
    yap_ref[pl.ds(1, H), pl.ds(1, W), :] = ya.reshape(H, W, C1)

    # ---- conv2 as a single im2col matmul (K = 9*C1) ----
    cols2 = jnp.concatenate(
        [yap_ref[pl.ds(dy, H), pl.ds(dx, W), :].reshape(H * W, C1)
         for dy in range(3) for dx in range(3)], axis=-1)        # (H*W, 9*C1)
    y2 = jnp.dot(cols2.astype(jnp.bfloat16), w2_ref[...],
                 preferred_element_type=jnp.float32) + b2_ref[...]
    y2 = jnp.maximum(y2, 0.0)                                    # relu, (H*W, C2)

    # ---- global average pool + fc ----
    pooled = jnp.sum(y2, axis=0, keepdims=True) * (1.0 / (H * W))   # (1, C2)
    out = jnp.dot(pooled, wfc_ref[...],
                  preferred_element_type=jnp.float32) + bfc_ref[...]
    out_ref[...] = out.reshape(1, 1, -1)


# ---------------- Wrapper ----------------

def multi_scale_attention_cnn(x_nchw, params):
    x = jnp.transpose(x_nchw, (0, 2, 3, 1)).astype(jnp.float32)   # NCHW -> NHWC
    B, H, W, Cin = x.shape
    C1 = params["wa"].shape[0]
    C2 = params["w2"].shape[-1]
    NC = params["wfc"].shape[-1]
    Hp, Wp = H + 2, W + 2

    xp = jnp.pad(x, ((0, 0), (1, 1), (1, 1), (0, 0)))

    # bf16 MXU operands (f32 accumulation in-kernel); biases / fc stay f32.
    w1 = params["w1"].reshape(9 * Cin, C1).astype(jnp.bfloat16)
    wa = params["wa"].astype(jnp.bfloat16)
    w2 = params["w2"].reshape(9 * C1, C2).astype(jnp.bfloat16)

    in_specs = [
        pl.BlockSpec((1, Hp, Wp, Cin), lambda b: (b, 0, 0, 0)),   # per-batch input block
        pl.BlockSpec((9 * Cin, C1),    lambda b: (0, 0)),
        pl.BlockSpec((1, C1),          lambda b: (0, 0)),
        pl.BlockSpec((C1, C1),         lambda b: (0, 0)),
        pl.BlockSpec((1, C1),          lambda b: (0, 0)),
        pl.BlockSpec((9 * C1, C2),     lambda b: (0, 0)),
        pl.BlockSpec((1, C2),          lambda b: (0, 0)),
        pl.BlockSpec((C2, NC),         lambda b: (0, 0)),
        pl.BlockSpec((1, NC),          lambda b: (0, 0)),
    ]
    out_spec = pl.BlockSpec((1, 1, NC), lambda b: (b, 0, 0))

    out = pl.pallas_call(
        _fused_kernel,
        out_shape=jax.ShapeDtypeStruct((B, 1, NC), jnp.float32),
        grid_spec=pltpu.PrefetchScalarGridSpec(
            num_scalar_prefetch=0,
            grid=(B,),
            in_specs=in_specs,
            out_specs=out_spec,
            scratch_shapes=[pltpu.VMEM((Hp, Wp, C1), jnp.float32)],
        ),
        compiler_params=pltpu.CompilerParams(
            dimension_semantics=("parallel",)),                  # 2 TCs on v7x
    )(xp, w1, params["b1"], wa, params["ba"],
      w2, params["b2"], params["wfc"], params["bfc"])
    return out.reshape(B, NC)


# ---------------- Pure-JAX reference (for verification, f32 throughout) ----------------

def _conv3x3_ref(x, w9, b):
    Cin = x.shape[-1]
    Cout = w9.shape[-1]
    w = w9.reshape(3, 3, Cin, Cout)
    y = jax.lax.conv_general_dilated(
        x, w, window_strides=(1, 1), padding="SAME",
        dimension_numbers=("NHWC", "HWIO", "NHWC"))
    return y + b.reshape(1, 1, 1, Cout)


def reference(x_nchw, params):
    x = jnp.transpose(x_nchw, (0, 2, 3, 1)).astype(jnp.float32)
    y1 = jax.nn.relu(_conv3x3_ref(x, params["w1"], params["b1"]))
    B, H, W, C1 = y1.shape
    scores = jnp.einsum("bhwc,cs->bhws", y1, params["wa"]) + params["ba"].reshape(1, 1, 1, C1)
    attn = jax.nn.softmax(scores.reshape(B, H * W, C1), axis=1).reshape(B, H, W, C1)
    ya = y1 * attn
    y2 = jax.nn.relu(_conv3x3_ref(ya, params["w2"], params["b2"]))
    pooled = jnp.mean(y2, axis=(1, 2))
    return pooled @ params["wfc"] + params["bfc"].reshape(1, -1)


# ---------------- Main ----------------

if __name__ == "__main__":
    B, Cin, H, W = 2, 4, 16, 16
    C1, C2, NC = 64, 128, 10          # conv1 -> 64, conv2 -> 128, num_classes=10
    # note: SpatialMultiScaleAttention is constructed with num_scales=64 (the
    # first construction is overwritten), so scales == channels.

    key = jax.random.PRNGKey(0)
    ks = jax.random.split(key, 9)
    params = {
        "w1":  0.1 * jax.random.normal(ks[0], (9, Cin, C1), jnp.float32),
        "b1":  0.1 * jax.random.normal(ks[1], (1, C1), jnp.float32),
        "wa":  0.1 * jax.random.normal(ks[2], (C1, C1), jnp.float32),
        "ba":  0.1 * jax.random.normal(ks[3], (1, C1), jnp.float32),
        "w2":  0.05 * jax.random.normal(ks[4], (9, C1, C2), jnp.float32),
        "b2":  0.1 * jax.random.normal(ks[5], (1, C2), jnp.float32),
        "wfc": 0.1 * jax.random.normal(ks[6], (C2, NC), jnp.float32),
        "bfc": 0.1 * jax.random.normal(ks[7], (1, NC), jnp.float32),
    }
    x = jax.random.normal(ks[8], (B, Cin, H, W), jnp.float32)     # NCHW like PyTorch

    out = jax.block_until_ready(multi_scale_attention_cnn(x, params))
    ref = jax.block_until_ready(reference(x, params))

    # Tolerance loosened vs f32-only version: kernel uses bf16 MXU operands and
    # approx reciprocal; reference is pure f32.
    np.testing.assert_allclose(np.asarray(out), np.asarray(ref), rtol=2e-2, atol=2e-2)
    assert out.shape == (B, NC)
    print("KERNEL_OK")
</pallas_src>

<mosaic_0001>
module attributes {stable_mosaic.version = 11 : i64} {
  func.func @_fused_kernel(%arg0: i32, %arg1: memref<1x18x18x4xf32, #tpu.memory_space<vmem>>, %arg2: memref<36x64xbf16, #tpu.memory_space<vmem>>, %arg3: memref<1x64xf32, #tpu.memory_space<vmem>>, %arg4: memref<64x64xbf16, #tpu.memory_space<vmem>>, %arg5: memref<1x64xf32, #tpu.memory_space<vmem>>, %arg6: memref<576x128xbf16, #tpu.memory_space<vmem>>, %arg7: memref<1x128xf32, #tpu.memory_space<vmem>>, %arg8: memref<128x10xf32, #tpu.memory_space<vmem>>, %arg9: memref<1x10xf32, #tpu.memory_space<vmem>>, %arg10: memref<1x1x10xf32, #tpu.memory_space<vmem>>, %arg11: memref<18x18x64xf32, #tpu.memory_space<vmem>>) attributes {dimension_semantics = [#tpu.dimension_semantics<parallel>], iteration_bounds = array<i64: 2>, scalar_prefetch = 0 : i64, scratch_operands = 1 : i64, tpu.core_type = #tpu.core_type<tc>, window_params = [{transform_indices = @transform_0, window_bounds = array<i64: 1, 18, 18, 4>}, {pipeline_mode = #tpu.pipeline_mode<synchronous>, transform_indices = @transform_1, window_bounds = array<i64: 36, 64>}, {pipeline_mode = #tpu.pipeline_mode<synchronous>, transform_indices = @transform_2, window_bounds = array<i64: 1, 64>}, {pipeline_mode = #tpu.pipeline_mode<synchronous>, transform_indices = @transform_3, window_bounds = array<i64: 64, 64>}, {pipeline_mode = #tpu.pipeline_mode<synchronous>, transform_indices = @transform_4, window_bounds = array<i64: 1, 64>}, {pipeline_mode = #tpu.pipeline_mode<synchronous>, transform_indices = @transform_5, window_bounds = array<i64: 576, 128>}, {pipeline_mode = #tpu.pipeline_mode<synchronous>, transform_indices = @transform_6, window_bounds = array<i64: 1, 128>}, {pipeline_mode = #tpu.pipeline_mode<synchronous>, transform_indices = @transform_7, window_bounds = array<i64: 128, 10>}, {pipeline_mode = #tpu.pipeline_mode<synchronous>, transform_indices = @transform_8, window_bounds = array<i64: 1, 10>}, {transform_indices = @transform_9, window_bounds = array<i64: 1, 1, 10>}]} {
    %c0 = arith.constant 0 : index
    %c0_0 = arith.constant 0 : index
    %c0_1 = arith.constant 0 : index
    %c0_2 = arith.constant 0 : index
    %0 = vector.load %arg1[%c0, %c0_0, %c0_1, %c0_2] : memref<1x18x18x4xf32, #tpu.memory_space<vmem>>, vector<1x18x18x4xf32>
    %1 = vector.shape_cast %0 : vector<1x18x18x4xf32> to vector<18x18x4xf32>
    %2 = vector.extract_strided_slice %1 {offsets = [0, 0, 0], sizes = [16, 16, 4], strides = [1, 1, 1]} : vector<18x18x4xf32> to vector<16x16x4xf32>
    %3 = vector.shape_cast %2 : vector<16x16x4xf32> to vector<256x4xf32>
    %4 = vector.extract_strided_slice %1 {offsets = [0, 1, 0], sizes = [16, 16, 4], strides = [1, 1, 1]} : vector<18x18x4xf32> to vector<16x16x4xf32>
    %5 = vector.shape_cast %4 : vector<16x16x4xf32> to vector<256x4xf32>
    %6 = vector.extract_strided_slice %1 {offsets = [0, 2, 0], sizes = [16, 16, 4], strides = [1, 1, 1]} : vector<18x18x4xf32> to vector<16x16x4xf32>
    %7 = vector.shape_cast %6 : vector<16x16x4xf32> to vector<256x4xf32>
    %8 = vector.extract_strided_slice %1 {offsets = [1, 0, 0], sizes = [16, 16, 4], strides = [1, 1, 1]} : vector<18x18x4xf32> to vector<16x16x4xf32>
    %9 = vector.shape_cast %8 : vector<16x16x4xf32> to vector<256x4xf32>
    %10 = vector.extract_strided_slice %1 {offsets = [1, 1, 0], sizes = [16, 16, 4], strides = [1, 1, 1]} : vector<18x18x4xf32> to vector<16x16x4xf32>
    %11 = vector.shape_cast %10 : vector<16x16x4xf32> to vector<256x4xf32>
    %12 = vector.extract_strided_slice %1 {offsets = [1, 2, 0], sizes = [16, 16, 4], strides = [1, 1, 1]} : vector<18x18x4xf32> to vector<16x16x4xf32>
    %13 = vector.shape_cast %12 : vector<16x16x4xf32> to vector<256x4xf32>
    %14 = vector.extract_strided_slice %1 {offsets = [2, 0, 0], sizes = [16, 16, 4], strides = [1, 1, 1]} : vector<18x18x4xf32> to vector<16x16x4xf32>
    %15 = vector.shape_cast %14 : vector<16x16x4xf32> to vector<256x4xf32>
    %16 = vector.extract_strided_slice %1 {offsets = [2, 1, 0], sizes = [16, 16, 4], strides = [1, 1, 1]} : vector<18x18x4xf32> to vector<16x16x4xf32>
    %17 = vector.shape_cast %16 : vector<16x16x4xf32> to vector<256x4xf32>
    %18 = vector.extract_strided_slice %1 {offsets = [2, 2, 0], sizes = [16, 16, 4], strides = [1, 1, 1]} : vector<18x18x4xf32> to vector<16x16x4xf32>
    %19 = vector.shape_cast %18 : vector<16x16x4xf32> to vector<256x4xf32>
    %20 = tpu.concatenate %3, %5, %7, %9, %11, %13, %15, %17, %19 in 1 : vector<256x4xf32>, vector<256x4xf32>, vector<256x4xf32>, vector<256x4xf32>, vector<256x4xf32>, vector<256x4xf32>, vector<256x4xf32>, vector<256x4xf32>, vector<256x4xf32> -> vector<256x36xf32>
    %21 = arith.truncf %20 : vector<256x36xf32> to vector<256x36xbf16>
    %c0_3 = arith.constant 0 : index
    %c0_4 = arith.constant 0 : index
    %22 = vector.load %arg2[%c0_3, %c0_4] : memref<36x64xbf16, #tpu.memory_space<vmem>>, vector<36x64xbf16>
    %cst = arith.constant dense<0.000000e+00> : vector<256x64xf32>
    %23 = tpu.matmul %21, %22, %cst {dimension_numbers = #tpu.dot_dimension_numbers<[1], [0], [0], [1], [0, 0, 1, 1], [], []>} : vector<256x36xbf16>, vector<36x64xbf16>, vector<256x64xf32> -> vector<256x64xf32>
    %c0_5 = arith.constant 0 : index
    %c0_6 = arith.constant 0 : index
    %24 = vector.load %arg3[%c0_5, %c0_6] : memref<1x64xf32, #tpu.memory_space<vmem>>, vector<1x64xf32>
    %25 = vector.broadcast %24 : vector<1x64xf32> to vector<256x64xf32>
    %26 = arith.addf %23, %25 : vector<256x64xf32>
    %cst_7 = arith.constant 0.000000e+00 : f32
    %27 = vector.broadcast %cst_7 : f32 to vector<256x64xf32>
    %28 = arith.maximumf %26, %27 : vector<256x64xf32>
    %29 = arith.truncf %28 : vector<256x64xf32> to vector<256x64xbf16>
    %c0_8 = arith.constant 0 : index
    %c0_9 = arith.constant 0 : index
    %30 = vector.load %arg4[%c0_8, %c0_9] : memref<64x64xbf16, #tpu.memory_space<vmem>>, vector<64x64xbf16>
    %cst_10 = arith.constant dense<0.000000e+00> : vector<256x64xf32>
    %31 = tpu.matmul %29, %30, %cst_10 {dimension_numbers = #tpu.dot_dimension_numbers<[1], [0], [0], [1], [0, 0, 1, 1], [], []>} : vector<256x64xbf16>, vector<64x64xbf16>, vector<256x64xf32> -> vector<256x64xf32>
    %c0_11 = arith.constant 0 : index
    %c0_12 = arith.constant 0 : index
    %32 = vector.load %arg5[%c0_11, %c0_12] : memref<1x64xf32, #tpu.memory_space<vmem>>, vector<1x64xf32>
    %33 = vector.broadcast %32 : vector<1x64xf32> to vector<256x64xf32>
    %34 = arith.addf %31, %33 : vector<256x64xf32>
    %cst_13 = arith.constant dense<0xFF800000> : vector<64xf32>
    %35 = vector.multi_reduction <maximumf>, %34, %cst_13 [0] : vector<256x64xf32> to vector<64xf32>
    %36 = vector.shape_cast %35 : vector<64xf32> to vector<1x64xf32>
    %37 = vector.broadcast %36 : vector<1x64xf32> to vector<256x64xf32>
    %38 = arith.subf %34, %37 : vector<256x64xf32>
    %39 = math.exp %38 : vector<256x64xf32>
    %cst_14 = arith.constant dense<0.000000e+00> : vector<64xf32>
    %40 = vector.multi_reduction <add>, %39, %cst_14 [0] : vector<256x64xf32> to vector<64xf32>
    %41 = vector.shape_cast %40 : vector<64xf32> to vector<1x64xf32>
    %42 = tpu.reciprocal %41 {approx = true} : vector<1x64xf32> -> vector<1x64xf32>
    %43 = vector.broadcast %42 : vector<1x64xf32> to vector<256x64xf32>
    %44 = arith.mulf %39, %43 : vector<256x64xf32>
    %45 = arith.mulf %28, %44 : vector<256x64xf32>
    %cst_15 = arith.constant 0.000000e+00 : f32
    %46 = vector.broadcast %cst_15 : f32 to vector<18x18x64xf32>
    %c0_16 = arith.constant 0 : index
    %c0_17 = arith.constant 0 : index
    %c0_18 = arith.constant 0 : index
    %47 = vector.load %arg11[%c0_16, %c0_17, %c0_18] : memref<18x18x64xf32, #tpu.memory_space<vmem>>, vector<18x18x64xf32>
    tpu.vector_store %arg11[%c0_16, %c0_17, %c0_18], %46 {strides = array<i32>} : memref<18x18x64xf32, #tpu.memory_space<vmem>>, vector<18x18x64xf32>,
    %48 = vector.shape_cast %45 : vector<256x64xf32> to vector<16x16x64xf32>
    %c1 = arith.constant 1 : index
    %c1_19 = arith.constant 1 : index
    %c0_20 = arith.constant 0 : index
    %49 = vector.load %arg11[%c1, %c1_19, %c0_20] : memref<18x18x64xf32, #tpu.memory_space<vmem>>, vector<16x16x64xf32>
    tpu.vector_store %arg11[%c1, %c1_19, %c0_20], %48 {strides = array<i32>} : memref<18x18x64xf32, #tpu.memory_space<vmem>>, vector<16x16x64xf32>,
    %c0_21 = arith.constant 0 : index
    %c0_22 = arith.constant 0 : index
    %c0_23 = arith.constant 0 : index
    %50 = vector.load %arg11[%c0_21, %c0_22, %c0_23] : memref<18x18x64xf32, #tpu.memory_space<vmem>>, vector<16x16x64xf32>
    %51 = vector.shape_cast %50 : vector<16x16x64xf32> to vector<256x64xf32>
    %c0_24 = arith.constant 0 : index
    %c1_25 = arith.constant 1 : index
    %c0_26 = arith.constant 0 : index
    %52 = vector.load %arg11[%c0_24, %c1_25, %c0_26] : memref<18x18x64xf32, #tpu.memory_space<vmem>>, vector<16x16x64xf32>
    %53 = vector.shape_cast %52 : vector<16x16x64xf32> to vector<256x64xf32>
    %c0_27 = arith.constant 0 : index
    %c2 = arith.constant 2 : index
    %c0_28 = arith.constant 0 : index
    %54 = vector.load %arg11[%c0_27, %c2, %c0_28] : memref<18x18x64xf32, #tpu.memory_space<vmem>>, vector<16x16x64xf32>
    %55 = vector.shape_cast %54 : vector<16x16x64xf32> to vector<256x64xf32>
    %c1_29 = arith.constant 1 : index
    %c0_30 = arith.constant 0 : index
    %c0_31 = arith.constant 0 : index
    %56 = vector.load %arg11[%c1_29, %c0_30, %c0_31] : memref<18x18x64xf32, #tpu.memory_space<vmem>>, vector<16x16x64xf32>
    %57 = vector.shape_cast %56 : vector<16x16x64xf32> to vector<256x64xf32>
    %c1_32 = arith.constant 1 : index
    %c1_33 = arith.constant 1 : index
    %c0_34 = arith.constant 0 : index
    %58 = vector.load %arg11[%c1_32, %c1_33, %c0_34] : memref<18x18x64xf32, #tpu.memory_space<vmem>>, vector<16x16x64xf32>
    %59 = vector.shape_cast %58 : vector<16x16x64xf32> to vector<256x64xf32>
    %c1_35 = arith.constant 1 : index
    %c2_36 = arith.constant 2 : index
    %c0_37 = arith.constant 0 : index
    %60 = vector.load %arg11[%c1_35, %c2_36, %c0_37] : memref<18x18x64xf32, #tpu.memory_space<vmem>>, vector<16x16x64xf32>
    %61 = vector.shape_cast %60 : vector<16x16x64xf32> to vector<256x64xf32>
    %c2_38 = arith.constant 2 : index
    %c0_39 = arith.constant 0 : index
    %c0_40 = arith.constant 0 : index
    %62 = vector.load %arg11[%c2_38, %c0_39, %c0_40] : memref<18x18x64xf32, #tpu.memory_space<vmem>>, vector<16x16x64xf32>
    %63 = vector.shape_cast %62 : vector<16x16x64xf32> to vector<256x64xf32>
    %c2_41 = arith.constant 2 : index
    %c1_42 = arith.constant 1 : index
    %c0_43 = arith.constant 0 : index
    %64 = vector.load %arg11[%c2_41, %c1_42, %c0_43] : memref<18x18x64xf32, #tpu.memory_space<vmem>>, vector<16x16x64xf32>
    %65 = vector.shape_cast %64 : vector<16x16x64xf32> to vector<256x64xf32>
    %c2_44 = arith.constant 2 : index
    %c2_45 = arith.constant 2 : index
    %c0_46 = arith.constant 0 : index
    %66 = vector.load %arg11[%c2_44, %c2_45, %c0_46] : memref<18x18x64xf32, #tpu.memory_space<vmem>>, vector<16x16x64xf32>
    %67 = vector.shape_cast %66 : vector<16x16x64xf32> to vector<256x64xf32>
    %68 = tpu.concatenate %51, %53, %55, %57, %59, %61, %63, %65, %67 in 1 : vector<256x64xf32>, vector<256x64xf32>, vector<256x64xf32>, vector<256x64xf32>, vector<256x64xf32>, vector<256x64xf32>, vector<256x64xf32>, vector<256x64xf32>, vector<256x64xf32> -> vector<256x576xf32>
    %69 = arith.truncf %68 : vector<256x576xf32> to vector<256x576xbf16>
    %c0_47 = arith.constant 0 : index
    %c0_48 = arith.constant 0 : index
    %70 = vector.load %arg6[%c0_47, %c0_48] : memref<576x128xbf16, #tpu.memory_space<vmem>>, vector<576x128xbf16>
    %cst_49 = arith.constant dense<0.000000e+00> : vector<256x128xf32>
    %71 = tpu.matmul %69, %70, %cst_49 {dimension_numbers = #tpu.dot_dimension_numbers<[1], [0], [0], [1], [0, 0, 1, 1], [], []>} : vector<256x576xbf16>, vector<576x128xbf16>, vector<256x128xf32> -> vector<256x128xf32>
    %c0_50 = arith.constant 0 : index
    %c0_51 = arith.constant 0 : index
    %72 = vector.load %arg7[%c0_50, %c0_51] : memref<1x128xf32, #tpu.memory_space<vmem>>, vector<1x128xf32>
    %73 = vector.broadcast %72 : vector<1x128xf32> to vector<256x128xf32>
    %74 = arith.addf %71, %73 : vector<256x128xf32>
    %cst_52 = arith.constant 0.000000e+00 : f32
    %75 = vector.broadcast %cst_52 : f32 to vector<256x128xf32>
    %76 = arith.maximumf %74, %75 : vector<256x128xf32>
    %cst_53 = arith.constant dense<0.000000e+00> : vector<128xf32>
    %77 = vector.multi_reduction <add>, %76, %cst_53 [0] : vector<256x128xf32> to vector<128xf32>
    %78 = vector.shape_cast %77 : vector<128xf32> to vector<1x128xf32>
    %cst_54 = arith.constant 3.906250e-03 : f32
    %79 = vector.broadcast %cst_54 : f32 to vector<1x128xf32>
    %80 = arith.mulf %78, %79 : vector<1x128xf32>
    %c0_55 = arith.constant 0 : index
    %c0_56 = arith.constant 0 : index
    %81 = vector.load %arg8[%c0_55, %c0_56] : memref<128x10xf32, #tpu.memory_space<vmem>>, vector<128x10xf32>
    %cst_57 = arith.constant dense<0.000000e+00> : vector<1x10xf32>
    %82 = tpu.matmul %80, %81, %cst_57 {dimension_numbers = #tpu.dot_dimension_numbers<[1], [0], [0], [1], [0, 0, 1, 1], [], []>} : vector<1x128xf32>, vector<128x10xf32>, vector<1x10xf32> -> vector<1x10xf32>
    %c0_58 = arith.constant 0 : index
    %c0_59 = arith.constant 0 : index
    %83 = vector.load %arg9[%c0_58, %c0_59] : memref<1x10xf32, #tpu.memory_space<vmem>>, vector<1x10xf32>
    %84 = arith.addf %82, %83 : vector<1x10xf32>
    %85 = vector.shape_cast %84 : vector<1x10xf32> to vector<1x1x10xf32>
    %c0_60 = arith.constant 0 : index
    %c0_61 = arith.constant 0 : index
    %c0_62 = arith.constant 0 : index
    %86 = vector.load %arg10[%c0_60, %c0_61, %c0_62] : memref<1x1x10xf32, #tpu.memory_space<vmem>>, vector<1x1x10xf32>
    tpu.vector_store %arg10[%c0_60, %c0_61, %c0_62], %85 {strides = array<i32>} : memref<1x1x10xf32, #tpu.memory_space<vmem>>, vector<1x1x10xf32>,
    return
  }
  func.func @transform_0(%arg0: i32) -> (i32, i32, i32, i32) {
    %c0_i32 = arith.constant 0 : i32
    %c0_i32_0 = arith.constant 0 : i32
    %c0_i32_1 = arith.constant 0 : i32
    %c0_i32_2 = arith.constant 0 : i32
    return %arg0, %c0_i32, %c0_i32_0, %c0_i32_1 : i32, i32, i32, i32
  }
  func.func @transform_1(%arg0: i32) -> (i32, i32) {
    %c0_i32 = arith.constant 0 : i32
    %c0_i32_0 = arith.constant 0 : i32
    %c0_i32_1 = arith.constant 0 : i32
    return %c0_i32, %c0_i32_0 : i32, i32
  }
  func.func @transform_2(%arg0: i32) -> (i32, i32) {
    %c0_i32 = arith.constant 0 : i32
    %c0_i32_0 = arith.constant 0 : i32
    %c0_i32_1 = arith.constant 0 : i32
    return %c0_i32, %c0_i32_0 : i32, i32
  }
  func.func @transform_3(%arg0: i32) -> (i32, i32) {
    %c0_i32 = arith.constant 0 : i32
    %c0_i32_0 = arith.constant 0 : i32
    %c0_i32_1 = arith.constant 0 : i32
    return %c0_i32, %c0_i32_0 : i32, i32
  }
  func.func @transform_4(%arg0: i32) -> (i32, i32) {
    %c0_i32 = arith.constant 0 : i32
    %c0_i32_0 = arith.constant 0 : i32
    %c0_i32_1 = arith.constant 0 : i32
    return %c0_i32, %c0_i32_0 : i32, i32
  }
  func.func @transform_5(%arg0: i32) -> (i32, i32) {
    %c0_i32 = arith.constant 0 : i32
    %c0_i32_0 = arith.constant 0 : i32
    %c0_i32_1 = arith.constant 0 : i32
    return %c0_i32, %c0_i32_0 : i32, i32
  }
  func.func @transform_6(%arg0: i32) -> (i32, i32) {
    %c0_i32 = arith.constant 0 : i32
    %c0_i32_0 = arith.constant 0 : i32
    %c0_i32_1 = arith.constant 0 : i32
    return %c0_i32, %c0_i32_0 : i32, i32
  }
  func.func @transform_7(%arg0: i32) -> (i32, i32) {
    %c0_i32 = arith.constant 0 : i32
    %c0_i32_0 = arith.constant 0 : i32
    %c0_i32_1 = arith.constant 0 : i32
    return %c0_i32, %c0_i32_0 : i32, i32
  }
  func.func @transform_8(%arg0: i32) -> (i32, i32) {
    %c0_i32 = arith.constant 0 : i32
    %c0_i32_0 = arith.constant 0 : i32
    %c0_i32_1 = arith.constant 0 : i32
    return %c0_i32, %c0_i32_0 : i32, i32
  }
  func.func @transform_9(%arg0: i32) -> (i32, i32, i32) {
    %c0_i32 = arith.constant 0 : i32
    %c0_i32_0 = arith.constant 0 : i32
    %c0_i32_1 = arith.constant 0 : i32
    return %arg0, %c0_i32, %c0_i32_0 : i32, i32, i32
  }
}

</mosaic_0001>

<bundles_post_ra>
// kernel: tpu_custom_call.1
= control target key start
LH: loop header
LB: loop body
LE: loop exit
PB: predicated region body
PF: predicated region fallthrough
CT: control target
= control target key end

     0   :  { %14 = vsyncpa [#allocation4], 0  ;;  %s9388_s0 = inlined_call_operand.vmem [shape: f32[2,18,18,4], index: 0, kind: input, shape index: {}]   ;;  %s9389_s1 = inlined_call_operand.vmem [shape: bf16[36,64], index: 1, kind: input, shape index: {}]   ;;  %s9390_s2 = inlined_call_operand.vmem [shape: f32[1,64], index: 2, kind: input, shape index: {}]   ;;  %s9391_s3 = inlined_call_operand.vmem [shape: bf16[64,64], index: 3, kind: input, shape index: {}]   ;;  %s9392_s4 = inlined_call_operand.vmem [shape: f32[1,64], index: 4, kind: input, shape index: {}]   ;;  %s9393_s5 = inlined_call_operand.vmem [shape: bf16[576,128], index: 5, kind: input, shape index: {}]   ;;  %s9394_s6 = inlined_call_operand.vmem [shape: f32[1,128], index: 6, kind: input, shape index: {}]   ;;  %s9395_s7 = inlined_call_operand.vmem [shape: f32[128,10], index: 7, kind: input, shape index: {}]   ;;  %s9396_s8 = inlined_call_operand.vmem [shape: f32[1,10], index: 8, kind: input, shape index: {}]   ;;  %s9397_s9 = inlined_call_operand.hbm [shape: f32[2,1,10], index: 9, kind: output, shape index: {}]  }
   0x1   :  { %16 = vsyncpa [#allocation4 + $0x1], 0  ;;  %s6519_s30 = smov 0   ;;  %s6521_s10 = smov 0  }
   0x2   :  { %s6523_s11 = smov 0   ;;  %s6525_s12 = smov 0  }
   0x3 LB: > { %s6540_s13 = sadd.s32 4294967295, %s6454_s12   ;;  %s4656_s14 = sadd.s32 4294967294, %s6454_s12   ;;  %s6454_s12 = sphi %s6525_s12, %s9536_s12   ;;  %s6450_s11 = sphi %s6523_s11, %s9535_s11   ;;  %s6446_s10 = sphi %s6521_s10, %s9534_s10   ;;  %s6442_s30 = sphi %s6519_s30, %s9533_s30  }
   0x4   : > { %s6544_s15 = sadd.s32 1, %s6454_s12   ;;  %s223_s16 = sadd.s32 1, %s6450_s11 }
   0x5   : > { %s220_s17 = ssub.s32 %s6454_s12, %s6544_s15  ;;  %p233_p0 = scmp.ne.s32.totalorder %s6450_s11, %s6446_s10 }
   0x6   : > { %p221_p1 = scmp.eq.s32.totalorder %s220_s17, 0  ;;  %p234_p2 = scmp.eq.s32.totalorder %s6540_s13, 1 }
   0x7   : > { %p239_p3 = scmp.ne.s32.totalorder %s6446_s10, %s6442_s30  ;;  %p240_p4 = scmp.eq.s32.totalorder %s4656_s14, 1 }
   0x8   : > { %s6555_s18 = scalar_select %p221_p1, %s6450_s11, %s223_s16  }
   0x9   : > { %p6557_p5 = por %p234_p2, %p233_p0  ;;  %p6561_p6 = por %p240_p4, %p239_p3 }
   0xa   : > { %p4659_p7 = scmp.ge.s32.totalorder %s6454_s12, 1  ;;  %p290_p8 = scmp.lt.s32.totalorder %s6454_s12, 3 }
   0xc   : > { %p291_p9 = pnand %p4659_p7, %p290_p8 }
   0xe   : > { %294 = sbr.rel (%p291_p9) target bundleno = 1769 (0x6e9), region = 56 }
  0x15   : > { %p325_p10 = scmp.lt.s32.totalorder %s6540_s13, 1  ;;  %vm514_vm0 = vcmask 1045504   ;;  %vm433_vm1 = vcmask 1046528   ;;  %s6456_s26 = smov 12   ;;  %v6255_v49 = vld [vmem:[%s9389_s1] sm:$0xff]   ;;  %v6256_v54 = vld [vmem:[%s9389_s1 + $0x8] sm:$0xff]  }
  0x16   : > { %s6457_s27 = smov 8   ;;  %s6458_s28 = smov 4   ;;  %5058 = vmatprep.subr.bf16.mxu0 %v6255_v49  ;;  %5235 = vmatprep.subr.bf16.mxu1 %v6255_v49  ;;  %vm1745_vm2 = vcmask 1041408   ;;  %vm1389_vm3 = vcmask 31744   ;;  %vm1422_vm4 = vcmask 64512   ;;  %vm1455_vm5 = vcmask 97280  }
  0x17   : > { %s326_s21 = scalar_select %p325_p10, %s6540_s13, 1  ;;  %5059 = vmatpush3.bf16.msra.mxu0 %v6255_v49  ;;  %5238 = vmatpush3.bf16.msra.mxu1 %v6255_v49  ;;  %vm1488_vm6 = vcmask 130048   ;;  %vm1521_vm7 = vcmask 162816   ;;  %vm1554_vm8 = vcmask 195584   ;;  %vm1587_vm9 = vcmask 228352  }
  0x18   : > { %s6459_s16 = smov 16   ;;  %5060 = vmatprep.subr.bf16.mxu0 %v6256_v54  ;;  %5236 = vmatprep.subr.bf16.mxu1 %v6256_v54  ;;  %s6461_s23 = smov 24   ;;  %vm1620_vm10 = vcmask 261120   ;;  %vm1696_vm11 = vcmask 293888   ;;  %vm1997_vm12 = vcmask 523264   ;;  %vm2508_vm13 = vcmask 517120  }
  0x19   : > { %s5243_s22 = smul.u32 432, %s326_s21  ;;  %s6462_s24 = smov 28   ;;  %vm6467_vm14 = vmmov 0   ;;  %vm4586_vm15 = vcmask 73728  }
  0x1a   : > { %s6463_s29 = smov 32  }
  0x1b   : > { %s6572_s25 = scalar_lea.vmem %s9388_s0, %s5243_s22  ;;  %s6460_s22 = smov 20   ;;  %5061 = vmatpush3.bf16.msra.mxu0 %v6256_v54  ;;  %5239 = vmatpush3.bf16.msra.mxu1 %v6256_v54 }
  0x1c   : > { %v337_v0 = vld [vmem:[%s6572_s25 + $0x30] sm:$0xff]  ;;  %v338_v1 = vld [vmem:[%s6572_s25 + $0x38] sm:$0xff]  ;;  %v6582_v4 = vld [vmem:[%s6572_s25 + $0x20] sm:$0xff] }
  0x1d   : > { %v6577_v2 = vld [vmem:[%s6572_s25 + $0x18] sm:$0xff]  ;;  %v6579_v3 = vpack.i.bf16 %v338_v1, %v337_v0  ;;  %v6585_v5 = vld [vmem:[%s6572_s25] sm:$0xff]  ;;  %v6588_v6 = vld [vmem:[%s6572_s25 + $0x8] sm:$0xff]  ;;  %v444_v9 = vrot.slane %v337_v0, 1  ;;  %v521_v19 = vrot.slane %v6582_v4, 2  ;;  %v440_v22 = vrot.slane %v6582_v4, 1 }
  0x1e   : > { %v520_v7 = vrot.slane %v6577_v2, 2  ;;  %v439_v8 = vrot.slane %v6577_v2, 1  ;;  %v5295_v10 = vpack.i.bf16 %v6582_v4, %v6577_v2  ;;  %v333_v11 = vld [vmem:[%s6572_s25 + $0x10] sm:$0x3]  ;;  %v515_v12 = vrot.slane %v6585_v5, 2  ;;  %v6623_v46 = vld [vmem:[%s6572_s25 + $0x48] sm:$0xff] }
  0x1f   : > { %v516_v13 = vrot.slane %v6588_v6, 2  ;;  %v434_v14 = vrot.slane %v6585_v5, 1  ;;  %5301 = vrot.lane.b32.xlu1 %v6579_v3, %s6456_s26  ;;  %v518_v15 = vrot.slane %v333_v11, 2  ;;  %v435_v16 = vrot.slane %v6588_v6, 1  ;;  %v336_v18 = vld [vmem:[%s6572_s25 + $0x28] sm:$0x3] }
  0x20   : > { %v437_v17 = vrot.slane %v333_v11, 1  ;;  %5296 = vrot.lane.b32.xlu0 %v5295_v10, %s6456_s26  ;;  %v523_v21 = vrot.slane %v336_v18, 2  ;;  %v442_v23 = vrot.slane %v336_v18, 1  ;;  %v339_v24 = vld [vmem:[%s6572_s25 + $0x40] sm:$0x3]  ;;  %v522_v28 = vsel %vm514_vm0, %v520_v7, %v521_v19  ;;  %v6626_v47 = vld [vmem:[%s6572_s25 + $0x50] sm:$0xff] }
  0x21   : > { %v517_v20 = vsel %vm514_vm0, %v515_v12, %v516_v13  ;;  %v519_v25 = vsel %vm514_vm0, %v516_v13, %v518_v15  ;;  %v436_v26 = vsel %vm433_vm1, %v434_v14, %v435_v16  ;;  %v441_v32 = vsel %vm433_vm1, %v439_v8, %v440_v22  ;;  %v342_v48 = vld [vmem:[%s6572_s25 + $0x58] sm:$0x3]  ;;  %v345_v7 = vld [vmem:[%s6572_s25 + $0x70] sm:$0x3] }
  0x22   : > { %v438_v27 = vsel %vm433_vm1, %v435_v16, %v437_v17  ;;  %v5315_v29 = vpack.i.bf16 %v519_v25, %v517_v20  ;;  %v524_v31 = vsel %vm514_vm0, %v521_v19, %v523_v21  ;;  %v443_v33 = vsel %vm433_vm1, %v440_v22, %v442_v23  ;;  %v346_v18 = vld [vmem:[%s6572_s25 + $0x78] sm:$0xff]  ;;  %v347_v21 = vld [vmem:[%s6572_s25 + $0x80] sm:$0xff]  ;;  %v6257_v22 = vld [vmem:[%s9389_s1 + $0x10] ss:$0 sps:$4 sm:$0x33]  }
  0x23   : > { %v5305_v30 = vpack.i.bf16 %v438_v27, %v436_v26  ;;  %v445_v34 = vrot.slane %v338_v1, 1  ;;  %v447_v35 = vrot.slane %v339_v24, 1  ;;  %v5320_v36 = vpack.i.bf16 %v524_v31, %v522_v28  ;;  %v348_v23 = vld [vmem:[%s6572_s25 + $0x88] sm:$0x3]  ;;  %5241 = vmatprep.subr.msk.bf16.mxu0 %vm1745_vm2, %v6257_v22  ;;  %5242 = vmatprep.subr.msk.bf16.mxu1 %vm1745_vm2, %v6257_v22 }
  0x24   : > { %5316 = vrot.lane.b32.xlu1 %v5315_v29, %s6457_s27  ;;  %v5310_v37 = vpack.i.bf16 %v443_v33, %v441_v32  ;;  %v525_v38 = vrot.slane %v337_v0, 2  ;;  %v526_v41 = vrot.slane %v338_v1, 2  ;;  %v528_v42 = vrot.slane %v339_v24, 2  ;;  %v343_v0 = vld [vmem:[%s6572_s25 + $0x60] sm:$0xff]  ;;  %v344_v1 = vld [vmem:[%s6572_s25 + $0x68] sm:$0xff] }
  0x25   : > { %5306 = vrot.lane.b32.xlu0 %v5305_v30, %s6458_s28  ;;  %v446_v39 = vsel %vm433_vm1, %v444_v9, %v445_v34  ;;  %v448_v40 = vsel %vm433_vm1, %v445_v34, %v447_v35  ;;  %v449_v51 = vrot.slane %v6623_v46, 1  ;;  %v450_v52 = vrot.slane %v6626_v47, 1 }
  0x26   : > { %v5330_v43 = vpack.i.bf16 %v448_v40, %v446_v39  ;;  %v527_v44 = vsel %vm514_vm0, %v525_v38, %v526_v41  ;;  %v529_v45 = vsel %vm514_vm0, %v526_v41, %v528_v42  ;;  %v452_v53 = vrot.slane %v342_v48, 1  ;;  %v349_v39 = vld [vmem:[%s6572_s25 + $0x90] sm:$0xff]  ;;  %v350_v40 = vld [vmem:[%s6572_s25 + $0x98] sm:$0xff]  ;;  %v351_v41 = vld [vmem:[%s6572_s25 + $0xa0] sm:$0x3] }
  0x27   : > { %v5340_v50 = vpack.i.bf16 %v529_v45, %v527_v44  ;;  %v5350_v55 = vpack.i.bf16 %v6626_v47, %v6623_v46  ;;  %v451_v56 = vsel %vm433_vm1, %v449_v51, %v450_v52  ;;  %v530_v59 = vrot.slane %v6623_v46, 2 }
  0x28   : > { %5321 = vrot.lane.b32.xlu1 %v5320_v36, %s6457_s27  ;;  %v453_v57 = vsel %vm433_vm1, %v450_v52, %v452_v53  ;;  %v531_v60 = vrot.slane %v6626_v47, 2  ;;  %v533_v61 = vrot.slane %v342_v48, 2  ;;  %v454_v8 = vrot.slane %v343_v0, 1 }
  0x29   : > { %5311 = vrot.lane.b32.xlu0 %v5310_v37, %s6458_s28  ;;  %v5360_v58 = vpack.i.bf16 %v453_v57, %v451_v56  ;;  %v455_v9 = vrot.slane %v344_v1, 1  ;;  %v457_v10 = vrot.slane %v345_v7, 1  ;;  %v5400_v11 = vpack.i.bf16 %v344_v1, %v343_v0  ;;  %v352_v56 = vld [vmem:[%s6572_s25 + $0xa8] sm:$0xff]  ;;  %v353_v57 = vld [vmem:[%s6572_s25 + $0xb0] sm:$0xff] }
  0x2a   : > { %v532_v62 = vsel %vm514_vm0, %v530_v59, %v531_v60  ;;  %v534_v63 = vsel %vm514_vm0, %v531_v60, %v533_v61  ;;  %v535_v12 = vrot.slane %v343_v0, 2  ;;  %v536_v15 = vrot.slane %v344_v1, 2 }
  0x2b   : > { %v456_v13 = vsel %vm433_vm1, %v454_v8, %v455_v9  ;;  %v458_v14 = vsel %vm433_vm1, %v455_v9, %v457_v10  ;;  %v538_v16 = vrot.slane %v345_v7, 2  ;;  %v459_v25 = vrot.slane %v346_v18, 1 }
  0x2c   : > { %5331 = vrot.lane.b32.xlu1 %v5330_v43, %s6459_s16  ;;  %v5410_v17 = vpack.i.bf16 %v458_v14, %v456_v13  ;;  %v537_v19 = vsel %vm514_vm0, %v535_v12, %v536_v15  ;;  %v460_v26 = vrot.slane %v347_v21, 1  ;;  %v462_v27 = vrot.slane %v348_v23, 1  ;;  %v355_v13 = vld [vmem:[%s6572_s25 + $0xc0] sm:$0xff]  ;;  %v356_v14 = vld [vmem:[%s6572_s25 + $0xc8] sm:$0xff] }
  0x2d   : > { %5326 = vrot.lane.b32.xlu0 %v5310_v37, %s6459_s16  ;;  %v539_v20 = vsel %vm514_vm0, %v536_v15, %v538_v16  ;;  %v1747_v28 = vsel %vm1745_vm2, %v6257_v22, 0  ;;  %v5430_v29 = vpack.i.bf16 %v347_v21, %v346_v18  ;;  %v540_v33 = vrot.slane %v346_v18, 2  ;;  %v357_v15 = vld [vmem:[%s6572_s25 + $0xd0] sm:$0x3] }
  0x2e   : > { %v5420_v24 = vpack.i.bf16 %v539_v20, %v537_v19  ;;  %5063 = vmatpush3.bf16.msra.mxu0 %v1747_v28  ;;  %5240 = vmatpush3.bf16.msra.mxu1 %v1747_v28  ;;  %v461_v30 = vsel %vm433_vm1, %v459_v25, %v460_v26  ;;  %v463_v31 = vsel %vm433_vm1, %v460_v26, %v462_v27  ;;  %v541_v34 = vrot.slane %v347_v21, 2  ;;  %v358_v28 = vld [vmem:[%s6572_s25 + $0xd8] sm:$0xff] }
  0x2f   : > { %v5440_v32 = vpack.i.bf16 %v463_v31, %v461_v30  ;;  %v543_v35 = vrot.slane %v348_v23, 2  ;;  %v464_v42 = vrot.slane %v349_v39, 1  ;;  %v467_v44 = vrot.slane %v351_v41, 1  ;;  %v360_v30 = vld [vmem:[%s6572_s25 + $0xe8] sm:$0x3] }
  0x30   : > { %5341 = vrot.lane.b32.xlu1 %v5340_v50, %s6460_s22  ;;  %v5480_v45 = vpack.i.bf16 %v350_v40, %v349_v39  ;;  %v545_v48 = vrot.slane %v349_v39, 2  ;;  %v546_v51 = vrot.slane %v350_v40, 2  ;;  %v548_v52 = vrot.slane %v351_v41, 2 }
  0x31   : > { %5336 = vrot.lane.b32.xlu0 %v5320_v36, %s6460_s22  ;;  %v542_v36 = vsel %vm514_vm0, %v540_v33, %v541_v34  ;;  %v544_v37 = vsel %vm514_vm0, %v541_v34, %v543_v35  ;;  %v469_v60 = vrot.slane %v352_v56, 1  ;;  %v470_v61 = vrot.slane %v353_v57, 1 }
  0x32   : > { %v5455_v38 = vpack.i.bf16 %v544_v37, %v542_v36  ;;  %v547_v54 = vsel %vm514_vm0, %v545_v48, %v546_v51  ;;  %v550_v7 = vrot.slane %v352_v56, 2  ;;  %v551_v8 = vrot.slane %v353_v57, 2 }
  0x33   : > { %v471_v0 = vsel %vm433_vm1, %v469_v60, %v470_v61  ;;  %v474_v16 = vrot.slane %v355_v13, 1  ;;  %v477_v18 = vrot.slane %v357_v15, 1  ;;  %v5560_v19 = vpack.i.bf16 %v356_v14, %v355_v13 }
  0x34   : > { %5351 = vrot.lane.b32.xlu1 %v5350_v55, %s6461_s23  ;;  %v552_v10 = vsel %vm514_vm0, %v550_v7, %v551_v8  ;;  %v555_v20 = vrot.slane %v355_v13, 2  ;;  %v556_v23 = vrot.slane %v356_v14, 2  ;;  %v482_v34 = vrot.slane %v360_v30, 1 }
  0x35   : > { %5346 = vrot.lane.b32.xlu0 %v6579_v3, %s6461_s23  ;;  %v5375_v3 = vpack.i.bf16 %v534_v63, %v532_v62  ;;  %v5510_v63 = vpack.i.bf16 %v353_v57, %v352_v56  ;;  %v560_v41 = vrot.slane %v358_v28, 2 }
  0x36   : > { %v557_v26 = vsel %vm514_vm0, %v555_v20, %v556_v23 }
  0x38   : > { %5361 = vrot.lane.b32.xlu1 %v5360_v58, %s6462_s24 }
  0x39   : > { %5356 = vrot.lane.b32.xlu0 %v5330_v43, %s6462_s24 }
  0x3c   : > { %5371 = vrot.lane.b32.xlu1 %v5330_v43, %s6458_s28  ;;  %v465_v43 = vrot.slane %v350_v40, 1 }
  0x3d   : > { %5366 = vrot.lane.b32.xlu0 %v5340_v50, %s6463_s29 }
  0x3e   : > { %v466_v49 = vsel %vm433_vm1, %v464_v42, %v465_v43 }
  0x40   : > { %5381 = vrot.lane.b32.xlu1 %v5360_v58, %s6458_s28 }
  0x41   : > { %5376 = vrot.lane.b32.xlu0 %v5375_v3, %s6463_s29 }
  0x44   : > { %5391 = vrot.lane.b32.xlu1 %v5375_v3, %s6457_s27 }
  0x45   : > { %5386 = vrot.lane.b32.xlu0 %v5340_v50, %s6457_s27  ;;  %v468_v50 = vsel %vm433_vm1, %v465_v43, %v467_v44  ;;  %v563_v43 = vrot.slane %v360_v30, 2 }
  0x46   : > { %v5490_v53 = vpack.i.bf16 %v468_v50, %v466_v49  ;;  %v361_v50 = vld [vmem:[%s6572_s25 + $0xf0] sm:$0xff] }
  0x47   : > { %v484_v56 = vrot.slane %v361_v50, 1 }
  0x48   : > { %5401 = vrot.lane.b32.xlu1 %v5400_v11, %s6456_s26 }
  0x49   : > { %5396 = vrot.lane.b32.xlu0 %v5350_v55, %s6456_s26  ;;  %v549_v55 = vsel %vm514_vm0, %v546_v51, %v548_v52 }
  0x4a   : > { %v5500_v59 = vpack.i.bf16 %v549_v55, %v547_v54  ;;  %v363_v54 = vld [vmem:[%s6572_s25 + $0x100] sm:$0x3] }
  0x4c   : > { %5411 = vrot.lane.b32.xlu1 %v5410_v17, %s6459_s16 }
  0x4d   : > { %5406 = vrot.lane.b32.xlu0 %v5360_v58, %s6459_s16  ;;  %v354_v58 = vld [vmem:[%s6572_s25 + $0xb8] sm:$0x3] }
  0x4e   : > { %v472_v62 = vrot.slane %v354_v58, 1  ;;  %v553_v9 = vrot.slane %v354_v58, 2  ;;  %v487_v58 = vrot.slane %v363_v54, 1 }
  0x50   : > { %5421 = vrot.lane.b32.xlu1 %v5420_v24, %s6460_s22  ;;  %v473_v1 = vsel %vm433_vm1, %v470_v61, %v472_v62 }
  0x51   : > { %5416 = vrot.lane.b32.xlu0 %v5375_v3, %s6460_s22  ;;  %v5520_v3 = vpack.i.bf16 %v473_v1, %v471_v0  ;;  %v6779_v1 = vld [vmem:[%s6572_s25 + $0x108] sm:$0xff] }
  0x54   : > { %5431 = vrot.lane.b32.xlu1 %v5430_v29, %s6461_s23 }
  0x55   : > { %5426 = vrot.lane.b32.xlu0 %v5400_v11, %s6461_s23  ;;  %v554_v11 = vsel %vm514_vm0, %v551_v8, %v553_v9  ;;  %v6786_v8 = vld [vmem:[%s6572_s25 + $0x110] sm:$0xff]  ;;  %v6789_v9 = vld [vmem:[%s6572_s25 + $0x118] sm:$0x3] }
  0x56   : > { %v5535_v12 = vpack.i.bf16 %v554_v11, %v552_v10 }
  0x58   : > { %5441 = vrot.lane.b32.xlu1 %v5440_v32, %s6462_s24 }
  0x59   : > { %5436 = vrot.lane.b32.xlu0 %v5410_v17, %s6462_s24 }
  0x5c   : > { %5451 = vrot.lane.b32.xlu1 %v5410_v17, %s6458_s28  ;;  %v475_v17 = vrot.slane %v356_v14, 1 }
  0x5d   : > { %5446 = vrot.lane.b32.xlu0 %v5420_v24, %s6463_s29 }
  0x5e   : > { %v476_v21 = vsel %vm433_vm1, %v474_v16, %v475_v17  ;;  %v478_v22 = vsel %vm433_vm1, %v475_v17, %v477_v18  ;;  %v489_v18 = vrot.slane %v6779_v1, 1 }
  0x5f   : > { %v5570_v25 = vpack.i.bf16 %v478_v22, %v476_v21  ;;  %v490_v21 = vrot.slane %v6786_v8, 1  ;;  %v492_v22 = vrot.slane %v6789_v9, 1 }
  0x60   : > { %5461 = vrot.lane.b32.xlu1 %v5440_v32, %s6458_s28 }
  0x61   : > { %5456 = vrot.lane.b32.xlu0 %v5455_v38, %s6463_s29 }
  0x64   : > { %5471 = vrot.lane.b32.xlu1 %v5455_v38, %s6457_s27 }
  0x65   : > { %5466 = vrot.lane.b32.xlu0 %v5420_v24, %s6457_s27  ;;  %v558_v24 = vrot.slane %v357_v15, 2 }
  0x67   : > { %v559_v27 = vsel %vm514_vm0, %v556_v23, %v558_v24 }
  0x68   : > { %5481 = vrot.lane.b32.xlu1 %v5480_v45, %s6456_s26  ;;  %v6737_v31 = vpack.i.bf16 %v559_v27, %v557_v26 }
  0x69   : > { %5476 = vrot.lane.b32.xlu0 %v5430_v29, %s6456_s26  ;;  %v359_v29 = vld [vmem:[%s6572_s25 + $0xe0] sm:$0xff] }
  0x6a   : > { %v480_v33 = vrot.slane %v359_v29, 1  ;;  %v6742_v35 = vpack.i.bf16 %v359_v29, %v358_v28  ;;  %v561_v42 = vrot.slane %v359_v29, 2 }
  0x6c   : > { %5491 = vrot.lane.b32.xlu1 %v5490_v53, %s6459_s16  ;;  %v562_v48 = vsel %vm514_vm0, %v560_v41, %v561_v42  ;;  %v564_v49 = vsel %vm514_vm0, %v561_v42, %v563_v43 }
  0x6d   : > { %5486 = vrot.lane.b32.xlu0 %v5440_v32, %s6459_s16  ;;  %v479_v32 = vrot.slane %v358_v28, 1  ;;  %v6770_v55 = vpack.i.bf16 %v564_v49, %v562_v48 }
  0x6f   : > { %v481_v37 = vsel %vm433_vm1, %v479_v32, %v480_v33 }
  0x70   : > { %5501 = vrot.lane.b32.xlu1 %v5500_v59, %s6460_s22 }
  0x71   : > { %5496 = vrot.lane.b32.xlu0 %v5455_v38, %s6460_s22  ;;  %v483_v38 = vsel %vm433_vm1, %v480_v33, %v482_v34  ;;  %v6829_v34 = vsel %vm433_vm1, %v489_v18, %v490_v21 }
  0x72   : > { %v6753_v40 = vpack.i.bf16 %v483_v38, %v481_v37  ;;  %v6832_v37 = vsel %vm433_vm1, %v490_v21, %v492_v22 }
  0x74   : > { %5511 = vrot.lane.b32.xlu1 %v5510_v63, %s6461_s23 }
  0x75   : > { %5506 = vrot.lane.b32.xlu0 %v5480_v45, %s6461_s23 }
  0x78   : > { %5521 = vrot.lane.b32.xlu1 %v5520_v3, %s6462_s24 }
  0x79   : > { %5516 = vrot.lane.b32.xlu0 %v5490_v53, %s6462_s24 }
  0x7c   : > { %5531 = vrot.lane.b32.xlu1 %v5490_v53, %s6458_s28  ;;  %v362_v53 = vld [vmem:[%s6572_s25 + $0xf8] sm:$0xff] }
  0x7d   : > { %5526 = vrot.lane.b32.xlu0 %v5500_v59, %s6463_s29  ;;  %v485_v57 = vrot.slane %v362_v53, 1  ;;  %v566_v60 = vrot.slane %v362_v53, 2  ;;  %v6776_v0 = vpack.i.bf16 %v362_v53, %v361_v50 }
  0x7f   : > { %v486_v10 = vsel %vm433_vm1, %v484_v56, %v485_v57  ;;  %v488_v11 = vsel %vm433_vm1, %v485_v57, %v487_v58 }
  0x80   : > { %5541 = vrot.lane.b32.xlu1 %v5520_v3, %s6458_s28  ;;  %v6812_v27 = vpack.i.bf16 %v488_v11, %v486_v10 }
  0x81   : > { %5536 = vrot.lane.b32.xlu0 %v5535_v12, %s6463_s29 }
  0x84   : > { %5551 = vrot.lane.b32.xlu1 %v5535_v12, %s6457_s27 }
  0x85   : > { %5546 = vrot.lane.b32.xlu0 %v5500_v59, %s6457_s27  ;;  %v565_v59 = vrot.slane %v361_v50, 2 }
  0x88   : > { %5561 = vrot.lane.b32.xlu1 %v5560_v19, %s6456_s26 }
  0x89   : > { %5556 = vrot.lane.b32.xlu0 %v5510_v63, %s6456_s26  ;;  %v568_v63 = vrot.slane %v363_v54, 2 }
  0x8b   : > { %v569_v17 = vsel %vm514_vm0, %v566_v60, %v568_v63 }
  0x8c   : > { %5571 = vrot.lane.b32.xlu1 %v5570_v25, %s6459_s16 }
  0x8d   : > { %5566 = vrot.lane.b32.xlu0 %v5520_v3, %s6459_s16 }
  0x90   : > { %5581 = vrot.lane.b32.xlu1 %v6737_v31, %s6460_s22 }
  0x91   : > { %5576 = vrot.lane.b32.xlu0 %v5535_v12, %s6460_s22  ;;  %v6744_v36 = vpop.permute.xlu1 %5301  ;;  %v567_v12 = vsel %vm514_vm0, %v565_v59, %v566_v60 }
  0x92   : > { %v6748_v39 = vpop.permute.xlu0 %5296 }
  0x93   : > { %v5299_v38 = vunpack.i.h.bf16 %v6748_v39  ;;  %v5298_v41 = vunpack.i.l.bf16 %v6748_v39 }
  0x94   : > { %5591 = vrot.lane.b32.xlu1 %v6742_v35, %s6461_s23 }
  0x95   : > { %5586 = vrot.lane.b32.xlu0 %v5560_v19, %s6461_s23 }
  0x96   : > { %v6755_v44 = vpop.permute.xlu1 %5316 }
  0x97   : > { %v5307_v45 = vpop.permute.xlu0 %5306  ;;  %v5319_v19 = vunpack.i.h.bf16 %v6755_v44  ;;  %v5318_v20 = vunpack.i.l.bf16 %v6755_v44 }
  0x98   : > { %5601 = vrot.lane.b32.xlu1 %v6753_v40, %s6462_s24  ;;  %v5309_v3 = vunpack.i.h.bf16 %v5307_v45  ;;  %v5308_v7 = vunpack.i.l.bf16 %v5307_v45 }
  0x99   : > { %5596 = vrot.lane.b32.xlu0 %v5570_v25, %s6462_s24 }
  0x9a   : > { %v6763_v51 = vpop.permute.xlu1 %5321  ;;  %v1391_v23 = vsel %vm1389_vm3, %v6588_v6, %v5309_v3  ;;  %v1390_v24 = vsel %vm1389_vm3, %v6585_v5, %v5308_v7  ;;  %v6816_v6 = vpack.i.bf16 %v6786_v8, %v6779_v1 }
  0x9b   : > { %v5312_v52 = vpop.permute.xlu0 %5311  ;;  %v5323_v26 = vunpack.i.l.bf16 %v6763_v51  ;;  %v1424_v32 = vsel %vm1422_vm4, %v1391_v23, %v5319_v19  ;;  %v1423_v33 = vsel %vm1422_vm4, %v1390_v24, %v5318_v20 }
  0x9c   : > { %5611 = vrot.lane.b32.xlu1 %v5570_v25, %s6458_s28  ;;  %v5314_v13 = vunpack.i.h.bf16 %v5312_v52  ;;  %v5313_v14 = vunpack.i.l.bf16 %v5312_v52  ;;  %v5324_v25 = vunpack.i.h.bf16 %v6763_v51  ;;  %v1457_v48 = vsel %vm1455_vm5, %v1424_v32, %v5299_v38 }
  0x9d   : > { %5606 = vrot.lane.b32.xlu0 %v6737_v31, %s6463_s29  ;;  %v6892_v38 = vpack.i.bf16 %v6832_v37, %v6829_v34 }
  0x9e   : > { %v6772_v61 = vpop.permute.xlu1 %5331  ;;  %v1393_v5 = vsel %vm1389_vm3, %v6582_v4, %v5314_v13  ;;  %v1392_v28 = vsel %vm1389_vm3, %v6577_v2, %v5313_v14  ;;  %v5304_v4 = vunpack.i.h.bf16 %v6744_v36  ;;  %v5303_v2 = vunpack.i.l.bf16 %v6744_v36 }
  0x9f   : > { %v6774_v62 = vpop.permute.xlu0 %5326  ;;  %v1426_v42 = vsel %vm1422_vm4, %v1393_v5, %v5324_v25  ;;  %v1425_v43 = vsel %vm1422_vm4, %v1392_v28, %v5323_v26  ;;  %v1456_v36 = vsel %vm1455_vm5, %v1423_v33, %v5298_v41  ;;  %v5334_v52 = vunpack.i.h.bf16 %v6772_v61 }
  0xa0   : > { %5621 = vrot.lane.b32.xlu1 %v6753_v40, %s6458_s28  ;;  %v5329_v44 = vunpack.i.h.bf16 %v6774_v62  ;;  %v5328_v45 = vunpack.i.l.bf16 %v6774_v62  ;;  %v1458_v56 = vsel %vm1455_vm5, %v1425_v43, %v5303_v2  ;;  %v1459_v57 = vsel %vm1455_vm5, %v1426_v42, %v5304_v4 }
  0xa1   : > { %5616 = vrot.lane.b32.xlu0 %v6770_v55, %s6463_s29  ;;  %v1492_v22 = vsel %vm1488_vm6, %v1459_v57, %v5334_v52  ;;  %v570_v41 = vrot.slane %v6779_v1, 2 }
  0xa2   : > { %v6794_v15 = vpop.permute.xlu1 %5341  ;;  %v1489_v60 = vsel %vm1488_vm6, %v1456_v36, %v5328_v45  ;;  %v1490_v62 = vsel %vm1488_vm6, %v1457_v48, %v5329_v44  ;;  %v571_v44 = vrot.slane %v6786_v8, 2  ;;  %v573_v45 = vrot.slane %v6789_v9, 2  ;;  %v367_v8 = vld [vmem:[%s6572_s25 + $0x120] sm:$0xff]  ;;  %v368_v9 = vld [vmem:[%s6572_s25 + $0x128] sm:$0xff] }
  0xa3   : > { %v5337_v16 = vpop.permute.xlu0 %5336  ;;  %v5343_v63 = vunpack.i.l.bf16 %v6794_v15  ;;  %v495_v52 = vrot.slane %v368_v9, 1  ;;  %v576_v57 = vrot.slane %v368_v9, 2 }
  0xa4   : > { %5631 = vrot.lane.b32.xlu1 %v6770_v55, %s6457_s27  ;;  %v5339_v49 = vunpack.i.h.bf16 %v5337_v16  ;;  %v5338_v39 = vunpack.i.l.bf16 %v5337_v16  ;;  %v572_v1 = vsel %vm514_vm0, %v570_v41, %v571_v44  ;;  %v574_v37 = vsel %vm514_vm0, %v571_v44, %v573_v45  ;;  %v6365_v41 = vld [vmem:[%s6572_s25 + $0x30] sm:$0xff] }
  0xa5   : > { %5626 = vrot.lane.b32.xlu0 %v6737_v31, %s6457_s27  ;;  %v6824_v31 = vpack.i.bf16 %v569_v17, %v567_v12 }
  0xa6   : > { %v6822_v29 = vpop.permute.xlu1 %5351  ;;  %v1522_v3 = vsel %vm1521_vm7, %v1489_v60, %v5338_v39  ;;  %v1523_v7 = vsel %vm1521_vm7, %v1490_v62, %v5339_v49  ;;  %v369_v39 = vld [vmem:[%s6572_s25 + $0x130] sm:$0x3]  ;;  %v6932_v60 = vld [vmem:[%s6572_s25 + $0x140] sm:$0xff]  ;;  %v6937_v62 = vld [vmem:[%s6572_s25 + $0x148] sm:$0x3] }
  0xa7   : > { %v5347_v30 = vpop.permute.xlu0 %5346  ;;  %v5354_v10 = vunpack.i.h.bf16 %v6822_v29  ;;  %v5353_v11 = vunpack.i.l.bf16 %v6822_v29 }
  0xa8   : > { %5641 = vrot.lane.b32.xlu1 %v6776_v0, %s6456_s26  ;;  %v5349_v53 = vunpack.i.h.bf16 %v5347_v30  ;;  %v5348_v54 = vunpack.i.l.bf16 %v5347_v30 }
  0xa9   : > { %5636 = vrot.lane.b32.xlu0 %v6742_v35, %s6456_s26  ;;  %v5333_v35 = vunpack.i.l.bf16 %v6772_v61  ;;  %v5344_v61 = vunpack.i.h.bf16 %v6794_v15 }
  0xaa   : > { %v5362_v50 = vpop.permute.xlu1 %5361  ;;  %v1555_v16 = vsel %vm1554_vm8, %v1522_v3, %v5348_v54  ;;  %v1556_v17 = vsel %vm1554_vm8, %v1523_v7, %v5349_v53  ;;  %v500_v7 = vrot.slane %v6932_v60, 1 }
  0xab   : > { %v5357_v51 = vpop.permute.xlu0 %5356  ;;  %v5364_v18 = vunpack.i.h.bf16 %v5362_v50  ;;  %v5363_v19 = vunpack.i.l.bf16 %v5362_v50  ;;  %v1491_v21 = vsel %vm1488_vm6, %v1458_v56, %v5333_v35  ;;  %v1525_v26 = vsel %vm1521_vm7, %v1492_v22, %v5344_v61 }
  0xac   : > { %v5359_v58 = vunpack.i.h.bf16 %v5357_v51  ;;  %v5358_v59 = vunpack.i.l.bf16 %v5357_v51  ;;  %5651 = vrot.lane.b32.xlu1 %v6812_v27, %s6459_s16  ;;  %v1524_v25 = vsel %vm1521_vm7, %v1491_v21, %v5343_v63  ;;  %v1558_v30 = vsel %vm1554_vm8, %v1525_v26, %v5354_v10  ;;  %v6364_v26 = vld [vmem:[%s6572_s25 + $0x38] sm:$0xff] }
  0xad   : > { %5646 = vrot.lane.b32.xlu0 %v6753_v40, %s6459_s16  ;;  %v1557_v29 = vsel %vm1554_vm8, %v1524_v25, %v5353_v11  ;;  %v1591_v2 = vsel %vm1587_vm9, %v1558_v30, %v5364_v18  ;;  %v6922_v50 = vpack.i.bf16 %v574_v37, %v572_v1  ;;  %v494_v51 = vrot.slane %v367_v8, 1 }
  0xae   : > { %v6864_v12 = vpop.permute.xlu1 %5371  ;;  %v1588_v15 = vsel %vm1587_vm9, %v1555_v16, %v5358_v59  ;;  %v1589_v20 = vsel %vm1587_vm9, %v1556_v17, %v5359_v58  ;;  %v1590_v4 = vsel %vm1587_vm9, %v1557_v29, %v5363_v19  ;;  %v497_v35 = vrot.slane %v369_v39, 1  ;;  %v6929_v59 = vld [vmem:[%s6572_s25 + $0x138] sm:$0xff] }
  0xaf   : > { %v5367_v13 = vpop.permute.xlu0 %5366  ;;  %v575_v56 = vrot.slane %v367_v8, 2  ;;  %v578_v58 = vrot.slane %v369_v39, 2  ;;  %v496_v61 = vsel %vm433_vm1, %v494_v51, %v495_v52  ;;  %v499_v3 = vrot.slane %v6929_v59, 1 }
  0xb0   : > { %v5369_v40 = vunpack.i.h.bf16 %v5367_v13  ;;  %v5368_v14 = vunpack.i.l.bf16 %v5367_v13  ;;  %5661 = vrot.lane.b32.xlu1 %v6824_v31, %s6460_s22  ;;  %v498_v63 = vsel %vm433_vm1, %v495_v52, %v497_v35  ;;  %v5374_v10 = vunpack.i.h.bf16 %v6864_v12 }
  0xb1   : > { %5656 = vrot.lane.b32.xlu0 %v6770_v55, %s6460_s22  ;;  %v502_v16 = vrot.slane %v6937_v62, 1  ;;  %v6957_v19 = vpack.i.bf16 %v6932_v60, %v6929_v59  ;;  %v6966_v22 = vpack.i.bf16 %v498_v63, %v496_v61 }
  0xb2   : > { %v1621_v23 = vsel %vm1620_vm10, %v1588_v15, %v5368_v14  ;;  %v1622_v24 = vsel %vm1620_vm10, %v1589_v20, %v5369_v40  ;;  %v6880_v5 = vpop.permute.xlu1 %5381  ;;  %v577_v40 = vsel %vm514_vm0, %v575_v56, %v576_v57  ;;  %v579_v14 = vsel %vm514_vm0, %v576_v57, %v578_v58 }
  0xb3   : > { %v5377_v28 = vpop.permute.xlu0 %5376  ;;  %v1653_v55 = vpack.c.bf16 %v1622_v24, %v1621_v23  ;;  %v5384_v17 = vunpack.i.h.bf16 %v6880_v5  ;;  %v5383_v18 = vunpack.i.l.bf16 %v6880_v5  ;;  %v5373_v15 = vunpack.i.l.bf16 %v6864_v12 }
  0xb4   : > { %v5379_v32 = vunpack.i.h.bf16 %v5377_v28  ;;  %v5378_v33 = vunpack.i.l.bf16 %v5377_v28  ;;  %5671 = vrot.lane.b32.xlu1 %v6816_v6, %s6461_s23  ;;  %v6970_v25 = vpack.i.bf16 %v579_v14, %v577_v40  ;;  %v6973_v12 = vsel %vm433_vm1, %v499_v3, %v500_v7 }
  0xb5   : > { %5666 = vrot.lane.b32.xlu0 %v6776_v0, %s6461_s23  ;;  %5064 = vmatprep.mubr.msk.bf16.mxu0 %vm1696_vm11, %v1653_v55  ;;  %v1395_v5 = vsel %vm1389_vm3, %v6364_v26, %v5374_v10  ;;  %v6982_v30 = vsel %vm433_vm1, %v500_v7, %v502_v16 }
  0xb6   : > { %v1623_v42 = vsel %vm1620_vm10, %v1590_v4, %v5378_v33  ;;  %v1624_v43 = vsel %vm1620_vm10, %v1591_v2, %v5379_v32  ;;  %v6900_v0 = vpop.permute.xlu1 %5391  ;;  %v1397_v32 = vsel %vm1389_vm3, %v6626_v47, %v5384_v17  ;;  %v1396_v33 = vsel %vm1389_vm3, %v6623_v46, %v5383_v18 }
  0xb7   : > { %v6902_v36 = vpop.permute.xlu0 %5386  ;;  %v1654_v34 = vpack.c.bf16 %v1624_v43, %v1623_v42  ;;  %v5394_v20 = vunpack.i.h.bf16 %v6900_v0  ;;  %v5393_v21 = vunpack.i.l.bf16 %v6900_v0  ;;  %v1394_v42 = vsel %vm1389_vm3, %v6365_v41, %v5373_v15 }
  0xb8   : > { %5681 = vrot.lane.b32.xlu1 %v6892_v38, %s6462_s24  ;;  %v5389_v23 = vunpack.i.h.bf16 %v6902_v36  ;;  %v5388_v24 = vunpack.i.l.bf16 %v6902_v36  ;;  %v7048_v41 = vpack.i.bf16 %v6982_v30, %v6973_v12  ;;  %v375_v12 = vld [vmem:[%s6572_s25 + $0x160] sm:$0x3] }
  0xb9   : > { %5676 = vrot.lane.b32.xlu0 %v6812_v27, %s6462_s24  ;;  %5065 = vmatmul.mubr.msk.bf16.vlgmr.msra.gmra.mrb[0].mxu0 %vm1696_vm11, %v1654_v34  ;;  %v1429_v43 = vsel %vm1422_vm4, %v1396_v33, %v5393_v21  ;;  %v1430_v44 = vsel %vm1422_vm4, %v1397_v32, %v5394_v20 }
  0xba   : > { %v6913_v48 = vpop.permute.xlu1 %5401  ;;  %v1428_v47 = vsel %vm1422_vm4, %v1395_v5, %v5389_v23  ;;  %v1427_v46 = vsel %vm1422_vm4, %v1394_v42, %v5388_v24  ;;  %v580_v42 = vrot.slane %v6929_v59, 2  ;;  %v374_v59 = vld [vmem:[%s6572_s25 + $0x158] sm:$0xff] }
  0xbb   : > { %v6915_v49 = vpop.permute.xlu0 %5396  ;;  %v5404_v28 = vunpack.i.h.bf16 %v6913_v48  ;;  %v5403_v55 = vunpack.i.l.bf16 %v6913_v48 }
  0xbc   : > { %5691 = vrot.lane.b32.xlu1 %v6812_v27, %s6458_s28  ;;  %v6934_v27 = vpack.i.bf16 %v368_v9, %v367_v8  ;;  %v5399_v4 = vunpack.i.h.bf16 %v6915_v49  ;;  %v5398_v2 = vunpack.i.l.bf16 %v6915_v49 }
  0xbd   : > { %5686 = vrot.lane.b32.xlu0 %v6824_v31, %s6463_s29  ;;  %v1462_v36 = vsel %vm1455_vm5, %v1429_v43, %v5403_v55  ;;  %v1463_v34 = vsel %vm1455_vm5, %v1430_v44, %v5404_v28 }
  0xbe   : > { %v6924_v53 = vpop.permute.xlu1 %5411  ;;  %v1460_v48 = vsel %vm1455_vm5, %v1427_v46, %v5398_v2  ;;  %v583_v46 = vrot.slane %v6937_v62, 2 }
  0xbf   : > { %v6926_v54 = vpop.permute.xlu0 %5406  ;;  %v5414_v51 = vunpack.i.h.bf16 %v6924_v53  ;;  %v5413_v52 = vunpack.i.l.bf16 %v6924_v53 }
  0xc0   : > { %5701 = vrot.lane.b32.xlu1 %v6892_v38, %s6458_s28  ;;  %v5409_v45 = vunpack.i.h.bf16 %v6926_v54  ;;  %v5408_v0 = vunpack.i.l.bf16 %v6926_v54 }
  0xc1   : > { %5696 = vrot.lane.b32.xlu0 %v6922_v50, %s6463_s29  ;;  %v1495_v20 = vsel %vm1488_vm6, %v1462_v36, %v5413_v52  ;;  %v1496_v21 = vsel %vm1488_vm6, %v1463_v34, %v5414_v51  ;;  %v373_v36 = vld [vmem:[%s6572_s25 + $0x150] sm:$0xff]  ;;  %v7085_v52 = vld [vmem:[%s6572_s25 + $0x168] sm:$0xff] }
  0xc2   : > { %v6948_v11 = vpop.permute.xlu1 %5421  ;;  %v1493_v56 = vsel %vm1488_vm6, %v1460_v48, %v5408_v0  ;;  %v585_v48 = vrot.slane %v373_v36, 2 }
  0xc3   : > { %v5417_v13 = vpop.permute.xlu0 %5416  ;;  %v5424_v58 = vunpack.i.h.bf16 %v6948_v11  ;;  %v5423_v61 = vunpack.i.l.bf16 %v6948_v11 }
  0xc4   : > { %5711 = vrot.lane.b32.xlu1 %v6922_v50, %s6457_s27  ;;  %v5419_v1 = vunpack.i.h.bf16 %v5417_v13  ;;  %v5418_v37 = vunpack.i.l.bf16 %v5417_v13 }
  0xc5   : > { %5706 = vrot.lane.b32.xlu0 %v6824_v31, %s6457_s27  ;;  %v1528_v26 = vsel %vm1521_vm7, %v1495_v20, %v5423_v61  ;;  %v1529_v5 = vsel %vm1521_vm7, %v1496_v21, %v5424_v58  ;;  %v7101_v61 = vpack.i.bf16 %v374_v59, %v373_v36 }
  0xc6   : > { %v6979_v31 = vpop.permute.xlu1 %5431  ;;  %v1526_v63 = vsel %vm1521_vm7, %v1493_v56, %v5418_v37  ;;  %v505_v37 = vrot.slane %v374_v59, 1  ;;  %v7093_v56 = vld [vmem:[%s6572_s25 + $0x178] sm:$0x3] }
  0xc7   : > { %v5427_v29 = vpop.permute.xlu0 %5426  ;;  %v5434_v3 = vunpack.i.h.bf16 %v6979_v31  ;;  %v5433_v7 = vunpack.i.l.bf16 %v6979_v31 }
  0xc8   : > { %5721 = vrot.lane.b32.xlu1 %v6934_v27, %s6456_s26  ;;  %v5429_v49 = vunpack.i.h.bf16 %v5427_v29  ;;  %v5428_v39 = vunpack.i.l.bf16 %v5427_v29 }
  0xc9   : > { %5716 = vrot.lane.b32.xlu0 %v6816_v6, %s6456_s26  ;;  %v1461_v6 = vsel %vm1455_vm5, %v1428_v47, %v5399_v4  ;;  %v1561_v29 = vsel %vm1554_vm8, %v1528_v26, %v5433_v7  ;;  %v581_v47 = vrot.slane %v6932_v60, 2 }
  0xca   : > { %v5442_v8 = vpop.permute.xlu1 %5441  ;;  %v1494_v57 = vsel %vm1488_vm6, %v1461_v6, %v5409_v45  ;;  %v586_v6 = vrot.slane %v374_v59, 2 }
  0xcb   : > { %v5437_v9 = vpop.permute.xlu0 %5436  ;;  %v1527_v53 = vsel %vm1521_vm7, %v1494_v57, %v5419_v1  ;;  %v5444_v17 = vunpack.i.h.bf16 %v5442_v8  ;;  %v5443_v18 = vunpack.i.l.bf16 %v5442_v8  ;;  %v582_v60 = vsel %vm514_vm0, %v580_v42, %v581_v47  ;;  %v6369_v42 = vld [vmem:[%s6572_s25 + $0x60] sm:$0xff] }
  0xcc   : > { %v5439_v35 = vunpack.i.h.bf16 %v5437_v9  ;;  %v5438_v54 = vunpack.i.l.bf16 %v5437_v9  ;;  %5731 = vrot.lane.b32.xlu1 %v6966_v22, %s6459_s16  ;;  %v1560_v40 = vsel %vm1554_vm8, %v1527_v53, %v5429_v49  ;;  %v584_v62 = vsel %vm514_vm0, %v581_v47, %v583_v46 }
  0xcd   : > { %5726 = vrot.lane.b32.xlu0 %v6892_v38, %s6459_s16  ;;  %v1559_v38 = vsel %vm1554_vm8, %v1526_v63, %v5428_v39  ;;  %v1594_v4 = vsel %vm1587_vm9, %v1561_v29, %v5443_v18  ;;  %v504_v1 = vrot.slane %v373_v36, 1  ;;  %v507_v8 = vrot.slane %v375_v12, 1  ;;  %v6367_v29 = vld [vmem:[%s6572_s25 + $0x80] sm:$0xff] }
  0xce   : > { %v7020_v10 = vpop.permute.xlu1 %5451  ;;  %v1592_v11 = vsel %vm1587_vm9, %v1559_v38, %v5438_v54  ;;  %v1593_v15 = vsel %vm1587_vm9, %v1560_v40, %v5439_v35  ;;  %v7078_v9 = vpack.i.bf16 %v584_v62, %v582_v60  ;;  %v588_v49 = vrot.slane %v375_v12, 2  ;;  %v7088_v35 = vld [vmem:[%s6572_s25 + $0x170] sm:$0xff] }
  0xcf   : > { %v5447_v13 = vpop.permute.xlu0 %5446  ;;  %v506_v54 = vsel %vm433_vm1, %v504_v1, %v505_v37  ;;  %v587_v57 = vsel %vm514_vm0, %v585_v48, %v586_v6  ;;  %v509_v63 = vrot.slane %v7085_v52, 1  ;;  %v510_v53 = vrot.slane %v7088_v35, 1 }
  0xd0   : > { %v5449_v14 = vunpack.i.h.bf16 %v5447_v13  ;;  %v5448_v16 = vunpack.i.l.bf16 %v5447_v13  ;;  %5741 = vrot.lane.b32.xlu1 %v6970_v25, %s6460_s22  ;;  %v589_v58 = vsel %vm514_vm0, %v586_v6, %v588_v49  ;;  %v512_v40 = vrot.slane %v7093_v56, 1 }
  0xd1   : > { %5736 = vrot.lane.b32.xlu0 %v6922_v50, %s6460_s22  ;;  %v1562_v50 = vsel %vm1554_vm8, %v1529_v5, %v5434_v3  ;;  %v5454_v3 = vunpack.i.h.bf16 %v7020_v10  ;;  %v5453_v18 = vunpack.i.l.bf16 %v7020_v10  ;;  %v7124_v20 = vpack.i.bf16 %v7088_v35, %v7085_v52 }
  0xd2   : > { %v1625_v23 = vsel %vm1620_vm10, %v1592_v11, %v5448_v16  ;;  %v1626_v24 = vsel %vm1620_vm10, %v1593_v15, %v5449_v14  ;;  %v7036_v28 = vpop.permute.xlu1 %5461  ;;  %v1595_v2 = vsel %vm1587_vm9, %v1562_v50, %v5444_v17  ;;  %v7113_v17 = vpack.i.bf16 %v589_v58, %v587_v57 }
  0xd3   : > { %v5457_v55 = vpop.permute.xlu0 %5456  ;;  %v1655_v31 = vpack.c.bf16 %v1626_v24, %v1625_v23  ;;  %v5464_v14 = vunpack.i.h.bf16 %v7036_v28  ;;  %v5463_v16 = vunpack.i.l.bf16 %v7036_v28  ;;  %v7129_v23 = vsel %vm433_vm1, %v509_v63, %v510_v53  ;;  %v6366_v24 = vld [vmem:[%s6572_s25 + $0x68] sm:$0xff] }
  0xd4   : > { %v5459_v32 = vunpack.i.h.bf16 %v5457_v55  ;;  %v5458_v33 = vunpack.i.l.bf16 %v5457_v55  ;;  %5751 = vrot.lane.b32.xlu1 %v6957_v19, %s6461_s23  ;;  %v1399_v26 = vsel %vm1389_vm3, %v6366_v24, %v5454_v3 }
  0xd5   : > { %5746 = vrot.lane.b32.xlu0 %v6934_v27, %s6461_s23  ;;  %5068 = vmatprep.mubr.msk.bf16.mxu0 %vm1696_vm11, %v1655_v31  ;;  %v513_v31 = vsel %vm433_vm1, %v510_v53, %v512_v40  ;;  %v1401_v50 = vsel %vm1389_vm3, %v6367_v29, %v5464_v14 }
  0xd6   : > { %v1628_v43 = vsel %vm1620_vm10, %v1595_v2, %v5459_v32  ;;  %v1627_v44 = vsel %vm1620_vm10, %v1594_v4, %v5458_v33  ;;  %v7056_v45 = vpop.permute.xlu1 %5471  ;;  %v6368_v32 = vld [vmem:[%s6572_s25 + $0x78] sm:$0xff] }
  0xd7   : > { %v7058_v0 = vpop.permute.xlu0 %5466  ;;  %v1656_v27 = vpack.c.bf16 %v1628_v43, %v1627_v44  ;;  %v5474_v11 = vunpack.i.h.bf16 %v7056_v45  ;;  %v5473_v15 = vunpack.i.l.bf16 %v7056_v45  ;;  %v1400_v33 = vsel %vm1389_vm3, %v6368_v32, %v5463_v16 }
  0xd8   : > { %5761 = vrot.lane.b32.xlu1 %v7048_v41, %s6462_s24  ;;  %v5469_v21 = vunpack.i.h.bf16 %v7058_v0  ;;  %v5468_v10 = vunpack.i.l.bf16 %v7058_v0  ;;  %v1398_v43 = vsel %vm1389_vm3, %v6369_v42, %v5453_v18 }
  0xd9   : > { %5756 = vrot.lane.b32.xlu0 %v6966_v22, %s6462_s24  ;;  %5069 = vmatmul.mubr.msk.bf16.gmra.mrb[4].mxu0 %vm1696_vm11, %v1656_v27  ;;  %v1433_v44 = vsel %vm1422_vm4, %v1400_v33, %v5473_v15  ;;  %v1434_v47 = vsel %vm1422_vm4, %v1401_v50, %v5474_v11  ;;  %v7193_v50 = vpack.i.bf16 %v513_v31, %v7129_v23  ;;  %v590_v23 = vrot.slane %v7085_v52, 2 }
  0xda   : > { %v7070_v30 = vpop.permute.xlu1 %5481  ;;  %v1432_v46 = vsel %vm1422_vm4, %v1399_v26, %v5469_v21  ;;  %v1431_v45 = vsel %vm1422_vm4, %v1398_v43, %v5468_v10 }
  0xdb   : > { %v7072_v34 = vpop.permute.xlu0 %5476  ;;  %v5484_v5 = vunpack.i.h.bf16 %v7070_v30  ;;  %v5483_v28 = vunpack.i.l.bf16 %v7070_v30 }
  0xdc   : > { %5771 = vrot.lane.b32.xlu1 %v6966_v22, %s6458_s28  ;;  %v508_v22 = vsel %vm433_vm1, %v505_v37, %v507_v8  ;;  %v5479_v4 = vunpack.i.h.bf16 %v7072_v34  ;;  %v5478_v2 = vunpack.i.l.bf16 %v7072_v34 }
  0xdd   : > { %5766 = vrot.lane.b32.xlu0 %v6970_v25, %s6463_s29  ;;  %v7108_v38 = vpack.i.bf16 %v508_v22, %v506_v54  ;;  %v1466_v36 = vsel %vm1455_vm5, %v1433_v44, %v5483_v28  ;;  %v1467_v59 = vsel %vm1455_vm5, %v1434_v47, %v5484_v5  ;;  %v591_v44 = vrot.slane %v7088_v35, 2 }
  0xde   : > { %v7080_v39 = vpop.permute.xlu1 %5491  ;;  %v1464_v34 = vsel %vm1455_vm5, %v1431_v45, %v5478_v2  ;;  %v593_v47 = vrot.slane %v7093_v56, 2 }
  0xdf   : > { %v7082_v51 = vpop.permute.xlu0 %5486  ;;  %v5494_v8 = vunpack.i.h.bf16 %v7080_v39  ;;  %v5493_v48 = vunpack.i.l.bf16 %v7080_v39  ;;  %v592_v52 = vsel %vm514_vm0, %v590_v23, %v591_v44 }
  0xe0   : > { %5781 = vrot.lane.b32.xlu1 %v7048_v41, %s6458_s28  ;;  %v5489_v0 = vunpack.i.h.bf16 %v7082_v51  ;;  %v5488_v27 = vunpack.i.l.bf16 %v7082_v51  ;;  %v594_v35 = vsel %vm514_vm0, %v591_v44, %v593_v47 }
  0xe1   : > { %5776 = vrot.lane.b32.xlu0 %v7078_v9, %s6463_s29  ;;  %v1499_v21 = vsel %vm1488_vm6, %v1466_v36, %v5493_v48  ;;  %v1500_v10 = vsel %vm1488_vm6, %v1467_v59, %v5494_v8  ;;  %v380_v36 = vld [vmem:[%s6572_s25 + $0x188] sm:$0xff] }
  0xe2   : > { %v7106_v7 = vpop.permute.xlu1 %5501  ;;  %v1497_v51 = vsel %vm1488_vm6, %v1464_v34, %v5488_v27  ;;  %v379_v27 = vld [vmem:[%s6572_s25 + $0x180] sm:$0xff]  ;;  %v604_v34 = vrot.slane %v380_v36, 2 }
  0xe3   : > { %v5497_v13 = vpop.permute.xlu0 %5496  ;;  %v5504_v22 = vunpack.i.h.bf16 %v7106_v7  ;;  %v5503_v57 = vunpack.i.l.bf16 %v7106_v7 }
  0xe4   : > { %5791 = vrot.lane.b32.xlu1 %v7078_v9, %s6457_s27  ;;  %v5499_v12 = vunpack.i.h.bf16 %v5497_v13  ;;  %v5498_v60 = vunpack.i.l.bf16 %v5497_v13 }
  0xe5   : > { %5786 = vrot.lane.b32.xlu0 %v6970_v25, %s6457_s27  ;;  %v1532_v5 = vsel %vm1521_vm7, %v1499_v21, %v5503_v57  ;;  %v1533_v28 = vsel %vm1521_vm7, %v1500_v10, %v5504_v22  ;;  %v7248_v22 = vld [vmem:[%s6572_s25 + $0x1a8] sm:$0x3]  ;;  %v7254_v57 = vpack.i.bf16 %v380_v36, %v379_v27 }
  0xe6   : > { %v7135_v25 = vpop.permute.xlu1 %5511  ;;  %v1530_v58 = vsel %vm1521_vm7, %v1497_v51, %v5498_v60  ;;  %v599_v60 = vrot.slane %v380_v36, 1  ;;  %v7243_v51 = vld [vmem:[%s6572_s25 + $0x1a0] sm:$0xff] }
  0xe7   : > { %v5507_v55 = vpop.permute.xlu0 %5506  ;;  %v5514_v63 = vunpack.i.h.bf16 %v7135_v25  ;;  %v5513_v53 = vunpack.i.l.bf16 %v7135_v25  ;;  %v617_v10 = vrot.slane %v7243_v51, 2 }
  0xe8   : > { %5801 = vrot.lane.b32.xlu1 %v7101_v61, %s6456_s26  ;;  %v5509_v1 = vunpack.i.h.bf16 %v5507_v55  ;;  %v5508_v37 = vunpack.i.l.bf16 %v5507_v55 }
  0xe9   : > { %5796 = vrot.lane.b32.xlu0 %v6957_v19, %s6456_s26  ;;  %v1465_v19 = vsel %vm1455_vm5, %v1432_v46, %v5479_v4  ;;  %v1566_v32 = vsel %vm1554_vm8, %v1533_v28, %v5514_v63  ;;  %v6370_v28 = vld [vmem:[%s6572_s25 + $0x98] sm:$0xff] }
  0xea   : > { %v5522_v62 = vpop.permute.xlu1 %5521  ;;  %v1498_v54 = vsel %vm1488_vm6, %v1465_v19, %v5489_v0 }
  0xeb   : > { %v5517_v30 = vpop.permute.xlu0 %5516  ;;  %v1531_v39 = vsel %vm1521_vm7, %v1498_v54, %v5499_v12  ;;  %v5524_v18 = vunpack.i.h.bf16 %v5522_v62  ;;  %v5523_v11 = vunpack.i.l.bf16 %v5522_v62  ;;  %v598_v12 = vrot.slane %v379_v27, 1 }
  0xec   : > { %v5519_v6 = vunpack.i.h.bf16 %v5517_v30  ;;  %v5518_v49 = vunpack.i.l.bf16 %v5517_v30  ;;  %5811 = vrot.lane.b32.xlu1 %v7108_v38, %s6459_s16  ;;  %v1564_v40 = vsel %vm1554_vm8, %v1531_v39, %v5509_v1  ;;  %v603_v30 = vrot.slane %v379_v27, 2 }
  0xed   : > { %5806 = vrot.lane.b32.xlu0 %v7048_v41, %s6459_s16  ;;  %v1563_v41 = vsel %vm1554_vm8, %v1530_v58, %v5508_v37  ;;  %v1599_v42 = vsel %vm1587_vm9, %v1566_v32, %v5524_v18  ;;  %v7231_v1 = vpack.i.bf16 %v594_v35, %v592_v52  ;;  %v600_v48 = vsel %vm433_vm1, %v598_v12, %v599_v60 }
  0xee   : > { %v7174_v3 = vpop.permute.xlu1 %5531  ;;  %v1596_v7 = vsel %vm1587_vm9, %v1563_v41, %v5518_v49  ;;  %v1597_v15 = vsel %vm1587_vm9, %v1564_v40, %v5519_v6  ;;  %v7240_v49 = vld [vmem:[%s6572_s25 + $0x198] sm:$0xff]  ;;  %v605_v54 = vsel %vm514_vm0, %v603_v30, %v604_v34  ;;  %v612_v39 = vrot.slane %v7243_v51, 1 }
  0xef   : > { %v5527_v13 = vpop.permute.xlu0 %5526  ;;  %v611_v63 = vrot.slane %v7240_v49, 1 }
  0xf0   : > { %v5529_v14 = vunpack.i.h.bf16 %v5527_v13  ;;  %v5528_v16 = vunpack.i.l.bf16 %v5527_v13  ;;  %5821 = vrot.lane.b32.xlu1 %v7113_v17, %s6460_s22 }
  0xf1   : > { %5816 = vrot.lane.b32.xlu0 %v7078_v9, %s6460_s22  ;;  %v1565_v9 = vsel %vm1554_vm8, %v1532_v5, %v5513_v53  ;;  %v5534_v53 = vunpack.i.h.bf16 %v7174_v3  ;;  %v7284_v5 = vsel %vm433_vm1, %v611_v63, %v612_v39 }
  0xf2   : > { %v1629_v24 = vsel %vm1620_vm10, %v1596_v7, %v5528_v16  ;;  %v1630_v26 = vsel %vm1620_vm10, %v1597_v15, %v5529_v14  ;;  %v7190_v25 = vpop.permute.xlu1 %5541  ;;  %v1598_v2 = vsel %vm1587_vm9, %v1565_v9, %v5523_v11  ;;  %v614_v14 = vrot.slane %v7248_v22, 1 }
  0xf3   : > { %v5537_v55 = vpop.permute.xlu0 %5536  ;;  %v1657_v29 = vpack.c.bf16 %v1630_v26, %v1629_v24  ;;  %v5544_v16 = vunpack.i.h.bf16 %v7190_v25  ;;  %v5543_v18 = vunpack.i.l.bf16 %v7190_v25  ;;  %v5910_v11 = vpack.i.bf16 %v7243_v51, %v7240_v49 }
  0xf4   : > { %v5539_v33 = vunpack.i.h.bf16 %v5537_v55  ;;  %v5538_v4 = vunpack.i.l.bf16 %v5537_v55  ;;  %5831 = vrot.lane.b32.xlu1 %v7124_v20, %s6461_s23  ;;  %v5533_v7 = vunpack.i.l.bf16 %v7174_v3  ;;  %v616_v3 = vrot.slane %v7240_v49, 2 }
  0xf5   : > { %5826 = vrot.lane.b32.xlu0 %v7101_v61, %s6461_s23  ;;  %5072 = vmatprep.mubr.msk.bf16.mxu0 %vm1696_vm11, %v1657_v29  ;;  %v381_v61 = vld [vmem:[%s6572_s25 + $0x190] sm:$0x3]  ;;  %v1403_v25 = vsel %vm1389_vm3, %v6370_v28, %v5534_v53  ;;  %v7293_v32 = vsel %vm433_vm1, %v612_v39, %v614_v14 }
  0xf6   : > { %v1632_v31 = vsel %vm1620_vm10, %v1599_v42, %v5539_v33  ;;  %v1631_v43 = vsel %vm1620_vm10, %v1598_v2, %v5538_v4  ;;  %v7209_v46 = vpop.permute.xlu1 %5551  ;;  %v601_v62 = vrot.slane %v381_v61, 1  ;;  %v606_v19 = vrot.slane %v381_v61, 2  ;;  %v6371_v33 = vld [vmem:[%s6572_s25 + $0xb0] sm:$0xff]  ;;  %v6372_v2 = vld [vmem:[%s6572_s25 + $0xa8] sm:$0xff] }
  0xf7   : > { %v7211_v45 = vpop.permute.xlu0 %5546  ;;  %v1658_v0 = vpack.c.bf16 %v1632_v31, %v1631_v43  ;;  %v5554_v15 = vunpack.i.h.bf16 %v7209_v46  ;;  %v5553_v21 = vunpack.i.l.bf16 %v7209_v46  ;;  %v1405_v4 = vsel %vm1389_vm3, %v6371_v33, %v5544_v16  ;;  %v6373_v43 = vld [vmem:[%s6572_s25 + $0x90] sm:$0xff] }
  0xf8   : > { %5841 = vrot.lane.b32.xlu1 %v7193_v50, %s6462_s24  ;;  %v602_v6 = vsel %vm433_vm1, %v599_v60, %v601_v62  ;;  %v5549_v24 = vunpack.i.h.bf16 %v7211_v45  ;;  %v5548_v26 = vunpack.i.l.bf16 %v7211_v45  ;;  %v1404_v42 = vsel %vm1389_vm3, %v6372_v2, %v5543_v18 }
  0xf9   : > { %5836 = vrot.lane.b32.xlu0 %v7108_v38, %s6462_s24  ;;  %5073 = vmatmul.mubr.msk.bf16.gmra.mrb[8].mxu0 %vm1696_vm11, %v1658_v0  ;;  %v7256_v58 = vpack.i.bf16 %v602_v6, %v600_v48  ;;  %v1402_v44 = vsel %vm1389_vm3, %v6373_v43, %v5533_v7  ;;  %v1437_v47 = vsel %vm1422_vm4, %v1404_v42, %v5553_v21  ;;  %v619_v45 = vrot.slane %v7248_v22, 2 }
  0xfa   : > { %v7223_v56 = vpop.permute.xlu1 %5561  ;;  %v1438_v46 = vsel %vm1422_vm4, %v1405_v4, %v5554_v15  ;;  %v1436_v0 = vsel %vm1422_vm4, %v1403_v25, %v5549_v24  ;;  %v1435_v27 = vsel %vm1422_vm4, %v1402_v44, %v5548_v26 }
  0xfb   : > { %v7225_v59 = vpop.permute.xlu0 %5556  ;;  %v5564_v55 = vunpack.i.h.bf16 %v7223_v56  ;;  %v5563_v29 = vunpack.i.l.bf16 %v7223_v56 }
  0xfc   : > { %5851 = vrot.lane.b32.xlu1 %v7108_v38, %s6458_s28  ;;  %v607_v38 = vsel %vm514_vm0, %v604_v34, %v606_v19  ;;  %v5559_v23 = vunpack.i.h.bf16 %v7225_v59  ;;  %v5558_v31 = vunpack.i.l.bf16 %v7225_v59 }
  0xfd   : > { %5846 = vrot.lane.b32.xlu0 %v7113_v17, %s6463_s29  ;;  %v7265_v40 = vpack.i.bf16 %v607_v38, %v605_v54  ;;  %v1470_v52 = vsel %vm1455_vm5, %v1437_v47, %v5563_v29  ;;  %v1471_v35 = vsel %vm1455_vm5, %v1438_v46, %v5564_v55 }
  0xfe   : > { %v7233_v37 = vpop.permute.xlu1 %5571  ;;  %v1468_v60 = vsel %vm1455_vm5, %v1435_v27, %v5558_v31  ;;  %v1469_v62 = vsel %vm1455_vm5, %v1436_v0, %v5559_v23  ;;  %v5920_v31 = vpack.i.bf16 %v7293_v32, %v7284_v5  ;;  %v618_v27 = vsel %vm514_vm0, %v616_v3, %v617_v10 }
  0xff   : > { %v7235_v8 = vpop.permute.xlu0 %5566  ;;  %v5574_v19 = vunpack.i.h.bf16 %v7233_v37 }
 0x100   : > { %5861 = vrot.lane.b32.xlu1 %v7193_v50, %s6458_s28  ;;  %v5569_v36 = vunpack.i.h.bf16 %v7235_v8  ;;  %v5568_v61 = vunpack.i.l.bf16 %v7235_v8  ;;  %v5573_v8 = vunpack.i.l.bf16 %v7233_v37  ;;  %v7333_v37 = vld [vmem:[%s9391_s3] sm:$0xff]  }
 0x101   : > { %5856 = vrot.lane.b32.xlu0 %v7231_v1, %s6463_s29  ;;  %5096 = vmatprep.subr.bf16.mxu1 %v7333_v37  ;;  %v1504_v29 = vsel %vm1488_vm6, %v1471_v35, %v5574_v19 }
 0x102   : > { %v7261_v13 = vpop.permute.xlu1 %5581  ;;  %v1501_v54 = vsel %vm1488_vm6, %v1468_v60, %v5568_v61  ;;  %v1502_v38 = vsel %vm1488_vm6, %v1469_v62, %v5569_v36  ;;  %v1503_v55 = vsel %vm1488_vm6, %v1470_v52, %v5573_v8  ;;  %v6374_v8 = vld [vmem:[%s6572_s25 + $0xe0] sm:$0xff] }
 0x103   : > { %v7263_v41 = vpop.permute.xlu0 %5576  ;;  %v5584_v39 = vunpack.i.h.bf16 %v7261_v13  ;;  %v5583_v63 = vunpack.i.l.bf16 %v7261_v13 }
 0x104   : > { %5871 = vrot.lane.b32.xlu1 %v7231_v1, %s6457_s27  ;;  %v5579_v56 = vunpack.i.h.bf16 %v7263_v41  ;;  %v5578_v59 = vunpack.i.l.bf16 %v7263_v41 }
 0x105   : > { %5866 = vrot.lane.b32.xlu0 %v7113_v17, %s6457_s27  ;;  %v1536_v33 = vsel %vm1521_vm7, %v1503_v55, %v5583_v63  ;;  %v1537_v4 = vsel %vm1521_vm7, %v1504_v29, %v5584_v39  ;;  %v6376_v63 = vld [vmem:[%s6572_s25 + $0xc8] sm:$0xff] }
 0x106   : > { %v7290_v17 = vpop.permute.xlu1 %5591  ;;  %v1534_v53 = vsel %vm1521_vm7, %v1501_v54, %v5578_v59  ;;  %v1535_v41 = vsel %vm1521_vm7, %v1502_v38, %v5579_v56 }
 0x107   : > { %v5587_v9 = vpop.permute.xlu0 %5586  ;;  %v5594_v14 = vunpack.i.h.bf16 %v7290_v17 }
 0x108   : > { %5881 = vrot.lane.b32.xlu1 %v7254_v57, %s6456_s26  ;;  %v5589_v30 = vunpack.i.h.bf16 %v5587_v9  ;;  %v5588_v34 = vunpack.i.l.bf16 %v5587_v9 }
 0x109   : > { %5876 = vrot.lane.b32.xlu0 %v7124_v20, %s6456_s26  ;;  %v1570_v43 = vsel %vm1554_vm8, %v1537_v4, %v5594_v14  ;;  %s6465_s26 = smov 64  }
 0x10a   : > { %v5602_v12 = vpop.permute.xlu1 %5601  ;;  %v1567_v7 = vsel %vm1554_vm8, %v1534_v53, %v5588_v34  ;;  %v1568_v13 = vsel %vm1554_vm8, %v1535_v41, %v5589_v30  ;;  %v6377_v41 = vld [vmem:[%s6572_s25 + $0xc0] sm:$0xff] }
 0x10b   : > { %v5597_v20 = vpop.permute.xlu0 %5596  ;;  %v5604_v24 = vunpack.i.h.bf16 %v5602_v12  ;;  %v5603_v26 = vunpack.i.l.bf16 %v5602_v12 }
 0x10c   : > { %v5599_v48 = vunpack.i.h.bf16 %v5597_v20  ;;  %v5598_v6 = vunpack.i.l.bf16 %v5597_v20  ;;  %5891 = vrot.lane.b32.xlu1 %v7256_v58, %s6459_s16 }
 0x10d   : > { %5886 = vrot.lane.b32.xlu0 %v7193_v50, %s6459_s16  ;;  %v5593_v50 = vunpack.i.l.bf16 %v7290_v17  ;;  %v1603_v0 = vsel %vm1587_vm9, %v1570_v43, %v5604_v24 }
 0x10e   : > { %v7339_v16 = vpop.permute.xlu1 %5611  ;;  %v1600_v28 = vsel %vm1587_vm9, %v1567_v7, %v5598_v6  ;;  %v1601_v25 = vsel %vm1587_vm9, %v1568_v13, %v5599_v48  ;;  %v6375_v6 = vld [vmem:[%s6572_s25 + $0xd8] sm:$0xff] }
 0x10f   : > { %v5607_v18 = vpop.permute.xlu0 %5606  ;;  %v5614_v56 = vunpack.i.h.bf16 %v7339_v16  ;;  %v5613_v59 = vunpack.i.l.bf16 %v7339_v16 }
 0x110   : > { %v5609_v15 = vunpack.i.h.bf16 %v5607_v18  ;;  %v5608_v21 = vunpack.i.l.bf16 %v5607_v18  ;;  %5901 = vrot.lane.b32.xlu1 %v7265_v40, %s6460_s22 }
 0x111   : > { %5896 = vrot.lane.b32.xlu0 %v7231_v1, %s6460_s22  ;;  %v1569_v1 = vsel %vm1554_vm8, %v1536_v33, %v5593_v50  ;;  %v1407_v53 = vsel %vm1389_vm3, %v6376_v63, %v5614_v56  ;;  %v1406_v14 = vsel %vm1389_vm3, %v6377_v41, %v5613_v59  ;;  %v6260_v41 = vld [vmem:[%s9391_s3 + $0x10] sm:$0xff]   ;;  %s323_s22 = sand.u32 1, %s6446_s10  }
 0x112   : > { %v1633_v17 = vsel %vm1620_vm10, %v1600_v28, %v5608_v21  ;;  %v1634_v9 = vsel %vm1620_vm10, %v1601_v25, %v5609_v15  ;;  %v5622_v2 = vpop.permute.xlu1 %5621  ;;  %v1602_v46 = vsel %vm1587_vm9, %v1569_v1, %v5603_v26  ;;  %s4589_s28 = scalar_lea.sflag [#allocation4], %s323_s22 }
 0x113   : > { %v5617_v42 = vpop.permute.xlu0 %5616  ;;  %v1659_v23 = vpack.c.bf16 %v1634_v9, %v1633_v17 }
 0x114   : > { %v5619_v44 = vunpack.i.h.bf16 %v5617_v42  ;;  %v5618_v47 = vunpack.i.l.bf16 %v5617_v42  ;;  %5911 = vrot.lane.b32.xlu1 %v5910_v11, %s6461_s23  ;;  %v620_v11 = vsel %vm514_vm0, %v617_v10, %v619_v45  ;;  %v5624_v45 = vunpack.i.h.bf16 %v5622_v2 }
 0x115   : > { %5906 = vrot.lane.b32.xlu0 %v7254_v57, %s6461_s23  ;;  %5076 = vmatprep.mubr.msk.bf16.mxu0 %vm1696_vm11, %v1659_v23  ;;  %v5930_v52 = vpack.i.bf16 %v620_v11, %v618_v27 }
 0x116   : > { %v1636_v5 = vsel %vm1620_vm10, %v1603_v0, %v5619_v44  ;;  %v1635_v32 = vsel %vm1620_vm10, %v1602_v46, %v5618_v47  ;;  %v5632_v36 = vpop.permute.xlu1 %5631  ;;  %v1409_v48 = vsel %vm1389_vm3, %v6374_v8, %v5624_v45 }
 0x117   : > { %v5627_v57 = vpop.permute.xlu0 %5626  ;;  %v1660_v61 = vpack.c.bf16 %v1636_v5, %v1635_v32  ;;  %v5634_v12 = vunpack.i.h.bf16 %v5632_v36  ;;  %v5633_v20 = vunpack.i.l.bf16 %v5632_v36 }
 0x118   : > { %5921 = vrot.lane.b32.xlu1 %v5920_v31, %s6462_s24  ;;  %v5629_v60 = vunpack.i.h.bf16 %v5627_v57 }
 0x119   : > { %5916 = vrot.lane.b32.xlu0 %v7256_v58, %s6462_s24  ;;  %5077 = vmatmul.mubr.msk.bf16.gmra.mrb[12].mxu0 %vm1696_vm11, %v1660_v61  ;;  %v5623_v58 = vunpack.i.l.bf16 %v5622_v2  ;;  %v1442_v16 = vsel %vm1422_vm4, %v1409_v48, %v5634_v12  ;;  %s4755_s24 = sshll.u32 %s6540_s13, 4  ;;  %s6468_s13 = smov [#allocation3]  }
 0x11a   : > { %v5642_v49 = vpop.permute.xlu1 %5641  ;;  %v1440_v18 = vsel %vm1422_vm4, %v1407_v53, %v5629_v60  ;;  %s9346_s27 = scalar_lea.hbm %s9397_s9, %s4755_s24  ;;  %s6396_s21 = sshll.u32 %s6468_s13, 4  ;;  %s6397_s21 = int_to_ptr.vmem [resolvable:$false] %s6396_s21 }
 0x11b   : > { %v5637_v35 = vpop.permute.xlu0 %5636  ;;  %v5644_v62 = vunpack.i.h.bf16 %v5642_v49  ;;  %v5643_v30 = vunpack.i.l.bf16 %v5642_v49  ;;  %v1408_v54 = vsel %vm1389_vm3, %v6375_v6, %v5623_v58  ;;  %s6398_s23 = scalar_lea.vmem %s6397_s21, 32 }
 0x11c   : > { %5931 = vrot.lane.b32.xlu1 %v5930_v52, %s6463_s29  ;;  %v5639_v38 = vunpack.i.h.bf16 %v5637_v35  ;;  %v5638_v39 = vunpack.i.l.bf16 %v5637_v35  ;;  %v1441_v50 = vsel %vm1422_vm4, %v1408_v54, %v5633_v20 }
 0x11d   : > { %5926 = vrot.lane.b32.xlu0 %v7265_v40, %s6463_s29  ;;  %v5628_v40 = vunpack.i.l.bf16 %v5627_v57  ;;  %v1474_v21 = vsel %vm1455_vm5, %v1441_v50, %v5643_v30  ;;  %v1475_v24 = vsel %vm1455_vm5, %v1442_v16, %v5644_v62  ;;  %v6261_v16 = vld [vmem:[%s9391_s3 + $0x18] sm:$0xff]  }
 0x11e   : > { %v7388_v51 = vpop.permute.xlu1 %5651  ;;  %v1473_v17 = vsel %vm1455_vm5, %v1440_v18, %v5639_v38 }
 0x11f   : > { %v5647_v22 = vpop.permute.xlu0 %5646  ;;  %v1439_v7 = vsel %vm1422_vm4, %v1406_v14, %v5628_v40  ;;  %v5654_v4 = vunpack.i.h.bf16 %v7388_v51  ;;  %v5653_v2 = vunpack.i.l.bf16 %v7388_v51 }
 0x120   : > { %v5649_v13 = vunpack.i.h.bf16 %v5647_v22  ;;  %v5648_v15 = vunpack.i.l.bf16 %v5647_v22  ;;  %v1472_v29 = vsel %vm1455_vm5, %v1439_v7, %v5638_v39  ;;  %v6259_v39 = vld [vmem:[%s9391_s3 + $0x8] sm:$0xff]  }
 0x121   : > { %v1507_v22 = vsel %vm1488_vm6, %v1474_v21, %v5653_v2  ;;  %v6379_v2 = vld [vmem:[%s6572_s25 + $0x108] sm:$0xff] }
 0x122   : > { %v7390_v10 = vpop.permute.xlu1 %5661  ;;  %v1505_v31 = vsel %vm1488_vm6, %v1472_v29, %v5648_v15  ;;  %v1506_v1 = vsel %vm1488_vm6, %v1473_v17, %v5649_v13 }
 0x123   : > { %v5657_v3 = vpop.permute.xlu0 %5656  ;;  %v5664_v43 = vunpack.i.h.bf16 %v7390_v10  ;;  %v5663_v44 = vunpack.i.l.bf16 %v7390_v10  ;;  %v1508_v10 = vsel %vm1488_vm6, %v1475_v24, %v5654_v4 }
 0x124   : > { %v5659_v26 = vunpack.i.h.bf16 %v5657_v3  ;;  %v5658_v28 = vunpack.i.l.bf16 %v5657_v3 }
 0x125   : > { %v1540_v58 = vsel %vm1521_vm7, %v1507_v22, %v5663_v44  ;;  %v1541_v56 = vsel %vm1521_vm7, %v1508_v10, %v5664_v43  ;;  %v6381_v44 = vld [vmem:[%s6572_s25 + $0xf0] sm:$0xff] }
 0x126   : > { %v5672_v34 = vpop.permute.xlu1 %5671  ;;  %v1538_v47 = vsel %vm1521_vm7, %v1505_v31, %v5658_v28  ;;  %v1539_v46 = vsel %vm1521_vm7, %v1506_v1, %v5659_v26  ;;  %v6380_v1 = vld [vmem:[%s6572_s25 + $0xf8] sm:$0xff] }
 0x127   : > { %v5667_v19 = vpop.permute.xlu0 %5666  ;;  %v5674_v0 = vunpack.i.h.bf16 %v5672_v34  ;;  %v5673_v5 = vunpack.i.l.bf16 %v5672_v34 }
 0x128   : > { %v5669_v9 = vunpack.i.h.bf16 %v5667_v19  ;;  %v5668_v33 = vunpack.i.l.bf16 %v5667_v19 }
 0x129   : > { %v1573_v60 = vsel %vm1554_vm8, %v1540_v58, %v5673_v5  ;;  %v1574_v40 = vsel %vm1554_vm8, %v1541_v56, %v5674_v0 }
 0x12a   : > { %v5682_v25 = vpop.permute.xlu1 %5681  ;;  %v1571_v57 = vsel %vm1554_vm8, %v1538_v47, %v5668_v33  ;;  %v1572_v61 = vsel %vm1554_vm8, %v1539_v46, %v5669_v9  ;;  %v6378_v33 = vld [vmem:[%s6572_s25 + $0x110] sm:$0xff] }
 0x12b   : > { %v5677_v55 = vpop.permute.xlu0 %5676  ;;  %v5684_v52 = vunpack.i.h.bf16 %v5682_v25  ;;  %v5683_v49 = vunpack.i.l.bf16 %v5682_v25 }
 0x12c   : > { %v5679_v42 = vunpack.i.h.bf16 %v5677_v55  ;;  %v5678_v23 = vunpack.i.l.bf16 %v5677_v55 }
 0x12d   : > { %v1606_v34 = vsel %vm1587_vm9, %v1573_v60, %v5683_v49  ;;  %v1607_v19 = vsel %vm1587_vm9, %v1574_v40, %v5684_v52 }
 0x12e   : > { %v7418_v32 = vpop.permute.xlu1 %5691  ;;  %v1604_v35 = vsel %vm1587_vm9, %v1571_v57, %v5678_v23  ;;  %v1605_v51 = vsel %vm1587_vm9, %v1572_v61, %v5679_v42 }
 0x12f   : > { %v5687_v27 = vpop.permute.xlu0 %5686  ;;  %v5694_v15 = vunpack.i.h.bf16 %v7418_v32  ;;  %v5693_v21 = vunpack.i.l.bf16 %v7418_v32 }
 0x130   : > { %v5689_v11 = vunpack.i.h.bf16 %v5687_v27  ;;  %v5688_v36 = vunpack.i.l.bf16 %v5687_v27 }
 0x131   : > { %v1411_v43 = vsel %vm1389_vm3, %v6380_v1, %v5694_v15  ;;  %v1410_v47 = vsel %vm1389_vm3, %v6381_v44, %v5693_v21 }
 0x132   : > { %v1637_v3 = vsel %vm1620_vm10, %v1604_v35, %v5688_v36  ;;  %v1638_v45 = vsel %vm1620_vm10, %v1605_v51, %v5689_v11  ;;  %v5702_v59 = vpop.permute.xlu1 %5701 }
 0x133   : > { %v5697_v12 = vpop.permute.xlu0 %5696  ;;  %v1661_v20 = vpack.c.bf16 %v1638_v45, %v1637_v3  ;;  %v5704_v7 = vunpack.i.h.bf16 %v5702_v59  ;;  %v5703_v13 = vunpack.i.l.bf16 %v5702_v59 }
 0x134   : > { %v5699_v62 = vunpack.i.h.bf16 %v5697_v12  ;;  %v5698_v30 = vunpack.i.l.bf16 %v5697_v12 }
 0x135   : > { %5080 = vmatprep.mubr.msk.bf16.mxu1 %vm1696_vm11, %v1661_v20  ;;  %v1413_v4 = vsel %vm1389_vm3, %v6378_v33, %v5704_v7  ;;  %v1412_v42 = vsel %vm1389_vm3, %v6379_v2, %v5703_v13 }
 0x136   : > { %v1640_v8 = vsel %vm1620_vm10, %v1607_v19, %v5699_v62  ;;  %v1639_v48 = vsel %vm1620_vm10, %v1606_v34, %v5698_v30  ;;  %v5712_v6 = vpop.permute.xlu1 %5711 }
 0x137   : > { %v5707_v54 = vpop.permute.xlu0 %5706  ;;  %v1662_v38 = vpack.c.bf16 %v1640_v8, %v1639_v48  ;;  %v5714_v24 = vunpack.i.h.bf16 %v5712_v6  ;;  %v5713_v26 = vunpack.i.l.bf16 %v5712_v6 }
 0x138   : > { %v5709_v28 = vunpack.i.h.bf16 %v5707_v54  ;;  %v5708_v25 = vunpack.i.l.bf16 %v5707_v54 }
 0x139   : > { %5081 = vmatmul.mubr.msk.bf16.vlgmr.msra.gmra.mrb[0].mxu1 %vm1696_vm11, %v1662_v38  ;;  %v1445_v46 = vsel %vm1422_vm4, %v1412_v42, %v5713_v26  ;;  %v1446_v0 = vsel %vm1422_vm4, %v1413_v4, %v5714_v24 }
 0x13a   : > { %5097 = vmatpush3.bf16.msra.mxu1 %v7333_v37  ;;  %v5722_v63 = vpop.permute.xlu1 %5721  ;;  %v1444_v5 = vsel %vm1422_vm4, %v1411_v43, %v5709_v28  ;;  %v1443_v32 = vsel %vm1422_vm4, %v1410_v47, %v5708_v25 }
 0x13b   : > { %v5717_v53 = vpop.permute.xlu0 %5716  ;;  %5098 = vmatprep.subr.bf16.mxu1 %v6259_v39  ;;  %v5724_v55 = vunpack.i.h.bf16 %v5722_v63  ;;  %v5723_v29 = vunpack.i.l.bf16 %v5722_v63 }
 0x13c   : > { %v5719_v23 = vunpack.i.h.bf16 %v5717_v53  ;;  %v5718_v31 = vunpack.i.l.bf16 %v5717_v53 }
 0x13d   : > { %v1478_v36 = vsel %vm1455_vm5, %v1445_v46, %v5723_v29  ;;  %v1479_v57 = vsel %vm1455_vm5, %v1446_v0, %v5724_v55 }
 0x13e   : > { %5099 = vmatpush3.bf16.msra.mxu1 %v6259_v39  ;;  %v7445_v14 = vpop.permute.xlu1 %5731  ;;  %v1476_v51 = vsel %vm1455_vm5, %v1443_v32, %v5718_v31  ;;  %v1477_v22 = vsel %vm1455_vm5, %v1444_v5, %v5719_v23 }
 0x13f   : > { %v5727_v50 = vpop.permute.xlu0 %5726  ;;  %5100 = vmatprep.subr.bf16.mxu1 %v6260_v41  ;;  %v5734_v45 = vunpack.i.h.bf16 %v7445_v14  ;;  %v5733_v58 = vunpack.i.l.bf16 %v7445_v14 }
 0x140   : > { %v5729_v27 = vunpack.i.h.bf16 %v5727_v50  ;;  %v5728_v11 = vunpack.i.l.bf16 %v5727_v50 }
 0x141   : > { %v1511_v50 = vsel %vm1488_vm6, %v1478_v36, %v5733_v58 }
 0x142   : > { %5101 = vmatpush3.bf16.msra.mxu1 %v6260_v41  ;;  %v7450_v18 = vpop.permute.xlu1 %5741  ;;  %v1509_v12 = vsel %vm1488_vm6, %v1476_v51, %v5728_v11  ;;  %v1510_v20 = vsel %vm1488_vm6, %v1477_v22, %v5729_v27  ;;  %v6382_v51 = vld [vmem:[%s6572_s25 + $0x140] sm:$0xff] }
 0x143   : > { %v5737_v37 = vpop.permute.xlu0 %5736  ;;  %5102 = vmatprep.subr.bf16.mxu1 %v6261_v16  ;;  %v5744_v60 = vunpack.i.h.bf16 %v7450_v18  ;;  %v5743_v40 = vunpack.i.l.bf16 %v7450_v18 }
 0x144   : > { %v5739_v61 = vunpack.i.h.bf16 %v5737_v37  ;;  %v5738_v52 = vunpack.i.l.bf16 %v5737_v37 }
 0x145   : > { %v1544_v7 = vsel %vm1521_vm7, %v1511_v50, %v5743_v40 }
 0x146   : > { %5103 = vmatpush3.bf16.msra.mxu1 %v6261_v16  ;;  %v5752_v17 = vpop.permute.xlu1 %5751  ;;  %v1542_v62 = vsel %vm1521_vm7, %v1509_v12, %v5738_v52  ;;  %v1543_v30 = vsel %vm1521_vm7, %v1510_v20, %v5739_v61  ;;  %v1512_v16 = vsel %vm1488_vm6, %v1479_v57, %v5734_v45  ;;  %v6385_v12 = vld [vmem:[%s6572_s25 + $0x120] sm:$0xff] }
 0x147   : > { %v5747_v9 = vpop.permute.xlu0 %5746  ;;  %v5754_v34 = vunpack.i.h.bf16 %v5752_v17  ;;  %v5753_v19 = vunpack.i.l.bf16 %v5752_v17  ;;  %v1545_v13 = vsel %vm1521_vm7, %v1512_v16, %v5744_v60 }
 0x148   : > { %v5749_v10 = vunpack.i.h.bf16 %v5747_v9  ;;  %v5748_v3 = vunpack.i.l.bf16 %v5747_v9 }
 0x149   : > { %v1577_v26 = vsel %vm1554_vm8, %v1544_v7, %v5753_v19  ;;  %v1578_v28 = vsel %vm1554_vm8, %v1545_v13, %v5754_v34 }
 0x14a   : > { %v5762_v49 = vpop.permute.xlu1 %5761  ;;  %v1575_v6 = vsel %vm1554_vm8, %v1542_v62, %v5748_v3  ;;  %v1576_v54 = vsel %vm1554_vm8, %v1543_v30, %v5749_v10  ;;  %v6383_v10 = vld [vmem:[%s6572_s25 + $0x138] sm:$0xff] }
 0x14b   : > { %v5757_v35 = vpop.permute.xlu0 %5756  ;;  %v5764_v63 = vunpack.i.h.bf16 %v5762_v49  ;;  %v5763_v53 = vunpack.i.l.bf16 %v5762_v49 }
 0x14c   : > { %v5759_v56 = vunpack.i.h.bf16 %v5757_v35  ;;  %v5758_v59 = vunpack.i.l.bf16 %v5757_v35 }
 0x14d   : > { %v1610_v29 = vsel %vm1587_vm9, %v1577_v26, %v5763_v53  ;;  %v1611_v17 = vsel %vm1587_vm9, %v1578_v28, %v5764_v63 }
 0x14e   : > { %v5772_v8 = vpop.permute.xlu1 %5771  ;;  %v1608_v41 = vsel %vm1587_vm9, %v1575_v6, %v5758_v59  ;;  %v1609_v14 = vsel %vm1587_vm9, %v1576_v54, %v5759_v56  ;;  %v6384_v56 = vld [vmem:[%s6572_s25 + $0x128] sm:$0xff] }
 0x14f   : > { %v5767_v48 = vpop.permute.xlu0 %5766  ;;  %v5774_v5 = vunpack.i.h.bf16 %v5772_v8  ;;  %v5773_v32 = vunpack.i.l.bf16 %v5772_v8 }
 0x150   : > { %v5769_v38 = vunpack.i.h.bf16 %v5767_v48  ;;  %v5768_v39 = vunpack.i.l.bf16 %v5767_v48 }
 0x151   : > { %v1415_v59 = vsel %vm1389_vm3, %v6384_v56, %v5774_v5  ;;  %v1414_v20 = vsel %vm1389_vm3, %v6385_v12, %v5773_v32 }
 0x152   : > { %v1641_v18 = vsel %vm1620_vm10, %v1608_v41, %v5768_v39  ;;  %v1642_v37 = vsel %vm1620_vm10, %v1609_v14, %v5769_v38  ;;  %v5782_v21 = vpop.permute.xlu1 %5781 }
 0x153   : > { %v1663_v15 = vpack.c.bf16 %v1642_v37, %v1641_v18  ;;  %v5777_v24 = vpop.permute.xlu0 %5776  ;;  %v5784_v46 = vunpack.i.h.bf16 %v5782_v21  ;;  %v5783_v0 = vunpack.i.l.bf16 %v5782_v21 }
 0x154   : > { %v5779_v25 = vunpack.i.h.bf16 %v5777_v24  ;;  %v5778_v55 = vunpack.i.l.bf16 %v5777_v24 }
 0x155   : > { %5084 = vmatprep.mubr.msk.bf16.mxu1 %vm1696_vm11, %v1663_v15  ;;  %v1417_v22 = vsel %vm1389_vm3, %v6382_v51, %v5784_v46  ;;  %v1416_v3 = vsel %vm1389_vm3, %v6383_v10, %v5783_v0 }
 0x156   : > { %v1644_v9 = vsel %vm1620_vm10, %v1611_v17, %v5779_v25  ;;  %v1643_v33 = vsel %vm1620_vm10, %v1610_v29, %v5778_v55  ;;  %v5792_v2 = vpop.permute.xlu1 %5791 }
 0x157   : > { %v1664_v4 = vpack.c.bf16 %v1644_v9, %v1643_v33  ;;  %v5787_v42 = vpop.permute.xlu0 %5786  ;;  %v5794_v27 = vunpack.i.h.bf16 %v5792_v2  ;;  %v5793_v11 = vunpack.i.l.bf16 %v5792_v2 }
 0x158   : > { %v5789_v36 = vunpack.i.h.bf16 %v5787_v42  ;;  %v5788_v57 = vunpack.i.l.bf16 %v5787_v42 }
 0x159   : > { %5085 = vmatmul.mubr.msk.bf16.gmra.mrb[4].mxu1 %vm1696_vm11, %v1664_v4  ;;  %v1449_v60 = vsel %vm1422_vm4, %v1416_v3, %v5793_v11  ;;  %v1450_v40 = vsel %vm1422_vm4, %v1417_v22, %v5794_v27 }
 0x15a   : > { %v5802_v23 = vpop.permute.xlu1 %5801  ;;  %v1448_v62 = vsel %vm1422_vm4, %v1415_v59, %v5789_v36  ;;  %v1447_v30 = vsel %vm1422_vm4, %v1414_v20, %v5788_v57 }
 0x15b   : > { %v5797_v31 = vpop.permute.xlu0 %5796  ;;  %v5804_v61 = vunpack.i.h.bf16 %v5802_v23  ;;  %v5803_v52 = vunpack.i.l.bf16 %v5802_v23 }
 0x15c   : > { %v5799_v45 = vunpack.i.h.bf16 %v5797_v31  ;;  %v5798_v58 = vunpack.i.l.bf16 %v5797_v31 }
 0x15d   : > { %v1482_v8 = vsel %vm1455_vm5, %v1449_v60, %v5803_v52  ;;  %v1483_v48 = vsel %vm1455_vm5, %v1450_v40, %v5804_v61 }
 0x15e   : > { %v7496_v1 = vpop.permute.xlu1 %5811  ;;  %v1480_v63 = vsel %vm1455_vm5, %v1447_v30, %v5798_v58  ;;  %v1481_v53 = vsel %vm1455_vm5, %v1448_v62, %v5799_v45 }
 0x15f   : > { %v5807_v43 = vpop.permute.xlu0 %5806  ;;  %v5814_v50 = vunpack.i.h.bf16 %v7496_v1  ;;  %v5813_v16 = vunpack.i.l.bf16 %v7496_v1 }
 0x160   : > { %v5809_v34 = vunpack.i.h.bf16 %v5807_v43  ;;  %v5808_v19 = vunpack.i.l.bf16 %v5807_v43 }
 0x161   : > { %v1515_v1 = vsel %vm1488_vm6, %v1482_v8, %v5813_v16  ;;  %v1516_v43 = vsel %vm1488_vm6, %v1483_v48, %v5814_v50  ;;  %v6389_v16 = vld [vmem:[%s6572_s25 + $0x168] sm:$0xff] }
 0x162   : > { %v7498_v44 = vpop.permute.xlu1 %5821  ;;  %v1513_v7 = vsel %vm1488_vm6, %v1480_v63, %v5808_v19  ;;  %v1514_v13 = vsel %vm1488_vm6, %v1481_v53, %v5809_v34  ;;  %v6387_v53 = vld [vmem:[%s6572_s25 + $0x150] sm:$0xff] }
 0x163   : > { %v5817_v47 = vpop.permute.xlu0 %5816  ;;  %v5824_v15 = vunpack.i.h.bf16 %v7498_v44  ;;  %v5823_v21 = vunpack.i.l.bf16 %v7498_v44 }
 0x164   : > { %v5819_v6 = vunpack.i.h.bf16 %v5817_v47  ;;  %v5818_v54 = vunpack.i.l.bf16 %v5817_v47 }
 0x165   : > { %v1548_v46 = vsel %vm1521_vm7, %v1515_v1, %v5823_v21  ;;  %v1549_v0 = vsel %vm1521_vm7, %v1516_v43, %v5824_v15 }
 0x166   : > { %v5832_v49 = vpop.permute.xlu1 %5831  ;;  %v1546_v24 = vsel %vm1521_vm7, %v1513_v7, %v5818_v54  ;;  %v1547_v26 = vsel %vm1521_vm7, %v1514_v13, %v5819_v6  ;;  %v6386_v54 = vld [vmem:[%s6572_s25 + $0x158] sm:$0xff] }
 0x167   : > { %v5827_v35 = vpop.permute.xlu0 %5826  ;;  %v5834_v28 = vunpack.i.h.bf16 %v5832_v49  ;;  %v5833_v25 = vunpack.i.l.bf16 %v5832_v49 }
 0x168   : > { %v5829_v41 = vunpack.i.h.bf16 %v5827_v35  ;;  %v5828_v14 = vunpack.i.l.bf16 %v5827_v35 }
 0x169   : > { %v1581_v11 = vsel %vm1554_vm8, %v1548_v46, %v5833_v25  ;;  %v1582_v36 = vsel %vm1554_vm8, %v1549_v0, %v5834_v28 }
 0x16a   : > { %v5842_v38 = vpop.permute.xlu1 %5841  ;;  %v1579_v17 = vsel %vm1554_vm8, %v1546_v24, %v5828_v14  ;;  %v1580_v9 = vsel %vm1554_vm8, %v1547_v26, %v5829_v41  ;;  %v6388_v14 = vld [vmem:[%s6572_s25 + $0x170] sm:$0xff]  ;;  %s324_s25 = scalar_lea.vmem [#allocation3], %s323_s22 }
 0x16b   : > { %v5837_v39 = vpop.permute.xlu0 %5836  ;;  %v5844_v2 = vunpack.i.h.bf16 %v5842_v38  ;;  %v5843_v42 = vunpack.i.l.bf16 %v5842_v38  ;;  %s4601_s29 = sshll.u32 %s324_s25, 4  ;;  %s9348_s29 = int_to_ptr.vmem [resolvable:$true] %s4601_s29 }
 0x16c   : > { %v5839_v18 = vunpack.i.h.bf16 %v5837_v39  ;;  %v5838_v37 = vunpack.i.l.bf16 %v5837_v39  ;;  %s6392_s16 = scalar_lea.vmem %s9348_s29, 16  ;;  %p6399_p0 = scmp.lt.s32.totalorder %s9348_s29, %s6397_s21 }
 0x16d   : > { %v1614_v52 = vsel %vm1587_vm9, %v1581_v11, %v5843_v42  ;;  %v1615_v49 = vsel %vm1587_vm9, %v1582_v36, %v5844_v2  ;;  %p6393_p11 = scmp.ne.s32.totalorder %s9348_s29, %s6392_s16  ;;  %p6400_p1 = scmp.lt.s32.totalorder %s6398_s23, %s6392_s16 }
 0x16e   : > { %v5852_v55 = vpop.permute.xlu1 %5851  ;;  %v1612_v23 = vsel %vm1587_vm9, %v1579_v17, %v5838_v37  ;;  %v1613_v31 = vsel %vm1587_vm9, %v1580_v9, %v5839_v18 }
 0x16f   : > { %v5847_v29 = vpop.permute.xlu0 %5846  ;;  %v5854_v12 = vunpack.i.h.bf16 %v5852_v55  ;;  %v5853_v20 = vunpack.i.l.bf16 %v5852_v55  ;;  %p6394_p12 = pnand %p6393_p11, %p6557_p5  ;;  %p6401_p2 = por %p6400_p1, %p6399_p0 }
 0x170   : > { %v5849_v33 = vunpack.i.h.bf16 %v5847_v29  ;;  %v5848_v4 = vunpack.i.l.bf16 %v5847_v29 }
 0x171   : > { %v1419_v38 = vsel %vm1389_vm3, %v6386_v54, %v5854_v12  ;;  %v1418_v41 = vsel %vm1389_vm3, %v6387_v53, %v5853_v20  ;;  %p6395_p13 = pneg %p6394_p12 }
 0x172   : > { %v1645_v44 = vsel %vm1620_vm10, %v1612_v23, %v5848_v4  ;;  %v1646_v47 = vsel %vm1620_vm10, %v1613_v31, %v5849_v33  ;;  %v5862_v32 = vpop.permute.xlu1 %5861 }
 0x173   : > { %v1665_v5 = vpack.c.bf16 %v1646_v47, %v1645_v44  ;;  %v5857_v27 = vpop.permute.xlu0 %5856  ;;  %v5864_v60 = vunpack.i.h.bf16 %v5862_v32  ;;  %v5863_v40 = vunpack.i.l.bf16 %v5862_v32  ;;  %p6402_p3 = pnand %p6401_p2, %p6395_p13 }
 0x174   : > { %v5859_v57 = vunpack.i.h.bf16 %v5857_v27  ;;  %v5858_v61 = vunpack.i.l.bf16 %v5857_v27 }
 0x175   : > { %5088 = vmatprep.mubr.msk.bf16.mxu1 %vm1696_vm11, %v1665_v5  ;;  %v1421_v50 = vsel %vm1389_vm3, %v6388_v14, %v5864_v60  ;;  %v1420_v18 = vsel %vm1389_vm3, %v6389_v16, %v5863_v40 }
 0x176   : > { %v1648_v35 = vsel %vm1620_vm10, %v1615_v49, %v5859_v57  ;;  %v1647_v51 = vsel %vm1620_vm10, %v1614_v52, %v5858_v61  ;;  %v5872_v10 = vpop.permute.xlu1 %5871 }
 0x177   : > { %v1666_v22 = vpack.c.bf16 %v1648_v35, %v1647_v51  ;;  %v5867_v3 = vpop.permute.xlu0 %5866  ;;  %v5874_v62 = vunpack.i.h.bf16 %v5872_v10  ;;  %v5873_v30 = vunpack.i.l.bf16 %v5872_v10  ;;  %v7566_v35 = vld [vmem:[%s9390_s2] ss:$0 sm:$0xff] }
 0x178   : > { %v5869_v34 = vunpack.i.h.bf16 %v5867_v3  ;;  %v5868_v19 = vunpack.i.l.bf16 %v5867_v3 }
 0x179   : > { %5089 = vmatmul.mubr.msk.bf16.gmra.mrb[8].mxu1 %vm1696_vm11, %v1666_v22  ;;  %v1453_v7 = vsel %vm1422_vm4, %v1420_v18, %v5873_v30  ;;  %v1454_v13 = vsel %vm1422_vm4, %v1421_v50, %v5874_v62 }
 0x17a   : > { %v5882_v45 = vpop.permute.xlu1 %5881  ;;  %v1452_v15 = vsel %vm1422_vm4, %v1419_v38, %v5869_v34  ;;  %v1451_v21 = vsel %vm1422_vm4, %v1418_v41, %v5868_v19 }
 0x17b   : > { %v5877_v58 = vpop.permute.xlu0 %5876  ;;  %v5883_v6 = vunpack.i.l.bf16 %v5882_v45  ;;  %v5884_v39 = vunpack.i.h.bf16 %v5882_v45 }
 0x17c   : > { %v5878_v63 = vunpack.i.l.bf16 %v5877_v58  ;;  %v5879_v37 = vunpack.i.h.bf16 %v5877_v58 }
 0x17d   : > { %v1486_v28 = vsel %vm1455_vm5, %v1453_v7, %v5883_v6  ;;  %v1487_v17 = vsel %vm1455_vm5, %v1454_v13, %v5884_v39 }
 0x17e   : > { %v5892_v56 = vpop.permute.xlu1 %5891  ;;  %v1484_v9 = vsel %vm1455_vm5, %v1451_v21, %v5878_v63  ;;  %v1485_v2 = vsel %vm1455_vm5, %v1452_v15, %v5879_v37 }
 0x17f   : > { %v5887_v59 = vpop.permute.xlu0 %5886  ;;  %v5894_v25 = vunpack.i.h.bf16 %v5892_v56  ;;  %v5893_v55 = vunpack.i.l.bf16 %v5892_v56 }
 0x180   : > { %v5888_v29 = vunpack.i.l.bf16 %v5887_v59  ;;  %v5889_v33 = vunpack.i.h.bf16 %v5887_v59 }
 0x181   : > { %v1519_v5 = vsel %vm1488_vm6, %v1486_v28, %v5893_v55  ;;  %v1520_v32 = vsel %vm1488_vm6, %v1487_v17, %v5894_v25 }
 0x182   : > { %v5902_v8 = vpop.permute.xlu1 %5901  ;;  %v1517_v27 = vsel %vm1488_vm6, %v1484_v9, %v5888_v29  ;;  %v1518_v36 = vsel %vm1488_vm6, %v1485_v2, %v5889_v33 }
 0x183   : > { %v5897_v48 = vpop.permute.xlu0 %5896  ;;  %v5903_v4 = vunpack.i.l.bf16 %v5902_v8  ;;  %v5904_v42 = vunpack.i.h.bf16 %v5902_v8 }
 0x184   : > { %v5899_v23 = vunpack.i.h.bf16 %v5897_v48  ;;  %v5898_v31 = vunpack.i.l.bf16 %v5897_v48 }
 0x185   : > { %v1552_v57 = vsel %vm1521_vm7, %v1519_v5, %v5903_v4  ;;  %v1553_v51 = vsel %vm1521_vm7, %v1520_v32, %v5904_v42 }
 0x186   : > { %v5912_v24 = vpop.permute.xlu1 %5911  ;;  %v1550_v22 = vsel %vm1521_vm7, %v1517_v27, %v5898_v31  ;;  %v1551_v10 = vsel %vm1521_vm7, %v1518_v36, %v5899_v23 }
 0x187   : > { %v5907_v26 = vpop.permute.xlu0 %5906  ;;  %v5914_v1 = vunpack.i.h.bf16 %v5912_v24  ;;  %v5913_v43 = vunpack.i.l.bf16 %v5912_v24 }
 0x188   : > { %v5909_v44 = vunpack.i.h.bf16 %v5907_v26  ;;  %v5908_v47 = vunpack.i.l.bf16 %v5907_v26 }
 0x189   : > { %v1585_v58 = vsel %vm1554_vm8, %v1552_v57, %v5913_v43  ;;  %v1586_v56 = vsel %vm1554_vm8, %v1553_v51, %v5914_v1 }
 0x18a   : > { %v5922_v46 = vpop.permute.xlu1 %5921  ;;  %v1583_v59 = vsel %vm1554_vm8, %v1550_v22, %v5908_v47  ;;  %v1584_v12 = vsel %vm1554_vm8, %v1551_v10, %v5909_v44 }
 0x18b   : > { %v5917_v0 = vpop.permute.xlu0 %5916  ;;  %v5923_v11 = vunpack.i.l.bf16 %v5922_v46  ;;  %v5924_v61 = vunpack.i.h.bf16 %v5922_v46 }
 0x18c   : > { %v5918_v52 = vunpack.i.l.bf16 %v5917_v0  ;;  %v5066_v49 = vpop.f32.mrb[0].mxu0  ;;  %v5919_v3 = vunpack.i.h.bf16 %v5917_v0 }
 0x18d   : > { %v1783_v45 = vpop.f32.mrb[1].mxu0  ;;  %v1618_v40 = vsel %vm1587_vm9, %v1585_v58, %v5923_v11  ;;  %v1619_v48 = vsel %vm1587_vm9, %v1586_v56, %v5924_v61  ;;  %v7600_v21 = vadd.f32 %v5066_v49, %v7566_v35 }
 0x18e   : > { %v5067_v20 = vpop.f32.mrb[2].mxu0  ;;  %v5932_v60 = vpop.permute.xlu1 %5931  ;;  %v7577_v62 = vadd.f32 %v7566_v35, %v1783_v45  ;;  %v1616_v6 = vsel %vm1587_vm9, %v1583_v59, %v5918_v52  ;;  %v1617_v39 = vsel %vm1587_vm9, %v1584_v12, %v5919_v3 }
 0x18f   : > { %v5934_v30 = vunpack.i.h.bf16 %v5932_v60  ;;  %v5933_v34 = vunpack.i.l.bf16 %v5932_v60  ;;  %v5927_v19 = vpop.permute.xlu0 %5926  ;;  %v1786_v8 = vpop.f32.mrb[3].mxu0  ;;  %v7592_v13 = vadd.f32 %v5067_v20, %v7566_v35  ;;  %v9427_v26 = vmax.f32 %v7600_v21, 0.0 }
 0x190   : > { %v5929_v54 = vunpack.i.h.bf16 %v5927_v19  ;;  %v5928_v38 = vunpack.i.l.bf16 %v5927_v19  ;;  %v7585_v41 = vadd.f32 %v7566_v35, %v1786_v8  ;;  %v9429_v18 = vmax.f32 %v7577_v62, 0.0 }
 0x191   : > { %v1651_v63 = vsel %vm1620_vm10, %v1618_v40, %v5933_v34  ;;  %v1652_v53 = vsel %vm1620_vm10, %v1619_v48, %v5934_v30  ;;  %v9426_v24 = vmax.f32 %v7592_v13, 0.0  ;;  %v9398_v48 = vmov 0.0  }
 0x192   : > { %v1668_v14 = vpack.c.bf16 %v1652_v53, %v1651_v63  ;;  %v1649_v50 = vsel %vm1620_vm10, %v1616_v6, %v5928_v38  ;;  %v1650_v16 = vsel %vm1620_vm10, %v1617_v39, %v5929_v54  ;;  %v9428_v7 = vmax.f32 %v7585_v41, 0.0  ;;  %2513 = vst.msk [vmem:[#allocation2 + $0x30] sm:$0xff] %vm1997_vm12, %v9398_v48  ;;  %2514 = vst.msk [vmem:[#allocation2 + $0x38] sm:$0xff] %vm1997_vm12, %v9398_v48 }
 0x193   : > { %v1667_v37 = vpack.c.bf16 %v1650_v16, %v1649_v50  ;;  %v1943_v28 = vpack.c.bf16 %v9426_v24, %v9427_v26  ;;  %2506 = vst.msk [vmem:[#allocation2] sm:$0xff] %vm1997_vm12, %v9398_v48  ;;  %2507 = vst.msk [vmem:[#allocation2 + $0x8] sm:$0xff] %vm1997_vm12, %v9398_v48 }
 0x194   : > { %v1942_v15 = vpack.c.bf16 %v9428_v7, %v9429_v18  ;;  %2510 = vst.msk [vmem:[#allocation2 + $0x18] sm:$0xff] %vm1997_vm12, %v9398_v48  ;;  %2511 = vst.msk [vmem:[#allocation2 + $0x20] sm:$0xff] %vm1997_vm12, %v9398_v48 }
 0x195   : > { %5092 = vmatprep.mubr.msk.bf16.mxu1 %vm1696_vm11, %v1667_v37  ;;  %2516 = vst.msk [vmem:[#allocation2 + $0x48] sm:$0xff] %vm1997_vm12, %v9398_v48  ;;  %2517 = vst.msk [vmem:[#allocation2 + $0x50] sm:$0xff] %vm1997_vm12, %v9398_v48 }
 0x196   : > { %5093 = vmatmul.mubr.msk.bf16.gmra.mrb[12].mxu1 %vm1696_vm11, %v1668_v14  ;;  %2519 = vst.msk [vmem:[#allocation2 + $0x60] sm:$0xff] %vm1997_vm12, %v9398_v48  ;;  %2520 = vst.msk [vmem:[#allocation2 + $0x68] sm:$0xff] %vm1997_vm12, %v9398_v48 }
 0x197   : > { %5104 = vmatprep.mubr.msk.bf16.mxu1 %vm1997_vm12, %v1942_v15  ;;  %2522 = vst.msk [vmem:[#allocation2 + $0x78] sm:$0xff] %vm1997_vm12, %v9398_v48  ;;  %2523 = vst.msk [vmem:[#allocation2 + $0x80] sm:$0xff] %vm1997_vm12, %v9398_v48 }
 0x198   : > { %2525 = vst.msk [vmem:[#allocation2 + $0x90] sm:$0xff] %vm1997_vm12, %v9398_v48  ;;  %2526 = vst.msk [vmem:[#allocation2 + $0x98] sm:$0xff] %vm1997_vm12, %v9398_v48 }
 0x199   : > { %2528 = vst.msk [vmem:[#allocation2 + $0xa8] sm:$0xff] %vm1997_vm12, %v9398_v48  ;;  %2529 = vst.msk [vmem:[#allocation2 + $0xb0] sm:$0xff] %vm1997_vm12, %v9398_v48 }
 0x19a   : > { %2531 = vst.msk [vmem:[#allocation2 + $0xc0] sm:$0xff] %vm1997_vm12, %v9398_v48  ;;  %2532 = vst.msk [vmem:[#allocation2 + $0xc8] sm:$0xff] %vm1997_vm12, %v9398_v48 }
 0x19b   : > { %2534 = vst.msk [vmem:[#allocation2 + $0xd8] sm:$0xff] %vm1997_vm12, %v9398_v48  ;;  %2535 = vst.msk [vmem:[#allocation2 + $0xe0] sm:$0xff] %vm1997_vm12, %v9398_v48 }
 0x19c   : > { %2537 = vst.msk [vmem:[#allocation2 + $0xf0] sm:$0xff] %vm1997_vm12, %v9398_v48  ;;  %2538 = vst.msk [vmem:[#allocation2 + $0xf8] sm:$0xff] %vm1997_vm12, %v9398_v48 }
 0x19d   : > { %2540 = vst.msk [vmem:[#allocation2 + $0x108] sm:$0xff] %vm1997_vm12, %v9398_v48  ;;  %2541 = vst.msk [vmem:[#allocation2 + $0x110] sm:$0xff] %vm1997_vm12, %v9398_v48 }
 0x19e   : > { %5105 = vmatmul.mubr.msk.bf16.vlgmr.msra.gmra.mrb[16].mxu1 %vm1997_vm12, %v1943_v28  ;;  %2543 = vst.msk [vmem:[#allocation2 + $0x120] sm:$0xff] %vm1997_vm12, %v9398_v48  ;;  %2544 = vst.msk [vmem:[#allocation2 + $0x128] sm:$0xff] %vm1997_vm12, %v9398_v48 }
 0x19f   : > { %2546 = vst.msk [vmem:[#allocation2 + $0x138] sm:$0xff] %vm1997_vm12, %v9398_v48  ;;  %2547 = vst.msk [vmem:[#allocation2 + $0x140] sm:$0xff] %vm1997_vm12, %v9398_v48 }
 0x1a0   : > { %2549 = vst.msk [vmem:[#allocation2 + $0x150] sm:$0xff] %vm1997_vm12, %v9398_v48  ;;  %2550 = vst.msk [vmem:[#allocation2 + $0x158] sm:$0xff] %vm1997_vm12, %v9398_v48 }
 0x1a1   : > { %2552 = vst.msk [vmem:[#allocation2 + $0x168] sm:$0xff] %vm1997_vm12, %v9398_v48  ;;  %2553 = vst.msk [vmem:[#allocation2 + $0x170] sm:$0xff] %vm1997_vm12, %v9398_v48 }
 0x1a2   : > { %2555 = vst.msk [vmem:[#allocation2 + $0x180] sm:$0xff] %vm1997_vm12, %v9398_v48  ;;  %2556 = vst.msk [vmem:[#allocation2 + $0x188] sm:$0xff] %vm1997_vm12, %v9398_v48 }
 0x1a3   : > { %2558 = vst.msk [vmem:[#allocation2 + $0x198] sm:$0xff] %vm1997_vm12, %v9398_v48  ;;  %2559 = vst.msk [vmem:[#allocation2 + $0x1a0] sm:$0xff] %vm1997_vm12, %v9398_v48 }
 0x1a4   : > { %2515 = vst.msk [vmem:[#allocation2 + $0x40] sm:$0x3] %vm2508_vm13, %v9398_v48  ;;  %2509 = vst.msk [vmem:[#allocation2 + $0x10] sm:$0x3] %vm2508_vm13, %v9398_v48 }
 0x1a5   : > { %2512 = vst.msk [vmem:[#allocation2 + $0x28] sm:$0x3] %vm2508_vm13, %v9398_v48  ;;  %2518 = vst.msk [vmem:[#allocation2 + $0x58] sm:$0x3] %vm2508_vm13, %v9398_v48 }
 0x1a6   : > { %2521 = vst.msk [vmem:[#allocation2 + $0x70] sm:$0x3] %vm2508_vm13, %v9398_v48  ;;  %2524 = vst.msk [vmem:[#allocation2 + $0x88] sm:$0x3] %vm2508_vm13, %v9398_v48 }
 0x1a7   : > { %2527 = vst.msk [vmem:[#allocation2 + $0xa0] sm:$0x3] %vm2508_vm13, %v9398_v48  ;;  %2530 = vst.msk [vmem:[#allocation2 + $0xb8] sm:$0x3] %vm2508_vm13, %v9398_v48 }
 0x1a8   : > { %2533 = vst.msk [vmem:[#allocation2 + $0xd0] sm:$0x3] %vm2508_vm13, %v9398_v48  ;;  %2536 = vst.msk [vmem:[#allocation2 + $0xe8] sm:$0x3] %vm2508_vm13, %v9398_v48 }
 0x1a9   : > { %2539 = vst.msk [vmem:[#allocation2 + $0x100] sm:$0x3] %vm2508_vm13, %v9398_v48  ;;  %2542 = vst.msk [vmem:[#allocation2 + $0x118] sm:$0x3] %vm2508_vm13, %v9398_v48 }
 0x1aa   : > { %2545 = vst.msk [vmem:[#allocation2 + $0x130] sm:$0x3] %vm2508_vm13, %v9398_v48  ;;  %2548 = vst.msk [vmem:[#allocation2 + $0x148] sm:$0x3] %vm2508_vm13, %v9398_v48 }
 0x1ab   : > { %2551 = vst.msk [vmem:[#allocation2 + $0x160] sm:$0x3] %vm2508_vm13, %v9398_v48  ;;  %2554 = vst.msk [vmem:[#allocation2 + $0x178] sm:$0x3] %vm2508_vm13, %v9398_v48 }
 0x1ac   : > { %v5070_v25 = vpop.f32.mrb[4].mxu0  ;;  %2557 = vst.msk [vmem:[#allocation2 + $0x190] sm:$0x3] %vm2508_vm13, %v9398_v48  ;;  %2560 = vst.msk [vmem:[#allocation2 + $0x1a8] sm:$0x3] %vm2508_vm13, %v9398_v48 }
 0x1ad   : > { %v1799_v55 = vpop.f32.mrb[5].mxu0  ;;  %v7615_v9 = vadd.f32 %v5070_v25, %v7566_v35 }
 0x1ae   : > { %v7612_v29 = vadd.f32 %v7566_v35, %v1799_v55  ;;  %v5071_v17 = vpop.f32.mrb[6].mxu0 }
 0x1af   : > { %v7618_v33 = vadd.f32 %v5071_v17, %v7566_v35  ;;  %v1802_v4 = vpop.f32.mrb[7].mxu0  ;;  %v9423_v1 = vmax.f32 %v7615_v9, 0.0 }
 0x1b0   : > { %v7621_v2 = vadd.f32 %v7566_v35, %v1802_v4  ;;  %v9425_v23 = vmax.f32 %v7612_v29, 0.0 }
 0x1b1   : > { %v9422_v42 = vmax.f32 %v7618_v33, 0.0 }
 0x1b2   : > { %v9424_v31 = vmax.f32 %v7621_v2, 0.0 }
 0x1b3   : > { %v1945_v44 = vpack.c.bf16 %v9422_v42, %v9423_v1 }
 0x1b4   : > { %v1944_v43 = vpack.c.bf16 %v9424_v31, %v9425_v23 }
 0x1b6   : > { %5108 = vmatprep.mubr.msk.bf16.mxu1 %vm1997_vm12, %v1944_v43 }
 0x1b7   : > { %5109 = vmatmul.mubr.msk.bf16.gmra.mrb[20].mxu1 %vm1997_vm12, %v1945_v44 }
 0x1cc   : > { %v5074_v47 = vpop.f32.mrb[8].mxu0 }
 0x1cd   : > { %v1815_v46 = vpop.f32.mrb[9].mxu0  ;;  %v7641_v32 = vadd.f32 %v5074_v47, %v7566_v35 }
 0x1ce   : > { %v7638_v0 = vadd.f32 %v7566_v35, %v1815_v46  ;;  %v5075_v5 = vpop.f32.mrb[10].mxu0 }
 0x1cf   : > { %v7644_v27 = vadd.f32 %v5075_v5, %v7566_v35  ;;  %v1818_v11 = vpop.f32.mrb[11].mxu0  ;;  %v9419_v49 = vmax.f32 %v7641_v32, 0.0 }
 0x1d0   : > { %v7647_v36 = vadd.f32 %v7566_v35, %v1818_v11  ;;  %v9421_v61 = vmax.f32 %v7638_v0, 0.0 }
 0x1d1   : > { %9453 = vst [vmem:[#allocation6_spill] sm:$0xff] %v7644_v27  ;;  %v9418_v57 = vmax.f32 %v7644_v27, 0.0 }
 0x1d2   : > { %v9420_v52 = vmax.f32 %v7647_v36, 0.0 }
 0x1d3   : > { %v1947_v22 = vpack.c.bf16 %v9418_v57, %v9419_v49 }
 0x1d4   : > { %v1946_v51 = vpack.c.bf16 %v9420_v52, %v9421_v61 }
 0x1d6   : > { %5112 = vmatprep.mubr.msk.bf16.mxu1 %vm1997_vm12, %v1946_v51 }
 0x1d7   : > { %5113 = vmatmul.mubr.msk.bf16.gmra.mrb[24].mxu1 %vm1997_vm12, %v1947_v22 }
 0x1ec   : > { %v5078_v10 = vpop.f32.mrb[12].mxu0 }
 0x1ed   : > { %v1831_v3 = vpop.f32.mrb[13].mxu0  ;;  %v7667_v56 = vadd.f32 %v5078_v10, %v7566_v35 }
 0x1ee   : > { %v7664_v45 = vadd.f32 %v7566_v35, %v1831_v3  ;;  %v5079_v58 = vpop.f32.mrb[14].mxu0 }
 0x1ef   : > { %9455 = vst [vmem:[#allocation8_spill] sm:$0xff] %v7667_v56  ;;  %v7670_v59 = vadd.f32 %v5079_v58, %v7566_v35  ;;  %v1834_v12 = vpop.f32.mrb[15].mxu0  ;;  %v9415_v34 = vmax.f32 %v7667_v56, 0.0 }
 0x1f0   : > { %9454 = vst [vmem:[#allocation7_spill] sm:$0xff] %v7664_v45  ;;  %v7673_v20 = vadd.f32 %v7566_v35, %v1834_v12  ;;  %v9417_v40 = vmax.f32 %v7664_v45, 0.0 }
 0x1f1   : > { %9456 = vst [vmem:[#allocation9_spill] sm:$0xff] %v7670_v59  ;;  %v9414_v60 = vmax.f32 %v7670_v59, 0.0 }
 0x1f2   : > { %9457 = vst [vmem:[#allocation10_spill] sm:$0xff] %v7673_v20  ;;  %v9416_v30 = vmax.f32 %v7673_v20, 0.0 }
 0x1f3   : > { %v1949_v8 = vpack.c.bf16 %v9414_v60, %v9415_v34 }
 0x1f4   : > { %v1948_v19 = vpack.c.bf16 %v9416_v30, %v9417_v40 }
 0x1f6   : > { %5116 = vmatprep.mubr.msk.bf16.mxu1 %vm1997_vm12, %v1948_v19 }
 0x1f7   : > { %5117 = vmatmul.mubr.msk.bf16.gmra.mrb[28].mxu1 %vm1997_vm12, %v1949_v8 }
 0x20c   : > { %v5082_v6 = vpop.f32.mrb[0].mxu1 }
 0x20d   : > { %v1847_v54 = vpop.f32.mrb[1].mxu1  ;;  %v7801_v63 = vadd.f32 %v5082_v6, %v7566_v35 }
 0x20e   : > { %v7798_v38 = vadd.f32 %v7566_v35, %v1847_v54  ;;  %v5083_v39 = vpop.f32.mrb[2].mxu1 }
 0x20f   : > { %9459 = vst [vmem:[#allocation12_spill] sm:$0xff] %v7801_v63  ;;  %v7804_v53 = vadd.f32 %v5083_v39, %v7566_v35  ;;  %v1850_v14 = vpop.f32.mrb[3].mxu1  ;;  %v9411_v28 = vmax.f32 %v7801_v63, 0.0 }
 0x210   : > { %9458 = vst [vmem:[#allocation11_spill] sm:$0xff] %v7798_v38  ;;  %v7807_v50 = vadd.f32 %v7566_v35, %v1850_v14  ;;  %v9413_v37 = vmax.f32 %v7798_v38, 0.0 }
 0x211   : > { %9460 = vst [vmem:[#allocation13_spill] sm:$0xff] %v7804_v53  ;;  %v9408_v16 = vmax.f32 %v7804_v53, 0.0 }
 0x212   : > { %9461 = vst [vmem:[#allocation14_spill] sm:$0xff] %v7807_v50  ;;  %v9412_v15 = vmax.f32 %v7807_v50, 0.0 }
 0x213   : > { %v1951_v55 = vpack.c.bf16 %v9408_v16, %v9411_v28 }
 0x214   : > { %v1950_v25 = vpack.c.bf16 %v9412_v15, %v9413_v37 }
 0x216   : > { %5120 = vmatprep.mubr.msk.bf16.mxu1 %vm1997_vm12, %v1950_v25 }
 0x217   : > { %5121 = vmatmul.mubr.msk.bf16.gmra.mrb[32].mxu1 %vm1997_vm12, %v1951_v55 }
 0x22c   : > { %v5086_v17 = vpop.f32.mrb[4].mxu1 }
 0x22d   : > { %v1863_v4 = vpop.f32.mrb[5].mxu1  ;;  %v7827_v47 = vadd.f32 %v5086_v17, %v7566_v35 }
 0x22e   : > { %v7824_v43 = vadd.f32 %v7566_v35, %v1863_v4  ;;  %v5087_v44 = vpop.f32.mrb[6].mxu1 }
 0x22f   : > { %9463 = vst [vmem:[#allocation16_spill] sm:$0xff] %v7827_v47  ;;  %v7830_v46 = vadd.f32 %v5087_v44, %v7566_v35  ;;  %v1866_v5 = vpop.f32.mrb[7].mxu1  ;;  %v9404_v3 = vmax.f32 %v7827_v47, 0.0 }
 0x230   : > { %9462 = vst [vmem:[#allocation15_spill] sm:$0xff] %v7824_v43  ;;  %v7833_v11 = vadd.f32 %v7566_v35, %v1866_v5  ;;  %v9407_v22 = vmax.f32 %v7824_v43, 0.0 }
 0x231   : > { %9464 = vst [vmem:[#allocation17_spill] sm:$0xff] %v7830_v46  ;;  %v9401_v51 = vmax.f32 %v7830_v46, 0.0 }
 0x232   : > { %9465 = vst [vmem:[#allocation18_spill] sm:$0xff] %v7833_v11  ;;  %v9405_v10 = vmax.f32 %v7833_v11, 0.0 }
 0x233   : > { %v1953_v12 = vpack.c.bf16 %v9401_v51, %v9404_v3 }
 0x234   : > { %v1952_v58 = vpack.c.bf16 %v9405_v10, %v9407_v22  ;;  %v7904_v10 = vld [vmem:[%s9392_s4] ss:$0 sm:$0xff] }
 0x236   : > { %5124 = vmatprep.mubr.msk.bf16.mxu1 %vm1997_vm12, %v1952_v58 }
 0x237   : > { %5125 = vmatmul.mubr.msk.bf16.gmra.mrb[36].mxu1 %vm1997_vm12, %v1953_v12 }
 0x24c   : > { %v5090_v19 = vpop.f32.mrb[8].mxu1 }
 0x24d   : > { %v1879_v8 = vpop.f32.mrb[9].mxu1  ;;  %v7853_v39 = vadd.f32 %v5090_v19, %v7566_v35 }
 0x24e   : > { %v7850_v6 = vadd.f32 %v7566_v35, %v1879_v8  ;;  %v5091_v54 = vpop.f32.mrb[10].mxu1 }
 0x24f   : > { %9467 = vst [vmem:[#allocation20_spill] sm:$0xff] %v7853_v39  ;;  %v7856_v14 = vadd.f32 %v5091_v54, %v7566_v35  ;;  %v1882_v25 = vpop.f32.mrb[11].mxu1  ;;  %v9403_v5 = vmax.f32 %v7853_v39, 0.0 }
 0x250   : > { %9466 = vst [vmem:[#allocation19_spill] sm:$0xff] %v7850_v6  ;;  %v7859_v55 = vadd.f32 %v7566_v35, %v1882_v25  ;;  %v9400_v4 = vmax.f32 %v7850_v6, 0.0 }
 0x251   : > { %9468 = vst [vmem:[#allocation21_spill] sm:$0xff] %v7856_v14  ;;  %v9402_v17 = vmax.f32 %v7856_v14, 0.0 }
 0x252   : > { %9469 = vst [vmem:[#allocation22_spill] sm:$0xff] %v7859_v55  ;;  %v9399_v44 = vmax.f32 %v7859_v55, 0.0 }
 0x253   : > { %v1955_v12 = vpack.c.bf16 %v9402_v17, %v9403_v5 }
 0x254   : > { %v1954_v58 = vpack.c.bf16 %v9399_v44, %v9400_v4 }
 0x256   : > { %5128 = vmatprep.mubr.msk.bf16.mxu1 %vm1997_vm12, %v1954_v58 }
 0x257   : > { %5129 = vmatmul.mubr.msk.bf16.gmra.mrb[40].mxu1 %vm1997_vm12, %v1955_v12 }
 0x269   : > { %v5094_v19 = vpop.f32.mrb[12].mxu1 }
 0x26a   : > { %v1895_v8 = vpop.f32.mrb[13].mxu1  ;;  %v7879_v48 = vadd.f32 %v5094_v19, %v7566_v35 }
 0x26b   : > { %v7876_v54 = vadd.f32 %v7566_v35, %v1895_v8  ;;  %v5095_v25 = vpop.f32.mrb[14].mxu1 }
 0x26c   : > { %9471 = vst [vmem:[#allocation24_spill] sm:$0xff] %v7879_v48  ;;  %v7882_v44 = vadd.f32 %v5095_v25, %v7566_v35  ;;  %v1898_v4 = vpop.f32.mrb[15].mxu1  ;;  %v9410_v8 = vmax.f32 %v7879_v48, 0.0 }
 0x26d   : > { %9470 = vst [vmem:[#allocation23_spill] sm:$0xff] %v7876_v54  ;;  %v7885_v51 = vadd.f32 %v7566_v35, %v1898_v4  ;;  %v9406_v12 = vmax.f32 %v7876_v54, 0.0 }
 0x26e   : > { %9472 = vst [vmem:[#allocation25_spill] sm:$0xff] %v7882_v44  ;;  %v9409_v58 = vmax.f32 %v7882_v44, 0.0 }
 0x26f   : > { %v9430_v17 = vmax.f32 %v7885_v51, 0.0 }
 0x270   : > { %v1957_v35 = vpack.c.bf16 %v9409_v58, %v9410_v8 }
 0x271   : > { %v1956_v19 = vpack.c.bf16 %v9430_v17, %v9406_v12  ;;  %v5106_v5 = vpop.f32.mrb[16].mxu1 }
 0x272   : > { %v2080_v4 = vpop.f32.mrb[17].mxu1  ;;  %v7907_v12 = vadd.f32 %v5106_v5, %v7904_v10 }
 0x273   : > { %v5107_v25 = vpop.f32.mrb[18].mxu1  ;;  %5132 = vmatprep.mubr.msk.bf16.mxu1 %vm1997_vm12, %v1956_v19  ;;  %v7910_v22 = vadd.f32 %v7904_v10, %v2080_v4 }
 0x274   : > { %v2083_v3 = vpop.f32.mrb[19].mxu1  ;;  %5133 = vmatmul.mubr.msk.bf16.gmra.mrb[44].mxu1 %vm1997_vm12, %v1957_v35  ;;  %v7913_v58 = vadd.f32 %v5107_v25, %v7904_v10  ;;  %v2209_v5 = vsel %vm1997_vm12, %v7907_v12, -inf }
 0x275   : > { %v7919_v35 = vadd.f32 %v7904_v10, %v2083_v3 }
 0x276   : > { %v2210_v34 = vsel %vm1997_vm12, %v7913_v58, -inf }
 0x28a   : > { %v5110_v16 = vpop.f32.mrb[20].mxu1 }
 0x28b   : > { %v7916_v19 = vadd.f32 %v5110_v16, %v7904_v10  ;;  %v2096_v8 = vpop.f32.mrb[21].mxu1  ;;  %v2207_v16 = vsel %vm1997_vm12, %v7910_v22, -inf }
 0x28c   : > { %v7922_v28 = vadd.f32 %v7904_v10, %v2096_v8  ;;  %v5111_v15 = vpop.f32.mrb[22].mxu1 }
 0x28d   : > { %v2215_v4 = vsel %vm1997_vm12, %v7916_v19, -inf  ;;  %v7929_v25 = vadd.f32 %v5111_v15, %v7904_v10  ;;  %v2099_v37 = vpop.f32.mrb[23].mxu1  ;;  %v2208_v15 = vsel %vm1997_vm12, %v7919_v35, -inf }
 0x28e   : > { %v2216_v60 = vmax.f32 %v2209_v5, %v2215_v4  ;;  %v2211_v3 = vsel %vm1997_vm12, %v7922_v28, -inf  ;;  %v7936_v8 = vadd.f32 %v7904_v10, %v2099_v37 }
 0x28f   : > { %v2212_v30 = vmax.f32 %v2207_v16, %v2211_v3  ;;  %v2217_v40 = vsel %vm1997_vm12, %v7929_v25, -inf }
 0x290   : > { %v2218_v57 = vmax.f32 %v2210_v34, %v2217_v40  ;;  %v2213_v5 = vsel %vm1997_vm12, %v7936_v8, -inf }
 0x291   : > { %v2214_v4 = vmax.f32 %v2208_v15, %v2213_v5 }
 0x2aa   : > { %v5114_v49 = vpop.f32.mrb[24].mxu1 }
 0x2ab   : > { %v7947_v52 = vadd.f32 %v5114_v49, %v7904_v10  ;;  %v2112_v37 = vpop.f32.mrb[25].mxu1 }
 0x2ac   : > { %v7950_v61 = vadd.f32 %v7904_v10, %v2112_v37  ;;  %v5115_v16 = vpop.f32.mrb[26].mxu1 }
 0x2ad   : > { %v2223_v3 = vsel %vm1997_vm12, %v7947_v52, -inf  ;;  %v7955_v42 = vadd.f32 %v5115_v16, %v7904_v10  ;;  %v2115_v40 = vpop.f32.mrb[27].mxu1 }
 0x2ae   : > { %v2224_v34 = vmax.f32 %v2216_v60, %v2223_v3  ;;  %v2219_v15 = vsel %vm1997_vm12, %v7950_v61, -inf  ;;  %v7960_v5 = vadd.f32 %v7904_v10, %v2115_v40 }
 0x2af   : > { %v2220_v49 = vmax.f32 %v2212_v30, %v2219_v15  ;;  %v2225_v37 = vsel %vm1997_vm12, %v7955_v42, -inf }
 0x2b0   : > { %v2226_v1 = vmax.f32 %v2218_v57, %v2225_v37  ;;  %v2221_v31 = vsel %vm1997_vm12, %v7960_v5, -inf }
 0x2b1   : > { %v2222_v23 = vmax.f32 %v2214_v4, %v2221_v31 }
 0x2ca   : > { %v5118_v24 = vpop.f32.mrb[28].mxu1 }
 0x2cb   : > { %v7967_v16 = vadd.f32 %v5118_v24, %v7904_v10  ;;  %v2128_v60 = vpop.f32.mrb[29].mxu1 }
 0x2cc   : > { %v7970_v3 = vadd.f32 %v7904_v10, %v2128_v60  ;;  %v5119_v26 = vpop.f32.mrb[30].mxu1 }
 0x2cd   : > { %v2231_v30 = vsel %vm1997_vm12, %v7967_v16, -inf  ;;  %v7975_v40 = vadd.f32 %v5119_v26, %v7904_v10  ;;  %v2131_v57 = vpop.f32.mrb[31].mxu1 }
 0x2ce   : > { %v2232_v15 = vmax.f32 %v2224_v34, %v2231_v30  ;;  %v2227_v31 = vsel %vm1997_vm12, %v7970_v3, -inf  ;;  %v7980_v4 = vadd.f32 %v7904_v10, %v2131_v57 }
 0x2cf   : > { %v2228_v24 = vmax.f32 %v2220_v49, %v2227_v31  ;;  %v2233_v37 = vsel %vm1997_vm12, %v7975_v40, -inf }
 0x2d0   : > { %v2234_v60 = vmax.f32 %v2226_v1, %v2233_v37  ;;  %v2229_v7 = vsel %vm1997_vm12, %v7980_v4, -inf }
 0x2d1   : > { %v2230_v18 = vmax.f32 %v2222_v23, %v2229_v7 }
 0x2ea   : > { %v5122_v17 = vpop.f32.mrb[32].mxu1 }
 0x2eb   : > { %v7987_v26 = vadd.f32 %v5122_v17, %v7904_v10  ;;  %v2144_v34 = vpop.f32.mrb[33].mxu1 }
 0x2ec   : > { %v7990_v30 = vadd.f32 %v7904_v10, %v2144_v34  ;;  %v5123_v44 = vpop.f32.mrb[34].mxu1 }
 0x2ed   : > { %v2239_v49 = vsel %vm1997_vm12, %v7987_v26, -inf  ;;  %v7995_v57 = vadd.f32 %v5123_v44, %v7904_v10  ;;  %v2147_v1 = vpop.f32.mrb[35].mxu1 }
 0x2ee   : > { %v2240_v31 = vmax.f32 %v2232_v15, %v2239_v49  ;;  %v2235_v7 = vsel %vm1997_vm12, %v7990_v30, -inf  ;;  %v8000_v23 = vadd.f32 %v7904_v10, %v2147_v1 }
 0x2ef   : > { %v2236_v17 = vmax.f32 %v2228_v24, %v2235_v7  ;;  %v2241_v37 = vsel %vm1997_vm12, %v7995_v57, -inf }
 0x2f0   : > { %v2242_v34 = vmax.f32 %v2234_v60, %v2241_v37  ;;  %v2237_v48 = vsel %vm1997_vm12, %v8000_v23, -inf }
 0x2f1   : > { %v2238_v54 = vmax.f32 %v2230_v18, %v2237_v48 }
 0x30a   : > { %v5126_v14 = vpop.f32.mrb[36].mxu1 }
 0x30b   : > { %v2160_v44 = vpop.f32.mrb[37].mxu1  ;;  %v8017_v18 = vadd.f32 %v5126_v14, %v7904_v10 }
 0x30c   : > { %v8007_v39 = vadd.f32 %v7904_v10, %v2160_v44  ;;  %v5127_v15 = vpop.f32.mrb[38].mxu1 }
 0x30d   : > { %v2163_v49 = vpop.f32.mrb[39].mxu1  ;;  %v8020_v48 = vadd.f32 %v5127_v15, %v7904_v10  ;;  %v2247_v44 = vsel %vm1997_vm12, %v8017_v18, -inf }
 0x30e   : > { %v2243_v1 = vsel %vm1997_vm12, %v8007_v39, -inf  ;;  %v8012_v24 = vadd.f32 %v7904_v10, %v2163_v49 }
 0x30f   : > { %v2244_v7 = vmax.f32 %v2236_v17, %v2243_v1  ;;  %v2249_v6 = vsel %vm1997_vm12, %v8020_v48, -inf  ;;  %v2248_v1 = vmax.f32 %v2240_v31, %v2247_v44 }
 0x310   : > { %v2245_v60 = vsel %vm1997_vm12, %v8012_v24, -inf  ;;  %v2250_v47 = vmax.f32 %v2242_v34, %v2249_v6 }
 0x311   : > { %v2246_v37 = vmax.f32 %v2238_v54, %v2245_v60 }
 0x32a   : > { %v5130_v55 = vpop.f32.mrb[40].mxu1 }
 0x32b   : > { %v8027_v49 = vadd.f32 %v5130_v55, %v7904_v10  ;;  %v2176_v17 = vpop.f32.mrb[41].mxu1 }
 0x32c   : > { %v8030_v54 = vadd.f32 %v7904_v10, %v2176_v17  ;;  %v5131_v14 = vpop.f32.mrb[42].mxu1 }
 0x32d   : > { %v2255_v15 = vsel %vm1997_vm12, %v8027_v49, -inf  ;;  %v8035_v60 = vadd.f32 %v5131_v14, %v7904_v10  ;;  %v2179_v46 = vpop.f32.mrb[43].mxu1 }
 0x32e   : > { %v2256_v11 = vmax.f32 %v2248_v1, %v2255_v15  ;;  %v2251_v43 = vsel %vm1997_vm12, %v8030_v54, -inf  ;;  %v8040_v55 = vadd.f32 %v7904_v10, %v2179_v46 }
 0x32f   : > { %v2252_v31 = vmax.f32 %v2244_v7, %v2251_v43  ;;  %v2257_v44 = vsel %vm1997_vm12, %v8035_v60, -inf }
 0x330   : > { %v2258_v17 = vmax.f32 %v2250_v47, %v2257_v44  ;;  %v2253_v53 = vsel %vm1997_vm12, %v8040_v55, -inf }
 0x331   : > { %v2254_v63 = vmax.f32 %v2246_v37, %v2253_v53 }
 0x347   : > { %v5134_v14 = vpop.f32.mrb[44].mxu1 }
 0x348   : > { %v8047_v50 = vadd.f32 %v5134_v14, %v7904_v10  ;;  %v2192_v6 = vpop.f32.mrb[45].mxu1 }
 0x349   : > { %v8050_v34 = vadd.f32 %v7904_v10, %v2192_v6  ;;  %v5135_v1 = vpop.f32.mrb[46].mxu1 }
 0x34a   : > { %v2263_v43 = vsel %vm1997_vm12, %v8047_v50, -inf  ;;  %v8055_v46 = vadd.f32 %v5135_v1, %v7904_v10  ;;  %v2195_v47 = vpop.f32.mrb[47].mxu1 }
 0x34b   : > { %v2264_v7 = vmax.f32 %v2256_v11, %v2263_v43  ;;  %v2259_v53 = vsel %vm1997_vm12, %v8050_v34, -inf  ;;  %v8060_v37 = vadd.f32 %v7904_v10, %v2195_v47  ;;  %v2626_v11 = vld [vmem:[#allocation2 + $0x1] sm:$0xff]  ;;  %v2627_v43 = vld [vmem:[#allocation2 + $0x9] sm:$0xff] }
 0x34c   : > { %v2260_v15 = vmax.f32 %v2252_v31, %v2259_v53  ;;  %v2265_v44 = vsel %vm1997_vm12, %v8055_v46, -inf  ;;  %v5940_v45 = vpack.i.bf16 %v2627_v43, %v2626_v11 }
 0x34d   : > { %v2266_v14 = vmax.f32 %v2258_v17, %v2265_v44  ;;  %v2261_v6 = vsel %vm1997_vm12, %v8060_v37, -inf }
 0x34e   : > { %v2262_v38 = vmax.f32 %v2254_v63, %v2261_v6  ;;  %5941 = vrot.lane.b32.xlu1 %v5940_v45, %s6465_s26 }
 0x34f   : > { %v2268_v59 = vmax.f32 %v2264_v7, %v2266_v14 }
 0x350   : > { %v2267_v1 = vmax.f32 %v2260_v15, %v2262_v38 }
 0x352   : > { %v2269_v56 = vmax.f32 %v2267_v1, %v2268_v59 }
 0x354   : > { %v2270_v20 = vrot.slane %v2269_v56, 4 }
 0x356   : > { %v2271_v27 = vmax.f32 %v2269_v56, %v2270_v20 }
 0x358   : > { %v2272_v10 = vrot.slane %v2271_v27, 2 }
 0x35a   : > { %v2273_v31 = vmax.f32 %v2271_v27, %v2272_v10 }
 0x35c   : > { %v2274_v47 = vrot.slane %v2273_v31, 1 }
 0x35e   : > { %v8067_v53 = vmax.f32 %v2273_v31, %v2274_v47 }
 0x360   : > { %v2276_v17 = vsub.f32 %v7910_v22, %v8067_v53  ;;  %v2277_v38 = vsub.f32 %v7919_v35, %v8067_v53  ;;  %v2278_v59 = vsub.f32 %v7907_v12, %v8067_v53  ;;  %v2279_v56 = vsub.f32 %v7913_v58, %v8067_v53 }
 0x361   : > { %v2280_v45 = vsub.f32 %v7922_v28, %v8067_v53  ;;  %v2281_v27 = vsub.f32 %v7936_v8, %v8067_v53  ;;  %v2282_v20 = vsub.f32 %v7916_v19, %v8067_v53  ;;  %v2283_v63 = vsub.f32 %v7929_v25, %v8067_v53 }
 0x362   : > { %v2284_v22 = vsub.f32 %v7950_v61, %v8067_v53  ;;  %v2285_v12 = vsub.f32 %v7960_v5, %v8067_v53  ;;  %v2286_v58 = vsub.f32 %v7947_v52, %v8067_v53  ;;  %v2287_v28 = vsub.f32 %v7955_v42, %v8067_v53 }
 0x363   : > { %v2288_v35 = vsub.f32 %v7970_v3, %v8067_v53  ;;  %v2289_v19 = vsub.f32 %v7980_v4, %v8067_v53  ;;  %v2290_v25 = vsub.f32 %v7967_v16, %v8067_v53  ;;  %v2291_v61 = vsub.f32 %v7975_v40, %v8067_v53 }
 0x364   : > { %v2292_v8 = vsub.f32 %v7990_v30, %v8067_v53  ;;  %v2293_v52 = vsub.f32 %v8000_v23, %v8067_v53  ;;  %v2294_v42 = vsub.f32 %v7987_v26, %v8067_v53  ;;  %v2295_v5 = vsub.f32 %v7995_v57, %v8067_v53 }
 0x365   : > { %v2296_v3 = vsub.f32 %v8007_v39, %v8067_v53  ;;  %v2297_v16 = vsub.f32 %v8012_v24, %v8067_v53  ;;  %v2307_v11 = vsub.f32 %v8055_v46, %v8067_v53  ;;  %v2308_v43 = vmul.f32 1.442695, %v2276_v17 }
 0x366   : > { %v2310_v10 = vmul.f32 1.442695, %v2277_v38  ;;  %v2312_v31 = vmul.f32 1.442695, %v2278_v59  ;;  %v2314_v47 = vmul.f32 1.442695, %v2279_v56  ;;  %v2298_v26 = vsub.f32 %v8017_v18, %v8067_v53 }
 0x367   : > { %6298 = vpow2.f32 %v2308_v43  ;;  %v2316_v15 = vmul.f32 1.442695, %v2280_v45  ;;  %v2318_v44 = vmul.f32 1.442695, %v2281_v27  ;;  %v2320_v14 = vmul.f32 1.442695, %v2282_v20 }
 0x368   : > { %6300 = vpow2.f32 %v2310_v10  ;;  %v2322_v6 = vmul.f32 1.442695, %v2283_v63  ;;  %v2324_v7 = vmul.f32 1.442695, %v2284_v22  ;;  %v2326_v17 = vmul.f32 1.442695, %v2285_v12 }
 0x369   : > { %6302 = vpow2.f32 %v2312_v31  ;;  %v2328_v27 = vmul.f32 1.442695, %v2286_v58  ;;  %v2330_v12 = vmul.f32 1.442695, %v2287_v28  ;;  %v2334_v10 = vmul.f32 1.442695, %v2289_v19 }
 0x36a   : > { %6304 = vpow2.f32 %v2314_v47  ;;  %v2342_v40 = vmul.f32 1.442695, %v2293_v52  ;;  %v2344_v30 = vmul.f32 1.442695, %v2294_v42  ;;  %v2346_v23 = vmul.f32 1.442695, %v2295_v5 }
 0x36b   : > { %6306 = vpow2.f32 %v2316_v15  ;;  %v2348_v42 = vmul.f32 1.442695, %v2296_v3  ;;  %v2299_v5 = vsub.f32 %v8020_v48, %v8067_v53  ;;  %v2352_v3 = vmul.f32 1.442695, %v2298_v26 }
 0x36c   : > { %6308 = vpow2.f32 %v2318_v44 }
 0x36d   : > { %6310 = vpow2.f32 %v2320_v14  ;;  %v2354_v48 = vmul.f32 1.442695, %v2299_v5 }
 0x36e   : > { %6312 = vpow2.f32 %v2322_v6  ;;  %v2332_v6 = vmul.f32 1.442695, %v2288_v35 }
 0x36f   : > { %6314 = vpow2.f32 %v2324_v7 }
 0x370   : > { %6316 = vpow2.f32 %v2326_v17  ;;  %v2336_v17 = vmul.f32 1.442695, %v2290_v25  ;;  %v2340_v25 = vmul.f32 1.442695, %v2292_v8 }
 0x371   : > { %v8129_v1 = vpop.eup %6298  ;;  %6318 = vpow2.f32 %v2328_v27  ;;  %v2338_v27 = vmul.f32 1.442695, %v2291_v61 }
 0x372   : > { %v8131_v4 = vpop.eup %6300  ;;  %v2372_v38 = vsel %vm1997_vm12, %v8129_v1, 0.0  ;;  %6320 = vpow2.f32 %v2330_v12 }
 0x373   : > { %v8135_v59 = vpop.eup %6302  ;;  %v2373_v56 = vsel %vm1997_vm12, %v8131_v4, 0.0  ;;  %6322 = vpow2.f32 %v2332_v6 }
 0x374   : > { %v8139_v45 = vpop.eup %6304  ;;  %v2374_v20 = vadd.f32 %v2373_v56, %v2372_v38  ;;  %v2375_v63 = vsel %vm1997_vm12, %v8135_v59, 0.0  ;;  %6324 = vpow2.f32 %v2334_v10 }
 0x375   : > { %v8143_v22 = vpop.eup %6306  ;;  %v2377_v44 = vsel %vm1997_vm12, %v8139_v45, 0.0  ;;  %6326 = vpow2.f32 %v2336_v17 }
 0x376   : > { %v2376_v15 = vadd.f32 %v2375_v63, %v2374_v20  ;;  %v8147_v14 = vpop.eup %6308  ;;  %v2379_v58 = vsel %vm1997_vm12, %v8143_v22, 0.0  ;;  %6328 = vpow2.f32 %v2338_v27 }
 0x377   : > { %v8151_v7 = vpop.eup %6310  ;;  %v2381_v28 = vsel %vm1997_vm12, %v8147_v14, 0.0  ;;  %6330 = vpow2.f32 %v2340_v25 }
 0x378   : > { %v2378_v43 = vadd.f32 %v2377_v44, %v2376_v15  ;;  %v8155_v47 = vpop.eup %6312  ;;  %v2383_v35 = vsel %vm1997_vm12, %v8151_v7, 0.0  ;;  %6332 = vpow2.f32 %v2342_v40 }
 0x379   : > { %v8159_v56 = vpop.eup %6314  ;;  %v2385_v20 = vsel %vm1997_vm12, %v8155_v47, 0.0  ;;  %6334 = vpow2.f32 %v2344_v30 }
 0x37a   : > { %v2380_v31 = vadd.f32 %v2379_v58, %v2378_v43  ;;  %v8166_v63 = vpop.eup %6316  ;;  %v2387_v15 = vsel %vm1997_vm12, %v8159_v56, 0.0  ;;  %6336 = vpow2.f32 %v2346_v23 }
 0x37b   : > { %v8173_v44 = vpop.eup %6318  ;;  %v2389_v6 = vsel %vm1997_vm12, %v8166_v63, 0.0  ;;  %6338 = vpow2.f32 %v2348_v42 }
 0x37c   : > { %v2382_v38 = vadd.f32 %v2381_v28, %v2380_v31  ;;  %v8180_v43 = vpop.eup %6320  ;;  %v2391_v58 = vsel %vm1997_vm12, %v8173_v44, 0.0 }
 0x37d   : > { %v8187_v10 = vpop.eup %6322  ;;  %v2393_v31 = vsel %vm1997_vm12, %v8180_v43, 0.0 }
 0x37e   : > { %v2384_v19 = vadd.f32 %v2383_v35, %v2382_v38  ;;  %v8194_v28 = vpop.eup %6324  ;;  %v2395_v38 = vsel %vm1997_vm12, %v8187_v10, 0.0  ;;  %v2350_v35 = vmul.f32 1.442695, %v2297_v16 }
 0x37f   : > { %v8203_v57 = vpop.eup %6326  ;;  %v2397_v27 = vsel %vm1997_vm12, %v8194_v28, 0.0 }
 0x380   : > { %v2386_v12 = vadd.f32 %v2385_v20, %v2384_v19  ;;  %v8212_v39 = vpop.eup %6328  ;;  %v2399_v20 = vsel %vm1997_vm12, %v8203_v57, 0.0  ;;  %6340 = vpow2.f32 %v2350_v35 }
 0x381   : > { %v8216_v25 = vpop.eup %6330  ;;  %v2401_v24 = vsel %vm1997_vm12, %v8212_v39, 0.0  ;;  %6342 = vpow2.f32 %v2352_v3 }
 0x382   : > { %v2388_v61 = vadd.f32 %v2387_v15, %v2386_v12  ;;  %v8220_v16 = vpop.eup %6332  ;;  %v9473_v15 = vsub.f32 %v8030_v54, %v8067_v53  ;;  %6344 = vpow2.f32 %v2354_v48  ;;  %v9475_v54 = vsub.f32 %v8027_v49, %v8067_v53 }
 0x383   : > { %v8227_v30 = vpop.eup %6334  ;;  %v9477_v49 = vsub.f32 %v8050_v34, %v8067_v53  ;;  %v9479_v34 = vsub.f32 %v8047_v50, %v8067_v53 }
 0x384   : > { %v2390_v8 = vadd.f32 %v2389_v6, %v2388_v61  ;;  %v2356_v40 = vmul.f32 1.442695, %v9473_v15  ;;  %v2403_v6 = vsel %vm1997_vm12, %v8216_v25, 0.0  ;;  %v2360_v26 = vmul.f32 1.442695, %v9475_v54 }
 0x385   : > { %v2364_v3 = vmul.f32 1.442695, %v9477_v49 }
 0x386   : > { %v2392_v52 = vadd.f32 %v2391_v58, %v2390_v8  ;;  %v9474_v8 = vsub.f32 %v8040_v55, %v8067_v53  ;;  %6346 = vpow2.f32 %v2356_v40  ;;  %v9476_v55 = vsub.f32 %v8035_v60, %v8067_v53 }
 0x387   : > { %v9478_v60 = vsub.f32 %v8060_v37, %v8067_v53  ;;  %v2370_v37 = vmul.f32 1.442695, %v2307_v11 }
 0x388   : > { %v2394_v17 = vadd.f32 %v2393_v31, %v2392_v52  ;;  %v2358_v58 = vmul.f32 1.442695, %v9474_v8  ;;  %v2405_v52 = vsel %vm1997_vm12, %v8220_v16, 0.0  ;;  %v8234_v31 = vpop.eup %6336  ;;  %v2362_v5 = vmul.f32 1.442695, %v9476_v55 }
 0x38a   : > { %v2396_v18 = vadd.f32 %v2395_v38, %v2394_v17  ;;  %v2407_v17 = vsel %vm1997_vm12, %v8227_v30, 0.0  ;;  %v8241_v38 = vpop.eup %6338  ;;  %6348 = vpow2.f32 %v2358_v58 }
 0x38b   : > { %6350 = vpow2.f32 %v2360_v26 }
 0x38c   : > { %v2398_v19 = vadd.f32 %v2397_v27, %v2396_v18  ;;  %v2409_v18 = vsel %vm1997_vm12, %v8234_v31, 0.0  ;;  %v8248_v27 = vpop.eup %6340  ;;  %6352 = vpow2.f32 %v2362_v5 }
 0x38d   : > { %v8255_v48 = vpop.eup %6342  ;;  %v2413_v15 = vsel %vm1997_vm12, %v8248_v27, 0.0  ;;  %6354 = vpow2.f32 %v2364_v3 }
 0x38e   : > { %v2400_v12 = vadd.f32 %v2399_v20, %v2398_v19  ;;  %v2411_v20 = vsel %vm1997_vm12, %v8241_v38, 0.0  ;;  %v8262_v40 = vpop.eup %6344  ;;  %v2415_v8 = vsel %vm1997_vm12, %v8255_v48, 0.0 }
 0x390   : > { %v2402_v61 = vadd.f32 %v2401_v24, %v2400_v12  ;;  %v2366_v12 = vmul.f32 1.442695, %v9478_v60  ;;  %v8269_v58 = vpop.eup %6346 }
 0x391   : > { %v2419_v26 = vsel %vm1997_vm12, %v8269_v58, 0.0 }
 0x392   : > { %v2404_v23 = vadd.f32 %v2403_v6, %v2402_v61  ;;  %v2368_v61 = vmul.f32 1.442695, %v9479_v34  ;;  %6356 = vpow2.f32 %v2366_v12 }
 0x394   : > { %v2406_v42 = vadd.f32 %v2405_v52, %v2404_v23  ;;  %v2417_v52 = vsel %vm1997_vm12, %v8262_v40, 0.0  ;;  %v8276_v54 = vpop.eup %6348  ;;  %6358 = vpow2.f32 %v2368_v61 }
 0x395   : > { %6360 = vpow2.f32 %v2370_v37  ;;  %v2421_v55 = vsel %vm1997_vm12, %v8276_v54, 0.0 }
 0x396   : > { %v2408_v35 = vadd.f32 %v2407_v17, %v2406_v42  ;;  %v8280_v42 = vpop.eup %6350 }
 0x397   : > { %v8284_v46 = vpop.eup %6352  ;;  %v2423_v11 = vsel %vm1997_vm12, %v8280_v42, 0.0 }
 0x398   : > { %v2410_v19 = vadd.f32 %v2409_v18, %v2408_v35  ;;  %v8288_v5 = vpop.eup %6354  ;;  %v2425_v18 = vsel %vm1997_vm12, %v8284_v46, 0.0 }
 0x39a   : > { %v2412_v24 = vadd.f32 %v2411_v20, %v2410_v19  ;;  %v2427_v19 = vsel %vm1997_vm12, %v8288_v5, 0.0 }
 0x39c   : > { %v2414_v6 = vadd.f32 %v2413_v15, %v2412_v24  ;;  %v6357_v49 = vpop.eup %6356 }
 0x39d   : > { %v2429_v12 = vsel %vm1997_vm12, %v6357_v49, 0.0 }
 0x39e   : > { %v2416_v23 = vadd.f32 %v2415_v8, %v2414_v6  ;;  %v8294_v20 = vpop.eup %6358 }
 0x39f   : > { %v8297_v24 = vpop.eup %6360  ;;  %v2431_v34 = vsel %vm1997_vm12, %v8294_v20, 0.0 }
 0x3a0   : > { %v2418_v50 = vadd.f32 %v2417_v52, %v2416_v23  ;;  %v2433_v6 = vsel %vm1997_vm12, %v8297_v24, 0.0  ;;  %v6262_v23 = vld [vmem:[%s9393_s5 + $0x40] sm:$0xff]  }
 0x3a1   : > { %4797 = vmatprep.subr.bf16.mxu0 %v6262_v23 }
 0x3a2   : > { %v2420_v17 = vadd.f32 %v2419_v26, %v2418_v50  ;;  %v6263_v26 = vld [vmem:[%s9393_s5] sm:$0xff]  }
 0x3a3   : > { %4798 = vmatpush3.bf16.msra.mxu0 %v6263_v26 }
 0x3a4   : > { %v2422_v53 = vadd.f32 %v2421_v55, %v2420_v17  ;;  %v6264_v17 = vld [vmem:[%s9393_s5 + $0x48] sm:$0xff]  }
 0x3a5   : > { %4799 = vmatprep.subr.bf16.mxu0 %v6264_v17 }
 0x3a6   : > { %v2424_v35 = vadd.f32 %v2423_v11, %v2422_v53  ;;  %v6265_v11 = vld [vmem:[%s9393_s5 + $0x8] sm:$0xff]  }
 0x3a7   : > { %4800 = vmatpush3.bf16.msra.mxu0 %v6265_v11 }
 0x3a8   : > { %v2426_v3 = vadd.f32 %v2425_v18, %v2424_v35  ;;  %v6266_v35 = vld [vmem:[%s9393_s5 + $0x50] sm:$0xff]  }
 0x3a9   : > { %4801 = vmatprep.subr.bf16.mxu0 %v6266_v35  ;;  %v6275_v35 = vld [vmem:[%s9393_s5 + $0x30] sm:$0xff]  }
 0x3aa   : > { %v2428_v60 = vadd.f32 %v2427_v19, %v2426_v3  ;;  %v6267_v3 = vld [vmem:[%s9393_s5 + $0x10] sm:$0xff]   ;;  %v6268_v19 = vld [vmem:[%s9393_s5 + $0x58] sm:$0xff]  }
 0x3ab   : > { %4802 = vmatpush3.bf16.msra.mxu0 %v6267_v3  ;;  %v9481_v3 = vmax.f32 %v7577_v62, 0.0 }
 0x3ac   : > { %v2430_v15 = vadd.f32 %v2429_v12, %v2428_v60  ;;  %4803 = vmatprep.subr.bf16.mxu0 %v6268_v19  ;;  %v6269_v60 = vld [vmem:[%s9393_s5 + $0x18] sm:$0xff]   ;;  %v6270_v12 = vld [vmem:[%s9393_s5 + $0x60] sm:$0xff]  }
 0x3ae   : > { %v2432_v61 = vadd.f32 %v2431_v34, %v2430_v15  ;;  %v6271_v15 = vld [vmem:[%s9393_s5 + $0x20] sm:$0xff]   ;;  %v6272_v34 = vld [vmem:[%s9393_s5 + $0x68] sm:$0xff]  }
 0x3af   : > { %4804 = vmatpush3.bf16.msra.mxu0 %v6269_v60 }
 0x3b0   : > { %v2434_v8 = vadd.f32 %v2433_v6, %v2432_v61  ;;  %4805 = vmatprep.subr.bf16.mxu0 %v6270_v12  ;;  %v9487_v12 = vmax.f32 %v7615_v9, 0.0  ;;  %v9492_v9 = vld [vmem:[#allocation6_spill] sm:$0xff] }
 0x3b2   : > { %v2435_v37 = vrot.slane %v2434_v8, 4 }
 0x3b3   : > { %4806 = vmatpush3.bf16.msra.mxu0 %v6271_v15  ;;  %v9488_v15 = vmax.f32 %v7618_v33, 0.0 }
 0x3b4   : > { %v2436_v52 = vadd.f32 %v2435_v37, %v2434_v8  ;;  %4807 = vmatprep.subr.bf16.mxu0 %v6272_v34 }
 0x3b6   : > { %v2437_v50 = vrot.slane %v2436_v52, 2 }
 0x3b8   : > { %v2438_v55 = vadd.f32 %v2437_v50, %v2436_v52 }
 0x3ba   : > { %v2439_v53 = vrot.slane %v2438_v55, 1 }
 0x3bc   : > { %v2440_v18 = vadd.f32 %v2439_v53, %v2438_v55  ;;  %v6273_v55 = vld [vmem:[%s9393_s5 + $0x28] sm:$0xff]  }
 0x3bd   : > { %4808 = vmatpush3.bf16.msra.mxu0 %v6273_v55 }
 0x3be   : > { %6362 = vrcp.f32 %v2440_v18 }
 0x3c8   : > { %v6363_v61 = vpop.eup %6362 }
 0x3c9   : > { %v2471_v6 = vmul.f32 %v6363_v61, %v6357_v49  ;;  %v2442_v8 = vmul.f32 %v6363_v61, %v8129_v1  ;;  %v2443_v37 = vmul.f32 %v6363_v61, %v8131_v4  ;;  %v2444_v23 = vmul.f32 %v6363_v61, %v8135_v59 }
 0x3ca   : > { %v2445_v52 = vmul.f32 %v6363_v61, %v8139_v45  ;;  %v2446_v50 = vmul.f32 %v6363_v61, %v8143_v22  ;;  %v2447_v26 = vmul.f32 %v6363_v61, %v8147_v14  ;;  %v2448_v17 = vmul.f32 %v6363_v61, %v8151_v7  ;;  %v6274_v45 = vld [vmem:[%s9393_s5 + $0x70] sm:$0xff]  }
 0x3cb   : > { %v9480_v49 = vmax.f32 %v7885_v51, 0.0  ;;  %v2449_v4 = vmul.f32 %v6363_v61, %v8155_v47  ;;  %v2450_v59 = vmul.f32 %v6363_v61, %v8159_v56  ;;  %v2451_v53 = vmul.f32 %v6363_v61, %v8166_v63  ;;  %4809 = vmatprep.subr.bf16.mxu0 %v6274_v45 }
 0x3cc   : > { %v2452_v22 = vmul.f32 %v6363_v61, %v8173_v44  ;;  %v2453_v14 = vmul.f32 %v6363_v61, %v8180_v43  ;;  %v2454_v7 = vmul.f32 %v6363_v61, %v8187_v10  ;;  %v2455_v11 = vmul.f32 %v6363_v61, %v8194_v28  ;;  %4810 = vmatpush3.bf16.msra.mxu0 %v6275_v35 }
 0x3cd   : > { %v2503_v1 = vmul.f32 %v2471_v6, %v9480_v49  ;;  %v2456_v51 = vmul.f32 %v6363_v61, %v8203_v57  ;;  %v2457_v47 = vmul.f32 %v6363_v61, %v8212_v39  ;;  %v2458_v56 = vmul.f32 %v6363_v61, %v8216_v25  ;;  %v9500_v49 = vld [vmem:[#allocation9_spill] sm:$0xff] }
 0x3ce   : > { %v2459_v63 = vmul.f32 %v6363_v61, %v8220_v16  ;;  %v2460_v44 = vmul.f32 %v6363_v61, %v8227_v30  ;;  %v2461_v43 = vmul.f32 %v6363_v61, %v8234_v31  ;;  %v2462_v10 = vmul.f32 %v6363_v61, %v8241_v38 }
 0x3cf   : > { %2591 = vst.msk [vmem:[#allocation2 + $0x171] sm:$0xff] %vm1997_vm12, %v2503_v1  ;;  %v2463_v28 = vmul.f32 %v6363_v61, %v8248_v27  ;;  %v2464_v57 = vmul.f32 %v6363_v61, %v8255_v48  ;;  %v2465_v39 = vmul.f32 %v6363_v61, %v8262_v40  ;;  %v2466_v25 = vmul.f32 %v6363_v61, %v8269_v58 }
 0x3d0   : > { %v2467_v16 = vmul.f32 %v6363_v61, %v8276_v54  ;;  %v2468_v30 = vmul.f32 %v6363_v61, %v8280_v42  ;;  %v2469_v31 = vmul.f32 %v6363_v61, %v8284_v46  ;;  %v2470_v38 = vmul.f32 %v6363_v61, %v8288_v5  ;;  %v6276_v42 = vld [vmem:[%s9393_s5 + $0x78] sm:$0xff]  }
 0x3d1   : > { %v2472_v27 = vmul.f32 %v6363_v61, %v8294_v20  ;;  %v2473_v18 = vmul.f32 %v6363_v61, %v8297_v24  ;;  %v2474_v48 = vmul.f32 %v2442_v8, %v9481_v3  ;;  %v9482_v40 = vmax.f32 %v7585_v41, 0.0  ;;  %4811 = vmatprep.subr.bf16.mxu0 %v6276_v42 }
 0x3d2   : > { %v9483_v58 = vmax.f32 %v7600_v21, 0.0  ;;  %v9484_v46 = vmax.f32 %v7592_v13, 0.0  ;;  %v9485_v20 = vmax.f32 %v7612_v29, 0.0  ;;  %v9486_v24 = vmax.f32 %v7621_v2, 0.0  ;;  %v6277_v21 = vld [vmem:[%s9393_s5 + $0x38] sm:$0xff]  }
 0x3d3   : > { %v2475_v19 = vmul.f32 %v2443_v37, %v9482_v40  ;;  %v2480_v41 = vmul.f32 %v2448_v17, %v9487_v12  ;;  %v2481_v34 = vmul.f32 %v2449_v4, %v9488_v15  ;;  %v9489_v61 = vmax.f32 %v7638_v0, 0.0  ;;  %2562 = vst.msk [vmem:[#allocation2 + $0x19] sm:$0xff] %vm1997_vm12, %v2474_v48  ;;  %v9498_v17 = vld [vmem:[#allocation8_spill] sm:$0xff]  ;;  %4812 = vmatpush3.bf16.msra.mxu0 %v6277_v21  ;;  %v9510_v48 = vld [vmem:[#allocation15_spill] sm:$0xff] }
 0x3d4   : > { %v2476_v54 = vmul.f32 %v2444_v23, %v9483_v58  ;;  %v2477_v5 = vmul.f32 %v2445_v52, %v9484_v46  ;;  %v2478_v60 = vmul.f32 %v2446_v50, %v9485_v20  ;;  %v2479_v62 = vmul.f32 %v2447_v26, %v9486_v24  ;;  %v9494_v23 = vld [vmem:[#allocation7_spill] sm:$0xff]  ;;  %v9496_v50 = vld [vmem:[#allocation10_spill] sm:$0xff]  ;;  %v9514_v46 = vld [vmem:[#allocation16_spill] sm:$0xff] }
 0x3d5   : > { %v2482_v13 = vmul.f32 %v2450_v59, %v9489_v61  ;;  %v9490_v6 = vmax.f32 %v7647_v36, 0.0  ;;  %v9491_v8 = vmax.f32 %v7641_v32, 0.0  ;;  %2563 = vst.msk [vmem:[#allocation2 + $0x21] sm:$0xff] %vm1997_vm12, %v2475_v19  ;;  %v9493_v37 = vmax.f32 %v9492_v9, 0.0  ;;  %2568 = vst.msk [vmem:[#allocation2 + $0x61] sm:$0xff] %vm1997_vm12, %v2480_v41  ;;  %v9502_v59 = vld [vmem:[#allocation11_spill] sm:$0xff] }
 0x3d6   : > { %2564 = vst.msk [vmem:[#allocation2 + $0x31] sm:$0xff] %vm1997_vm12, %v2476_v54  ;;  %v9495_v52 = vmax.f32 %v9494_v23, 0.0  ;;  %v9497_v26 = vmax.f32 %v9496_v50, 0.0  ;;  %v9499_v55 = vmax.f32 %v9498_v17, 0.0  ;;  %2565 = vst.msk [vmem:[#allocation2 + $0x39] sm:$0xff] %vm1997_vm12, %v2477_v5  ;;  %v9501_v1 = vmax.f32 %v9500_v49, 0.0 }
 0x3d7   : > { %v2483_v29 = vmul.f32 %v2451_v53, %v9490_v6  ;;  %v2484_v2 = vmul.f32 %v2452_v22, %v9491_v8  ;;  %v2485_v33 = vmul.f32 %v2453_v14, %v9493_v37  ;;  %2566 = vst.msk [vmem:[#allocation2 + $0x49] sm:$0xff] %vm1997_vm12, %v2478_v60  ;;  %2567 = vst.msk [vmem:[#allocation2 + $0x51] sm:$0xff] %vm1997_vm12, %v2479_v62  ;;  %v9503_v53 = vmax.f32 %v9502_v59, 0.0  ;;  %v9504_v22 = vld [vmem:[#allocation14_spill] sm:$0xff]  ;;  %v9516_v60 = vld [vmem:[#allocation17_spill] sm:$0xff] }
 0x3d8   : > { %v2486_v0 = vmul.f32 %v2454_v7, %v9495_v52  ;;  %v2487_v36 = vmul.f32 %v2455_v11, %v9497_v26  ;;  %v2488_v32 = vmul.f32 %v2456_v51, %v9499_v55  ;;  %v2489_v4 = vmul.f32 %v2457_v47, %v9501_v1  ;;  %v9506_v11 = vld [vmem:[#allocation12_spill] sm:$0xff]  ;;  %2569 = vst.msk [vmem:[#allocation2 + $0x69] sm:$0xff] %vm1997_vm12, %v2481_v34  ;;  %v9512_v58 = vld [vmem:[#allocation18_spill] sm:$0xff]  ;;  %v9518_v62 = vld [vmem:[#allocation19_spill] sm:$0xff] }
 0x3d9   : > { %v2490_v45 = vmul.f32 %v2458_v56, %v9503_v53  ;;  %v9505_v14 = vmax.f32 %v9504_v22, 0.0  ;;  %v9507_v51 = vmax.f32 %v9506_v11, 0.0  ;;  %2570 = vst.msk [vmem:[#allocation2 + $0x79] sm:$0xff] %vm1997_vm12, %v2482_v13  ;;  %2571 = vst.msk [vmem:[#allocation2 + $0x81] sm:$0xff] %vm1997_vm12, %v2483_v29  ;;  %v6278_v47 = vld [vmem:[%s9393_s5 + $0xc0] sm:$0xff]   ;;  %v9511_v40 = vmax.f32 %v9510_v48, 0.0 }
 0x3da   : > { %2572 = vst.msk [vmem:[#allocation2 + $0x91] sm:$0xff] %vm1997_vm12, %v2484_v2  ;;  %v8440_v56 = vld [vmem:[%s9393_s5 + $0x100] sm:$0xff]   ;;  %v9513_v54 = vmax.f32 %v9512_v58, 0.0  ;;  %v9515_v5 = vmax.f32 %v9514_v46, 0.0  ;;  %2573 = vst.msk [vmem:[#allocation2 + $0x99] sm:$0xff] %vm1997_vm12, %v2485_v33  ;;  %v9520_v41 = vld [vmem:[#allocation22_spill] sm:$0xff]  ;;  %4909 = vmatprep.subr.bf16.mxu1 %v6278_v47 }
 0x3db   : > { %v2491_v7 = vmul.f32 %v2459_v63, %v9505_v14  ;;  %v2492_v35 = vmul.f32 %v2460_v44, %v9507_v51  ;;  %v9508_v63 = vld [vmem:[#allocation13_spill] sm:$0xff]  ;;  %v2494_v19 = vmul.f32 %v2462_v10, %v9511_v40  ;;  %2574 = vst.msk [vmem:[#allocation2 + $0xa9] sm:$0xff] %vm1997_vm12, %v2486_v0  ;;  %2575 = vst.msk [vmem:[#allocation2 + $0xb1] sm:$0xff] %vm1997_vm12, %v2487_v36  ;;  %v9517_v10 = vmax.f32 %v9516_v60, 0.0  ;;  %v9522_v15 = vld [vmem:[#allocation20_spill] sm:$0xff] }
 0x3dc   : > { %v9509_v3 = vmax.f32 %v9508_v63, 0.0  ;;  %v2495_v42 = vmul.f32 %v2463_v28, %v9513_v54  ;;  %v2496_v20 = vmul.f32 %v2464_v57, %v9515_v5  ;;  %2576 = vst.msk [vmem:[#allocation2 + $0xc1] sm:$0xff] %vm1997_vm12, %v2488_v32  ;;  %v9519_v28 = vmax.f32 %v9518_v62, 0.0  ;;  %2577 = vst.msk [vmem:[#allocation2 + $0xc9] sm:$0xff] %vm1997_vm12, %v2489_v4  ;;  %v9524_v13 = vld [vmem:[#allocation21_spill] sm:$0xff]  ;;  %v9526_v29 = vld [vmem:[#allocation23_spill] sm:$0xff]  ;;  %5136 = vmatprep.subr.bf16.mxu0 %v8440_v56 }
 0x3dd   : > { %v2497_v24 = vmul.f32 %v2465_v39, %v9517_v10  ;;  %v9521_v57 = vmax.f32 %v9520_v41, 0.0  ;;  %v9523_v34 = vmax.f32 %v9522_v15, 0.0  ;;  %2578 = vst.msk [vmem:[#allocation2 + $0xd9] sm:$0xff] %vm1997_vm12, %v2490_v45  ;;  %2579 = vst.msk [vmem:[#allocation2 + $0xe1] sm:$0xff] %vm1997_vm12, %v2491_v7  ;;  %v9525_v39 = vmax.f32 %v9524_v13, 0.0  ;;  %v9528_v2 = vld [vmem:[#allocation24_spill] sm:$0xff] }
 0x3de   : > { %v2493_v44 = vmul.f32 %v2461_v43, %v9509_v3  ;;  %v6280_v43 = vld [vmem:[%s9393_s5 + $0x80] sm:$0xff]   ;;  %v2498_v12 = vmul.f32 %v2466_v25, %v9519_v28  ;;  %2580 = vst.msk [vmem:[#allocation2 + $0xf1] sm:$0xff] %vm1997_vm12, %v2492_v35  ;;  %v9527_v25 = vmax.f32 %v9526_v29, 0.0  ;;  %v9530_v37 = vld [vmem:[#allocation25_spill] sm:$0xff]  ;;  %2582 = vst.msk [vmem:[#allocation2 + $0x109] sm:$0xff] %vm1997_vm12, %v2494_v19 }
 0x3df   : > { %v2499_v21 = vmul.f32 %v2467_v16, %v9521_v57  ;;  %v2500_v61 = vmul.f32 %v2468_v30, %v9523_v34  ;;  %v2501_v6 = vmul.f32 %v2469_v31, %v9525_v39  ;;  %v9529_v16 = vmax.f32 %v9528_v2, 0.0  ;;  %2583 = vst.msk [vmem:[#allocation2 + $0x111] sm:$0xff] %vm1997_vm12, %v2495_v42  ;;  %2584 = vst.msk [vmem:[#allocation2 + $0x121] sm:$0xff] %vm1997_vm12, %v2496_v20  ;;  %v6281_v31 = vld [vmem:[%s9393_s5 + $0xc8] sm:$0xff]   ;;  %v8500_v23 = vld [vmem:[#allocation2 + $0x19] sm:$0xff] }
 0x3e0   : > { %v2502_v8 = vmul.f32 %v2470_v38, %v9527_v25  ;;  %v9531_v30 = vmax.f32 %v9530_v37, 0.0  ;;  %2581 = vst.msk [vmem:[#allocation2 + $0xf9] sm:$0xff] %vm1997_vm12, %v2493_v44  ;;  %2585 = vst.msk [vmem:[#allocation2 + $0x129] sm:$0xff] %vm1997_vm12, %v2497_v24  ;;  %4910 = vmatpush3.bf16.msra.mxu1 %v6280_v43  ;;  %v6282_v38 = vld [vmem:[%s9393_s5 + $0x88] sm:$0xff]   ;;  %v8508_v26 = vld [vmem:[#allocation2 + $0x30] sm:$0xff] }
 0x3e1   : > { %v2504_v9 = vmul.f32 %v2472_v27, %v9529_v16  ;;  %2586 = vst.msk [vmem:[#allocation2 + $0x139] sm:$0xff] %vm1997_vm12, %v2498_v12  ;;  %2587 = vst.msk [vmem:[#allocation2 + $0x141] sm:$0xff] %vm1997_vm12, %v2499_v21  ;;  %v8492_v27 = vld [vmem:[#allocation2 + $0x18] sm:$0xff]  ;;  %v8504_v0 = vld [vmem:[#allocation2 + $0x21] sm:$0xff]  ;;  %4911 = vmatprep.subr.bf16.mxu1 %v6281_v31 }
 0x3e2   : > { %v2505_v33 = vmul.f32 %v2473_v18, %v9531_v30  ;;  %2588 = vst.msk [vmem:[#allocation2 + $0x151] sm:$0xff] %vm1997_vm12, %v2500_v61  ;;  %v8494_v18 = vld [vmem:[#allocation2 + $0x20] sm:$0xff]  ;;  %2589 = vst.msk [vmem:[#allocation2 + $0x159] sm:$0xff] %vm1997_vm12, %v2501_v6  ;;  %v5950_v50 = vpack.i.bf16 %v8504_v0, %v8500_v23  ;;  %v8510_v36 = vld [vmem:[#allocation2 + $0x38] sm:$0xff] }
 0x3e3   : > { %2590 = vst.msk [vmem:[#allocation2 + $0x169] sm:$0xff] %vm1997_vm12, %v2502_v8  ;;  %2592 = vst.msk [vmem:[#allocation2 + $0x181] sm:$0xff] %vm1997_vm12, %v2504_v9  ;;  %v5935_v52 = vpack.i.bf16 %v8494_v18, %v8492_v27  ;;  %v2630_v17 = vld [vmem:[#allocation2 + $0x31] sm:$0xff]  ;;  %v2631_v55 = vld [vmem:[#allocation2 + $0x39] sm:$0xff]  ;;  %v5945_v32 = vpack.i.bf16 %v8510_v36, %v8508_v26 }
 0x3e4   : > { %2593 = vst.msk [vmem:[#allocation2 + $0x189] sm:$0xff] %vm1997_vm12, %v2505_v33  ;;  %4912 = vmatpush3.bf16.msra.mxu1 %v6282_v38  ;;  %5951 = vrot.lane.b32.xlu1 %v5950_v50, %s6465_s26  ;;  %v5960_v49 = vpack.i.bf16 %v2631_v55, %v2630_v17  ;;  %v8516_v1 = vld [vmem:[#allocation2 + $0x48] sm:$0xff]  ;;  %v8518_v4 = vld [vmem:[#allocation2 + $0x50] sm:$0xff]  ;;  %v8526_v14 = vld [vmem:[#allocation2 + $0x60] sm:$0xff] }
 0x3e5   : > { %5936 = vrot.lane.b32.xlu0 %v5935_v52, %s6465_s26  ;;  %v2632_v59 = vld [vmem:[#allocation2 + $0x49] sm:$0xff]  ;;  %v2633_v53 = vld [vmem:[#allocation2 + $0x51] sm:$0xff]  ;;  %v5955_v45 = vpack.i.bf16 %v8518_v4, %v8516_v1  ;;  %v2634_v11 = vld [vmem:[#allocation2 + $0x61] sm:$0xff] }
 0x3e6   : > { %v8524_v22 = vpack.i.bf16 %v2633_v53, %v2632_v59  ;;  %v8528_v7 = vld [vmem:[#allocation2 + $0x68] sm:$0xff]  ;;  %v2698_v63 = vld [vmem:[#allocation2 + $0x78] sm:$0xff]  ;;  %v2699_v3 = vld [vmem:[#allocation2 + $0x80] sm:$0xff] }
 0x3e7   : > { %v2635_v51 = vld [vmem:[#allocation2 + $0x69] sm:$0xff]  ;;  %v5965_v35 = vpack.i.bf16 %v8528_v7, %v8526_v14  ;;  %v2636_v44 = vld [vmem:[#allocation2 + $0x79] sm:$0xff]  ;;  %v2637_v48 = vld [vmem:[#allocation2 + $0x81] sm:$0xff]  ;;  %v5975_v40 = vpack.i.bf16 %v2699_v3, %v2698_v63 }
 0x3e8   : > { %5961 = vrot.lane.b32.xlu1 %v5960_v49, %s6465_s26  ;;  %v8535_v47 = vpack.i.bf16 %v2635_v51, %v2634_v11  ;;  %v8540_v19 = vpack.i.bf16 %v2637_v48, %v2636_v44  ;;  %v2700_v58 = vld [vmem:[#allocation2 + $0x90] sm:$0xff]  ;;  %v2701_v54 = vld [vmem:[#allocation2 + $0x98] sm:$0xff]  ;;  %v2702_v43 = vld [vmem:[#allocation2 + $0xa8] sm:$0xff] }
 0x3e9   : > { %5946 = vrot.lane.b32.xlu0 %v5945_v32, %s6465_s26  ;;  %v2638_v42 = vld [vmem:[#allocation2 + $0x91] sm:$0xff]  ;;  %v2639_v46 = vld [vmem:[#allocation2 + $0x99] sm:$0xff]  ;;  %v5985_v5 = vpack.i.bf16 %v2701_v54, %v2700_v58  ;;  %v2640_v10 = vld [vmem:[#allocation2 + $0xa9] sm:$0xff] }
 0x3ea   : > { %v8545_v20 = vpack.i.bf16 %v2639_v46, %v2638_v42  ;;  %v2703_v60 = vld [vmem:[#allocation2 + $0xb0] sm:$0xff]  ;;  %v2704_v12 = vld [vmem:[#allocation2 + $0xc0] sm:$0xff]  ;;  %v2705_v41 = vld [vmem:[#allocation2 + $0xc8] sm:$0xff] }
 0x3eb   : > { %v2641_v24 = vld [vmem:[#allocation2 + $0xb1] sm:$0xff]  ;;  %v5995_v62 = vpack.i.bf16 %v2703_v60, %v2702_v43  ;;  %v6005_v57 = vpack.i.bf16 %v2705_v41, %v2704_v12  ;;  %v2707_v15 = vld [vmem:[#allocation2 + $0xe0] sm:$0xff]  ;;  %v2643_v2 = vld [vmem:[#allocation2 + $0xc9] sm:$0xff] }
 0x3ec   : > { %5971 = vrot.lane.b32.xlu1 %v8524_v22, %s6465_s26  ;;  %v8550_v28 = vpack.i.bf16 %v2641_v24, %v2640_v10  ;;  %v2706_v21 = vld [vmem:[#allocation2 + $0xd8] sm:$0xff]  ;;  %v8558_v61 = vld [vmem:[#allocation2 + $0x22] sm:$0xff]  ;;  %v6283_v13 = vld [vmem:[%s9393_s5 + $0xd0] sm:$0xff]  }
 0x3ed   : > { %5956 = vrot.lane.b32.xlu0 %v5955_v45, %s6465_s26  ;;  %v8555_v34 = vld [vmem:[#allocation2 + $0x1a] sm:$0xff]  ;;  %v6284_v39 = vld [vmem:[%s9393_s5 + $0x90] sm:$0xff]   ;;  %v6015_v29 = vpack.i.bf16 %v2707_v15, %v2706_v21  ;;  %4913 = vmatprep.subr.bf16.mxu1 %v6283_v13  ;;  %v6289_v50 = vld [vmem:[%s9393_s5 + $0xe8] sm:$0xff]  }
 0x3ee   : > { %v6285_v6 = vld [vmem:[%s9393_s5 + $0xd8] sm:$0xff]   ;;  %v6030_v25 = vpack.i.bf16 %v8558_v61, %v8555_v34  ;;  %v2642_v8 = vld [vmem:[#allocation2 + $0xc1] sm:$0xff]  ;;  %4914 = vmatpush3.bf16.msra.mxu1 %v6284_v39  ;;  %v2708_v30 = vld [vmem:[#allocation2 + $0xf0] sm:$0xff] }
 0x3ef   : > { %v6286_v16 = vld [vmem:[%s9393_s5 + $0x98] sm:$0xff]   ;;  %4915 = vmatprep.subr.bf16.mxu1 %v6285_v6  ;;  %v6287_v9 = vld [vmem:[%s9393_s5 + $0xe0] sm:$0xff]   ;;  %v8580_v37 = vpack.i.bf16 %v2643_v2, %v2642_v8  ;;  %v6290_v59 = vld [vmem:[%s9393_s5 + $0xa8] sm:$0xff]  }
 0x3f0   : > { %5981 = vrot.lane.b32.xlu1 %v8535_v47, %s6465_s26  ;;  %v2709_v33 = vld [vmem:[#allocation2 + $0xf8] sm:$0xff]  ;;  %v6288_v31 = vld [vmem:[%s9393_s5 + $0xa0] sm:$0xff]   ;;  %v6291_v53 = vld [vmem:[%s9393_s5 + $0xf0] sm:$0xff]  }
 0x3f1   : > { %5966 = vrot.lane.b32.xlu0 %v5965_v35, %s6465_s26  ;;  %v8587_v38 = vld [vmem:[#allocation2 + $0x32] sm:$0xff]  ;;  %v8589_v52 = vld [vmem:[#allocation2 + $0x3a] sm:$0xff]  ;;  %v6035_v17 = vpack.i.bf16 %v2709_v33, %v2708_v30  ;;  %v8613_v35 = vld [vmem:[#allocation2 + $0x4a] sm:$0xff] }
 0x3f2   : > { %4916 = vmatpush3.bf16.msra.mxu1 %v6286_v16  ;;  %v6050_v55 = vpack.i.bf16 %v8589_v52, %v8587_v38  ;;  %v2644_v32 = vld [vmem:[#allocation2 + $0xd9] sm:$0xff]  ;;  %v2711_v11 = vld [vmem:[#allocation2 + $0x110] sm:$0xff]  ;;  %v2713_v43 = vld [vmem:[#allocation2 + $0x128] sm:$0xff] }
 0x3f3   : > { %4917 = vmatprep.subr.bf16.mxu1 %v6287_v9  ;;  %v6292_v51 = vld [vmem:[%s9393_s5 + $0xb0] sm:$0xff]   ;;  %v6293_v3 = vld [vmem:[%s9393_s5 + $0xf8] sm:$0xff]   ;;  %v8639_v10 = vld [vmem:[#allocation2 + $0x62] sm:$0xff] }
 0x3f4   : > { %5991 = vrot.lane.b32.xlu1 %v8540_v19, %s6465_s26  ;;  %v8615_v63 = vld [vmem:[#allocation2 + $0x52] sm:$0xff]  ;;  %v8641_v24 = vld [vmem:[#allocation2 + $0x6a] sm:$0xff]  ;;  %v2715_v13 = vld [vmem:[#allocation2 + $0x140] sm:$0xff] }
 0x3f5   : > { %5976 = vrot.lane.b32.xlu0 %v5975_v40, %s6465_s26  ;;  %v6070_v48 = vpack.i.bf16 %v8615_v63, %v8613_v35  ;;  %v2646_v40 = vld [vmem:[#allocation2 + $0xf1] sm:$0xff]  ;;  %v2647_v58 = vld [vmem:[#allocation2 + $0xf9] sm:$0xff]  ;;  %v6090_v12 = vpack.i.bf16 %v8641_v24, %v8639_v10  ;;  %v2648_v41 = vld [vmem:[#allocation2 + $0x109] sm:$0xff] }
 0x3f6   : > { %4918 = vmatpush3.bf16.msra.mxu1 %v6288_v31  ;;  %v6294_v54 = vld [vmem:[%s9393_s5 + $0xb8] sm:$0xff]   ;;  %v8631_v46 = vpack.i.bf16 %v2647_v58, %v2646_v40  ;;  %v2651_v8 = vld [vmem:[#allocation2 + $0x129] sm:$0xff] }
 0x3f7   : > { %4919 = vmatprep.subr.bf16.mxu1 %v6289_v50  ;;  %v8628_v42 = vld [vmem:[#allocation2 + $0x172] sm:$0xff]  ;;  %v8653_v39 = vld [vmem:[#allocation2 + $0x7a] sm:$0xff]  ;;  %v8686_v40 = vld [vmem:[#allocation2 + $0xc2] sm:$0xff] }
 0x3f8   : > { %6001 = vrot.lane.b32.xlu1 %v8545_v20, %s6465_s26  ;;  %v2714_v15 = vld [vmem:[#allocation2 + $0x138] sm:$0xff]  ;;  %v2716_v16 = vld [vmem:[#allocation2 + $0x150] sm:$0xff] }
 0x3f9   : > { %5986 = vrot.lane.b32.xlu0 %v5985_v5, %s6465_s26  ;;  %v2712_v5 = vld [vmem:[#allocation2 + $0x120] sm:$0xff]  ;;  %v6095_v6 = vpack.i.bf16 %v2715_v13, %v2714_v15  ;;  %v2717_v9 = vld [vmem:[#allocation2 + $0x158] sm:$0xff]  ;;  %v8688_v58 = vld [vmem:[#allocation2 + $0xca] sm:$0xff] }
 0x3fa   : > { %4920 = vmatpush3.bf16.msra.mxu1 %v6290_v59  ;;  %v8664_v30 = vld [vmem:[#allocation2 + $0x92] sm:$0xff]  ;;  %v8666_v33 = vld [vmem:[#allocation2 + $0x9a] sm:$0xff]  ;;  %v8675_v59 = vld [vmem:[#allocation2 + $0xaa] sm:$0xff] }
 0x3fb   : > { %4921 = vmatprep.subr.bf16.mxu1 %v6291_v53  ;;  %v6130_v31 = vpack.i.bf16 %v8666_v33, %v8664_v30  ;;  %v2652_v50 = vld [vmem:[#allocation2 + $0x139] sm:$0xff] }
 0x3fc   : > { %6011 = vrot.lane.b32.xlu1 %v8550_v28, %s6465_s26  ;;  %v8677_v53 = vld [vmem:[#allocation2 + $0xb2] sm:$0xff]  ;;  %v8705_v15 = vld [vmem:[#allocation2 + $0xfa] sm:$0xff] }
 0x3fd   : > { %5996 = vrot.lane.b32.xlu0 %v5995_v62, %s6465_s26  ;;  %v6075_v62 = vpack.i.bf16 %v2713_v43, %v2712_v5  ;;  %v2656_v5 = vld [vmem:[#allocation2 + $0x169] sm:$0xff]  ;;  %v2657_v43 = vld [vmem:[#allocation2 + $0x171] sm:$0xff] }
 0x3fe   : > { %4922 = vmatpush3.bf16.msra.mxu1 %v6292_v51  ;;  %v2655_v51 = vld [vmem:[#allocation2 + $0x159] sm:$0xff] }
 0x3ff   : > { %4923 = vmatprep.subr.bf16.mxu1 %v6293_v3 }
 0x400   : > { %6021 = vrot.lane.b32.xlu1 %v5960_v49, %s6465_s26  ;;  %v2645_v49 = vld [vmem:[#allocation2 + $0xe1] sm:$0xff] }
 0x401   : > { %6006 = vrot.lane.b32.xlu0 %v6005_v57, %s6465_s26  ;;  %v8606_v45 = vpack.i.bf16 %v2645_v49, %v2644_v32  ;;  %v2649_v57 = vld [vmem:[#allocation2 + $0x111] sm:$0xff]  ;;  %v2718_v32 = vld [vmem:[#allocation2 + $0x168] sm:$0xff] }
 0x402   : > { %4924 = vmatpush3.bf16.msra.mxu1 %v6294_v54  ;;  %v8649_v21 = vpack.i.bf16 %v2649_v57, %v2648_v41  ;;  %v2719_v49 = vld [vmem:[#allocation2 + $0x170] sm:$0xff]  ;;  %v6170_v54 = vpack.i.bf16 %v8688_v58, %v8686_v40  ;;  %v6165_v41 = vpack.i.bf16 %v2657_v43, %v2656_v5 }
 0x404   : > { %6031 = vrot.lane.b32.xlu1 %v6030_v25, %s6465_s26  ;;  %v2650_v25 = vld [vmem:[#allocation2 + $0x121] sm:$0xff] }
 0x405   : > { %6016 = vrot.lane.b32.xlu0 %v6015_v29, %s6465_s26  ;;  %v6105_v2 = vpack.i.bf16 %v2651_v8, %v2650_v25  ;;  %v2776_v8 = vld [vmem:[#allocation2 + $0x122] sm:$0xff] }
 0x408   : > { %6041 = vrot.lane.b32.xlu1 %v8524_v22, %s6465_s26  ;;  %v2710_v22 = vld [vmem:[#allocation2 + $0x108] sm:$0xff] }
 0x409   : > { %6026 = vrot.lane.b32.xlu0 %v8580_v37, %s6465_s26  ;;  %v6055_v44 = vpack.i.bf16 %v2711_v11, %v2710_v22  ;;  %v6150_v22 = vpack.i.bf16 %v8677_v53, %v8675_v59  ;;  %v2654_v11 = vld [vmem:[#allocation2 + $0x151] sm:$0xff] }
 0x40a   : > { %v6145_v3 = vpack.i.bf16 %v2655_v51, %v2654_v11  ;;  %v2783_v51 = vld [vmem:[#allocation2 + $0x172] sm:$0xff] }
 0x40c   : > { %6051 = vrot.lane.b32.xlu1 %v6050_v55, %s6465_s26 }
 0x40d   : > { %6036 = vrot.lane.b32.xlu0 %v6035_v17, %s6465_s26  ;;  %v2653_v17 = vld [vmem:[#allocation2 + $0x141] sm:$0xff] }
 0x40e   : > { %v6125_v55 = vpack.i.bf16 %v2653_v17, %v2652_v50  ;;  %v2780_v50 = vld [vmem:[#allocation2 + $0x152] sm:$0xff]  ;;  %v2781_v17 = vld [vmem:[#allocation2 + $0x15a] sm:$0xff] }
 0x40f   : > { %v6230_v11 = vpack.i.bf16 %v2781_v17, %v2780_v50 }
 0x410   : > { %6061 = vrot.lane.b32.xlu1 %v8535_v47, %s6465_s26  ;;  %v8633_v47 = vld [vmem:[#allocation2 + $0x16a] sm:$0xff] }
 0x411   : > { %6046 = vrot.lane.b32.xlu0 %v8606_v45, %s6465_s26  ;;  %v3592_v60 = vpack.c.bf16 %v8628_v42, %v8633_v47  ;;  %v4503_v42 = vld [vmem:[%s9395_s7 + $0x20] sm:$0xff]  ;;  %v4504_v47 = vld [vmem:[%s9395_s7 + $0x28] sm:$0xff] }
 0x414   : > { %6071 = vrot.lane.b32.xlu1 %v6070_v48, %s6465_s26  ;;  %v2721_v48 = vld [vmem:[#allocation2 + $0x188] sm:$0xff] }
 0x415   : > { %6056 = vrot.lane.b32.xlu0 %v6055_v44, %s6465_s26  ;;  %v2720_v44 = vld [vmem:[#allocation2 + $0x180] sm:$0xff] }
 0x418   : > { %6081 = vrot.lane.b32.xlu1 %v8540_v19, %s6465_s26  ;;  %v8655_v19 = vld [vmem:[#allocation2 + $0x82] sm:$0xff] }
 0x419   : > { %6066 = vrot.lane.b32.xlu0 %v8631_v46, %s6465_s26  ;;  %v6110_v29 = vpack.i.bf16 %v8655_v19, %v8653_v39 }
 0x41c   : > { %6091 = vrot.lane.b32.xlu1 %v6090_v12, %s6465_s26  ;;  %v8697_v12 = vld [vmem:[#allocation2 + $0xe2] sm:$0xff] }
 0x41d   : > { %6076 = vrot.lane.b32.xlu0 %v6075_v62, %s6465_s26  ;;  %v8695_v62 = vld [vmem:[#allocation2 + $0xda] sm:$0xff] }
 0x41e   : > { %v6180_v57 = vpack.i.bf16 %v8697_v12, %v8695_v62 }
 0x420   : > { %6101 = vrot.lane.b32.xlu1 %v8545_v20, %s6465_s26  ;;  %v6115_v20 = vpack.i.bf16 %v2717_v9, %v2716_v16  ;;  %v2777_v16 = vld [vmem:[#allocation2 + $0x12a] sm:$0xff] }
 0x421   : > { %6086 = vrot.lane.b32.xlu0 %v8649_v21, %s6465_s26  ;;  %v6210_v9 = vpack.i.bf16 %v2777_v16, %v2776_v8 }
 0x424   : > { %6111 = vrot.lane.b32.xlu1 %v6110_v29, %s6465_s26  ;;  %v2775_v29 = vld [vmem:[#allocation2 + $0x112] sm:$0xff] }
 0x425   : > { %6096 = vrot.lane.b32.xlu0 %v6095_v6, %s6465_s26  ;;  %v2774_v6 = vld [vmem:[#allocation2 + $0x10a] sm:$0xff] }
 0x426   : > { %v6200_v25 = vpack.i.bf16 %v2775_v29, %v2774_v6  ;;  %v2847_v6 = vld [vmem:[#allocation2 + $0x181] sm:$0xff]  ;;  %v2848_v29 = vld [vmem:[#allocation2 + $0x189] sm:$0xff] }
 0x427   : > { %v6235_v50 = vpack.i.bf16 %v2848_v29, %v2847_v6 }
 0x428   : > { %6121 = vrot.lane.b32.xlu1 %v8550_v28, %s6465_s26  ;;  %v6135_v28 = vpack.i.bf16 %v2719_v49, %v2718_v32  ;;  %v5942_v32 = vpop.permute.xlu1 %5941 }
 0x429   : > { %6106 = vrot.lane.b32.xlu0 %v6105_v2, %s6465_s26  ;;  %v5943_v49 = vunpack.i.l.bf16 %v5942_v32 }
 0x42c   : > { %6131 = vrot.lane.b32.xlu1 %v6130_v31, %s6465_s26  ;;  %v2779_v31 = vld [vmem:[#allocation2 + $0x142] sm:$0xff] }
 0x42d   : > { %6116 = vrot.lane.b32.xlu0 %v6115_v20, %s6465_s26  ;;  %v2778_v20 = vld [vmem:[#allocation2 + $0x13a] sm:$0xff] }
 0x430   : > { %6141 = vrot.lane.b32.xlu1 %v8580_v37, %s6465_s26  ;;  %v6155_v37 = vpack.i.bf16 %v2721_v48, %v2720_v44 }
 0x431   : > { %6126 = vrot.lane.b32.xlu0 %v6125_v55, %s6465_s26 }
 0x434   : > { %6151 = vrot.lane.b32.xlu1 %v6150_v22, %s6465_s26  ;;  %v2595_v22 = vld [vmem:[#allocation2 + $0x8] sm:$0xff] }
 0x435   : > { %6136 = vrot.lane.b32.xlu0 %v6135_v28, %s6465_s26  ;;  %v2594_v28 = vld [vmem:[#allocation2] sm:$0xff] }
 0x438   : > { %6161 = vrot.lane.b32.xlu1 %v8606_v45, %s6465_s26  ;;  %v8703_v45 = vld [vmem:[#allocation2 + $0xf2] sm:$0xff] }
 0x439   : > { %6146 = vrot.lane.b32.xlu0 %v6145_v3, %s6465_s26  ;;  %v6190_v13 = vpack.i.bf16 %v8705_v15, %v8703_v45 }
 0x43c   : > { %6171 = vrot.lane.b32.xlu1 %v6170_v54, %s6465_s26  ;;  %v2659_v54 = vld [vmem:[#allocation2 + $0xa] sm:$0xff] }
 0x43d   : > { %6156 = vrot.lane.b32.xlu0 %v6155_v37, %s6465_s26  ;;  %v2658_v37 = vld [vmem:[#allocation2 + $0x2] sm:$0xff] }
 0x440   : > { %6181 = vrot.lane.b32.xlu1 %v6180_v57, %s6465_s26 }
 0x441   : > { %6166 = vrot.lane.b32.xlu0 %v6165_v41, %s6465_s26 }
 0x444   : > { %6191 = vrot.lane.b32.xlu1 %v6190_v13, %s6465_s26 }
 0x445   : > { %6176 = vrot.lane.b32.xlu0 %v8631_v46, %s6465_s26  ;;  %v6220_v46 = vpack.i.bf16 %v2779_v31, %v2778_v20  ;;  %v2849_v20 = vld [vmem:[#allocation2 + $0x199] sm:$0xff]  ;;  %v2850_v31 = vld [vmem:[#allocation2 + $0x1a1] sm:$0xff] }
 0x448   : > { %6201 = vrot.lane.b32.xlu1 %v6200_v25, %s6465_s26  ;;  %v2785_v25 = vld [vmem:[#allocation2 + $0x18a] sm:$0xff] }
 0x449   : > { %6186 = vrot.lane.b32.xlu0 %v8649_v21, %s6465_s26  ;;  %v5944_v21 = vunpack.i.h.bf16 %v5942_v32 }
 0x44b   : > { %v3396_v44 = vsel %vm1997_vm12, %v2595_v22, %v5944_v21 }
 0x44c   : > { %6211 = vrot.lane.b32.xlu1 %v6210_v9, %s6465_s26 }
 0x44d   : > { %6196 = vrot.lane.b32.xlu0 %v6105_v2, %s6465_s26  ;;  %v2782_v2 = vld [vmem:[#allocation2 + $0x16a] sm:$0xff] }
 0x44e   : > { %v6240_v13 = vpack.i.bf16 %v2783_v51, %v2782_v2  ;;  %v6245_v2 = vpack.i.bf16 %v2850_v31, %v2849_v20 }
 0x450   : > { %6221 = vrot.lane.b32.xlu1 %v6220_v46, %s6465_s26 }
 0x451   : > { %6206 = vrot.lane.b32.xlu0 %v6125_v55, %s6465_s26  ;;  %v3395_v55 = vsel %vm1997_vm12, %v2594_v28, %v5943_v49 }
 0x452   : > { %v3523_v8 = vpack.c.bf16 %v3396_v44, %v3395_v55 }
 0x454   : > { %6231 = vrot.lane.b32.xlu1 %v6230_v11, %s6465_s26 }
 0x455   : > { %6216 = vrot.lane.b32.xlu0 %v6145_v3, %s6465_s26  ;;  %v2784_v3 = vld [vmem:[#allocation2 + $0x182] sm:$0xff] }
 0x456   : > { %v5952_v57 = vpop.permute.xlu1 %5951  ;;  %v6250_v28 = vpack.i.bf16 %v2785_v25, %v2784_v3 }
 0x457   : > { %v5937_v48 = vpop.permute.xlu0 %5936  ;;  %v5954_v22 = vunpack.i.h.bf16 %v5952_v57  ;;  %v5953_v11 = vunpack.i.l.bf16 %v5952_v57 }
 0x458   : > { %v5939_v5 = vunpack.i.h.bf16 %v5937_v48  ;;  %v5938_v43 = vunpack.i.l.bf16 %v5937_v48  ;;  %6241 = vrot.lane.b32.xlu1 %v6240_v13, %s6465_s26 }
 0x459   : > { %6226 = vrot.lane.b32.xlu0 %v6165_v41, %s6465_s26  ;;  %v6295_v41 = vld [vmem:[%s9393_s5 + $0x108] sm:$0xff]   ;;  %v3397_v57 = vsel %vm1997_vm12, %v8492_v27, %v5953_v11  ;;  %v6297_v27 = vld [vmem:[%s9393_s5 + $0x118] sm:$0xff]  }
 0x45a   : > { %v3427_v16 = vsel %vm1997_vm12, %v2658_v37, %v5938_v43  ;;  %v3428_v9 = vsel %vm1997_vm12, %v2659_v54, %v5939_v5  ;;  %v5962_v49 = vpop.permute.xlu1 %5961  ;;  %v6296_v43 = vld [vmem:[%s9393_s5 + $0x110] sm:$0xff]  }
 0x45b   : > { %v5947_v46 = vpop.permute.xlu0 %5946  ;;  %v3524_v17 = vpack.c.bf16 %v3428_v9, %v3427_v16  ;;  %v5964_v3 = vunpack.i.h.bf16 %v5962_v49  ;;  %v5963_v25 = vunpack.i.l.bf16 %v5962_v49 }
 0x45c   : > { %v5949_v32 = vunpack.i.h.bf16 %v5947_v46  ;;  %v5948_v21 = vunpack.i.l.bf16 %v5947_v46  ;;  %6251 = vrot.lane.b32.xlu1 %v6250_v28, %s6465_s26 }
 0x45d   : > { %6236 = vrot.lane.b32.xlu0 %v6235_v50, %s6465_s26  ;;  %3978 = vmatprep.mubr.bf16.mxu0 %v3524_v17  ;;  %v3400_v20 = vsel %vm1997_vm12, %v8510_v36, %v5964_v3 }
 0x45e   : > { %3979 = vmatmul.mubr.bf16.vlgmr.msra.gmra.mrb[16].mxu0 %v3523_v8  ;;  %v3429_v51 = vsel %vm1997_vm12, %v8555_v34, %v5948_v21  ;;  %v3430_v44 = vsel %vm1997_vm12, %v8558_v61, %v5949_v32  ;;  %v5972_v5 = vpop.permute.xlu1 %5971  ;;  %v3398_v34 = vsel %vm1997_vm12, %v8494_v18, %v5954_v22 }
 0x45f   : > { %5137 = vmatpush3.bf16.msra.mxu0 %v8440_v56  ;;  %v5957_v55 = vpop.permute.xlu0 %5956  ;;  %v3529_v48 = vpack.c.bf16 %v3430_v44, %v3429_v51  ;;  %v3528_v29 = vpack.c.bf16 %v3398_v34, %v3397_v57  ;;  %v5974_v17 = vunpack.i.h.bf16 %v5972_v5  ;;  %v5973_v49 = vunpack.i.l.bf16 %v5972_v5 }
 0x460   : > { %v5959_v37 = vunpack.i.h.bf16 %v5957_v55  ;;  %v5958_v54 = vunpack.i.l.bf16 %v5957_v55  ;;  %5138 = vmatprep.subr.bf16.mxu0 %v6295_v41 }
 0x461   : > { %3986 = vmatprep.mubr.bf16.mxu0 %v3529_v48  ;;  %6246 = vrot.lane.b32.xlu0 %v6245_v2, %s6465_s26 }
 0x462   : > { %v3431_v56 = vsel %vm1997_vm12, %v8587_v38, %v5958_v54  ;;  %v3432_v61 = vsel %vm1997_vm12, %v8589_v52, %v5959_v37  ;;  %v5982_v6 = vpop.permute.xlu1 %5981  ;;  %v3399_v52 = vsel %vm1997_vm12, %v8508_v26, %v5963_v25 }
 0x463   : > { %v5967_v13 = vpop.permute.xlu0 %5966  ;;  %5139 = vmatpush3.bf16.msra.mxu0 %v6295_v41  ;;  %v3534_v18 = vpack.c.bf16 %v3432_v61, %v3431_v56  ;;  %v3533_v21 = vpack.c.bf16 %v3400_v20, %v3399_v52  ;;  %v5984_v48 = vunpack.i.h.bf16 %v5982_v6  ;;  %v5983_v37 = vunpack.i.l.bf16 %v5982_v6 }
 0x464   : > { %5140 = vmatprep.subr.bf16.mxu0 %v6296_v43  ;;  %v5969_v8 = vunpack.i.h.bf16 %v5967_v13  ;;  %v5968_v16 = vunpack.i.l.bf16 %v5967_v13 }
 0x465   : > { %v3403_v6 = vsel %vm1997_vm12, %v8526_v14, %v5983_v37  ;;  %v2725_v37 = vld [vmem:[#allocation2 + $0x39] sm:$0xff] }
 0x466   : > { %3987 = vmatmul.mubr.bf16.gmra.mrb[20].mxu0 %v3528_v29  ;;  %v8753_v38 = vpop.permute.xlu1 %5991  ;;  %v3433_v31 = vsel %vm1997_vm12, %v8613_v35, %v5968_v16  ;;  %v3434_v46 = vsel %vm1997_vm12, %v8615_v63, %v5969_v8  ;;  %v3401_v35 = vsel %vm1997_vm12, %v8516_v1, %v5973_v49  ;;  %v3402_v63 = vsel %vm1997_vm12, %v8518_v4, %v5974_v17  ;;  %v8809_v49 = vld [vmem:[#allocation2 + $0x80] sm:$0xff] }
 0x467   : > { %v5977_v9 = vpop.permute.xlu0 %5976  ;;  %3994 = vmatprep.mubr.bf16.mxu0 %v3534_v18  ;;  %5141 = vmatpush3.bf16.msra.mxu0 %v6296_v43  ;;  %v3539_v22 = vpack.c.bf16 %v3434_v46, %v3433_v31  ;;  %v3538_v5 = vpack.c.bf16 %v3402_v63, %v3401_v35  ;;  %v3404_v29 = vsel %vm1997_vm12, %v8528_v7, %v5984_v48  ;;  %v5994_v7 = vunpack.i.h.bf16 %v8753_v38  ;;  %v2724_v48 = vld [vmem:[#allocation2 + $0x31] sm:$0xff] }
 0x468   : > { %5142 = vmatprep.subr.bf16.mxu0 %v6297_v27  ;;  %v5979_v28 = vunpack.i.h.bf16 %v5977_v9  ;;  %v5978_v41 = vunpack.i.l.bf16 %v5977_v9  ;;  %v3543_v14 = vpack.c.bf16 %v3404_v29, %v3403_v6  ;;  %v5993_v16 = vunpack.i.l.bf16 %v8753_v38  ;;  %v2791_v6 = vld [vmem:[#allocation2 + $0x60] sm:$0xff]  ;;  %v2792_v29 = vld [vmem:[#allocation2 + $0x68] sm:$0xff] }
 0x46a   : > { %v8763_v32 = vpop.permute.xlu1 %6001  ;;  %v3435_v51 = vsel %vm1997_vm12, %v8639_v10, %v5978_v41  ;;  %v3436_v44 = vsel %vm1997_vm12, %v8641_v24, %v5979_v28 }
 0x46b   : > { %v5987_v50 = vpop.permute.xlu0 %5986  ;;  %5143 = vmatpush3.bf16.msra.mxu0 %v6297_v27  ;;  %v3544_v43 = vpack.c.bf16 %v3436_v44, %v3435_v51 }
 0x46c   : > { %v5989_v57 = vunpack.i.h.bf16 %v5987_v50  ;;  %v5988_v34 = vunpack.i.l.bf16 %v5987_v50 }
 0x46e   : > { %3995 = vmatmul.mubr.bf16.gmra.mrb[24].mxu0 %v3533_v21  ;;  %v8767_v2 = vpop.permute.xlu1 %6011  ;;  %v3437_v25 = vsel %vm1997_vm12, %v8653_v39, %v5988_v34  ;;  %v3438_v18 = vsel %vm1997_vm12, %v8655_v19, %v5989_v57  ;;  %v8807_v21 = vld [vmem:[#allocation2 + $0x78] sm:$0xff]  ;;  %v6004_v34 = vunpack.i.h.bf16 %v8763_v32 }
 0x46f   : > { %v8765_v11 = vpop.permute.xlu0 %5996  ;;  %4002 = vmatprep.mubr.bf16.mxu0 %v3539_v22  ;;  %v3549_v39 = vpack.c.bf16 %v3438_v18, %v3437_v25  ;;  %v3405_v22 = vsel %vm1997_vm12, %v8807_v21, %v5993_v16  ;;  %v8831_v25 = vld [vmem:[#allocation2 + $0x90] sm:$0xff]  ;;  %v8833_v18 = vld [vmem:[#allocation2 + $0x98] sm:$0xff] }
 0x470   : > { %v5999_v20 = vunpack.i.h.bf16 %v8765_v11  ;;  %v5998_v19 = vunpack.i.l.bf16 %v8765_v11  ;;  %v3406_v11 = vsel %vm1997_vm12, %v8809_v49, %v5994_v7 }
 0x471   : > { %v3548_v57 = vpack.c.bf16 %v3406_v11, %v3405_v22 }
 0x472   : > { %v6022_v54 = vpop.permute.xlu1 %6021  ;;  %v3439_v51 = vsel %vm1997_vm12, %v8664_v30, %v5998_v19  ;;  %v3440_v44 = vsel %vm1997_vm12, %v8666_v33, %v5999_v20  ;;  %v2727_v20 = vld [vmem:[#allocation2 + $0x51] sm:$0xff] }
 0x473   : > { %v8777_v55 = vpop.permute.xlu0 %6006  ;;  %v6024_v56 = vunpack.i.h.bf16 %v6022_v54  ;;  %v6023_v1 = vunpack.i.l.bf16 %v6022_v54  ;;  %v3554_v30 = vpack.c.bf16 %v3440_v44, %v3439_v51  ;;  %v8857_v51 = vld [vmem:[#allocation2 + $0xa8] sm:$0xff]  ;;  %v8859_v44 = vld [vmem:[#allocation2 + $0xb0] sm:$0xff] }
 0x474   : > { %v6008_v33 = vunpack.i.l.bf16 %v8777_v55 }
 0x475   : > { %v3491_v4 = vsel %vm1997_vm12, %v8508_v26, %v6023_v1  ;;  %v3492_v10 = vsel %vm1997_vm12, %v8510_v36, %v6024_v56  ;;  %v6003_v56 = vunpack.i.l.bf16 %v8763_v32 }
 0x476   : > { %4003 = vmatmul.mubr.bf16.gmra.mrb[28].mxu0 %v3538_v5  ;;  %v6032_v24 = vpop.permute.xlu1 %6031  ;;  %v3526_v13 = vpack.c.bf16 %v3492_v10, %v3491_v4  ;;  %v6009_v10 = vunpack.i.h.bf16 %v8777_v55 }
 0x477   : > { %v8779_v61 = vpop.permute.xlu0 %6016  ;;  %4010 = vmatprep.mubr.bf16.mxu0 %v3544_v43  ;;  %v6034_v27 = vunpack.i.h.bf16 %v6032_v24  ;;  %v6033_v3 = vunpack.i.l.bf16 %v6032_v24  ;;  %v3407_v55 = vsel %vm1997_vm12, %v8831_v25, %v6003_v56  ;;  %v2729_v56 = vld [vmem:[#allocation2 + $0x69] sm:$0xff] }
 0x478   : > { %4139 = vmatprep.mubr.bf16.mxu1 %v3526_v13 }
 0x479   : > { %v3460_v26 = vsel %vm1997_vm12, %v8504_v0, %v6034_v27  ;;  %v3459_v36 = vsel %vm1997_vm12, %v8500_v23, %v6033_v3  ;;  %v2789_v0 = vld [vmem:[#allocation2 + $0x48] sm:$0xff]  ;;  %v2790_v23 = vld [vmem:[#allocation2 + $0x50] sm:$0xff] }
 0x47a   : > { %v3525_v9 = vpack.c.bf16 %v3460_v26, %v3459_v36  ;;  %v6042_v52 = vpop.permute.xlu1 %6041 }
 0x47b   : > { %v8797_v8 = vpop.permute.xlu0 %6026  ;;  %v6044_v31 = vunpack.i.h.bf16 %v6042_v52  ;;  %v6043_v46 = vunpack.i.l.bf16 %v6042_v52  ;;  %v3442_v52 = vsel %vm1997_vm12, %v8677_v53, %v6009_v10  ;;  %v6018_v53 = vunpack.i.l.bf16 %v8779_v61 }
 0x47c   : > { %4140 = vmatmul.mubr.bf16.vlgmr.msra.gmra.mrb[48].mxu1 %v3525_v9  ;;  %v3441_v9 = vsel %vm1997_vm12, %v8675_v59, %v6008_v33  ;;  %v6029_v33 = vunpack.i.h.bf16 %v8797_v8 }
 0x47d   : > { %v3493_v17 = vsel %vm1997_vm12, %v2789_v0, %v6043_v46  ;;  %v3494_v38 = vsel %vm1997_vm12, %v2790_v23, %v6044_v31  ;;  %v6014_v23 = vunpack.i.h.bf16 %v8767_v2  ;;  %v3559_v59 = vpack.c.bf16 %v3442_v52, %v3441_v9 }
 0x47e   : > { %4011 = vmatmul.mubr.bf16.gmra.mrb[32].mxu0 %v3543_v14  ;;  %v6052_v28 = vpop.permute.xlu1 %6051  ;;  %v3531_v41 = vpack.c.bf16 %v3494_v38, %v3493_v17  ;;  %v3408_v14 = vsel %vm1997_vm12, %v8833_v18, %v6004_v34  ;;  %v6013_v17 = vunpack.i.l.bf16 %v8767_v2  ;;  %v2728_v34 = vld [vmem:[#allocation2 + $0x61] sm:$0xff] }
 0x47f   : > { %v8803_v50 = vpop.permute.xlu0 %6036  ;;  %4018 = vmatprep.mubr.bf16.mxu0 %v3549_v39  ;;  %v6054_v35 = vunpack.i.h.bf16 %v6052_v28  ;;  %v6053_v63 = vunpack.i.l.bf16 %v6052_v28  ;;  %v2726_v39 = vld [vmem:[#allocation2 + $0x49] sm:$0xff]  ;;  %v3553_v0 = vpack.c.bf16 %v3408_v14, %v3407_v55  ;;  %v8883_v55 = vld [vmem:[#allocation2 + $0xc0] sm:$0xff] }
 0x480   : > { %4147 = vmatprep.mubr.bf16.mxu1 %v3531_v41  ;;  %v6019_v41 = vunpack.i.h.bf16 %v8779_v61  ;;  %v3409_v61 = vsel %vm1997_vm12, %v8857_v51, %v6013_v17  ;;  %v8885_v14 = vld [vmem:[#allocation2 + $0xc8] sm:$0xff] }
 0x481   : > { %v3461_v5 = vsel %vm1997_vm12, %v2724_v48, %v6053_v63  ;;  %v3462_v43 = vsel %vm1997_vm12, %v2725_v37, %v6054_v35  ;;  %v3412_v9 = vsel %vm1997_vm12, %v8885_v14, %v6029_v33 }
 0x482   : > { %v6062_v1 = vpop.permute.xlu1 %6061  ;;  %v3530_v4 = vpack.c.bf16 %v3462_v43, %v3461_v5  ;;  %v3410_v5 = vsel %vm1997_vm12, %v8859_v44, %v6014_v23 }
 0x483   : > { %v8819_v54 = vpop.permute.xlu0 %6046  ;;  %v6064_v24 = vunpack.i.h.bf16 %v6062_v1  ;;  %v6063_v13 = vunpack.i.l.bf16 %v6062_v1  ;;  %v3558_v10 = vpack.c.bf16 %v3410_v5, %v3409_v61 }
 0x484   : > { %4148 = vmatmul.mubr.bf16.gmra.mrb[52].mxu1 %v3530_v4 }
 0x485   : > { %v3495_v3 = vsel %vm1997_vm12, %v2791_v6, %v6063_v13  ;;  %v3496_v32 = vsel %vm1997_vm12, %v2792_v29, %v6064_v24  ;;  %v6028_v24 = vunpack.i.l.bf16 %v8797_v8  ;;  %v6039_v29 = vunpack.i.h.bf16 %v8803_v50 }
 0x486   : > { %4019 = vmatmul.mubr.bf16.gmra.mrb[36].mxu0 %v3548_v57  ;;  %v6072_v26 = vpop.permute.xlu1 %6071  ;;  %v3536_v36 = vpack.c.bf16 %v3496_v32, %v3495_v3 }
 0x487   : > { %v8827_v27 = vpop.permute.xlu0 %6056  ;;  %4026 = vmatprep.mubr.bf16.mxu0 %v3554_v30  ;;  %v6074_v7 = vunpack.i.h.bf16 %v6072_v26  ;;  %v6073_v16 = vunpack.i.l.bf16 %v6072_v26 }
 0x488   : > { %4155 = vmatprep.mubr.bf16.mxu1 %v3536_v36 }
 0x489   : > { %v3463_v31 = vsel %vm1997_vm12, %v2726_v39, %v6073_v16  ;;  %v3464_v46 = vsel %vm1997_vm12, %v2727_v20, %v6074_v7  ;;  %v2730_v20 = vld [vmem:[#allocation2 + $0x79] sm:$0xff] }
 0x48a   : > { %v6082_v38 = vpop.permute.xlu1 %6081  ;;  %v3535_v28 = vpack.c.bf16 %v3464_v46, %v3463_v31  ;;  %v2731_v31 = vld [vmem:[#allocation2 + $0x81] sm:$0xff] }
 0x48b   : > { %v8843_v19 = vpop.permute.xlu0 %6066  ;;  %v6084_v22 = vunpack.i.h.bf16 %v6082_v38  ;;  %v6083_v11 = vunpack.i.l.bf16 %v6082_v38  ;;  %v6049_v38 = vunpack.i.h.bf16 %v8819_v54 }
 0x48c   : > { %4156 = vmatmul.mubr.bf16.gmra.mrb[56].mxu1 %v3535_v28  ;;  %v6048_v28 = vunpack.i.l.bf16 %v8819_v54  ;;  %v6069_v33 = vunpack.i.h.bf16 %v8843_v19 }
 0x48d   : > { %v3497_v63 = vsel %vm1997_vm12, %v8807_v21, %v6083_v11  ;;  %v3498_v2 = vsel %vm1997_vm12, %v8809_v49, %v6084_v22  ;;  %v3443_v21 = vsel %vm1997_vm12, %v8686_v40, %v6018_v53  ;;  %v3444_v49 = vsel %vm1997_vm12, %v8688_v58, %v6019_v41 }
 0x48e   : > { %4027 = vmatmul.mubr.bf16.gmra.mrb[40].mxu0 %v3553_v0  ;;  %v6092_v48 = vpop.permute.xlu1 %6091  ;;  %v3541_v37 = vpack.c.bf16 %v3498_v2, %v3497_v63  ;;  %v3564_v40 = vpack.c.bf16 %v3444_v49, %v3443_v21  ;;  %v6038_v58 = vunpack.i.l.bf16 %v8803_v50  ;;  %v3411_v50 = vsel %vm1997_vm12, %v8883_v55, %v6028_v24  ;;  %v2732_v49 = vld [vmem:[#allocation2 + $0x91] sm:$0xff] }
 0x48f   : > { %v8851_v35 = vpop.permute.xlu0 %6076  ;;  %4034 = vmatprep.mubr.bf16.mxu0 %v3559_v59  ;;  %v6094_v43 = vunpack.i.h.bf16 %v6092_v48  ;;  %v6093_v57 = vunpack.i.l.bf16 %v6092_v48  ;;  %v3563_v17 = vpack.c.bf16 %v3412_v9, %v3411_v50  ;;  %v6059_v53 = vunpack.i.h.bf16 %v8827_v27  ;;  %v8909_v48 = vld [vmem:[#allocation2 + $0xd8] sm:$0xff]  ;;  %v8943_v9 = vld [vmem:[#allocation2 + $0x10a] sm:$0xff] }
 0x490   : > { %4163 = vmatprep.mubr.bf16.mxu1 %v3541_v37  ;;  %v8911_v37 = vld [vmem:[#allocation2 + $0xe0] sm:$0xff]  ;;  %v6068_v24 = vunpack.i.l.bf16 %v8843_v19 }
 0x491   : > { %v3465_v4 = vsel %vm1997_vm12, %v2728_v34, %v6093_v57  ;;  %v3466_v30 = vsel %vm1997_vm12, %v2729_v56, %v6094_v43  ;;  %v3414_v43 = vsel %vm1997_vm12, %v8911_v37, %v6049_v38  ;;  %v2733_v34 = vld [vmem:[#allocation2 + $0x99] sm:$0xff] }
 0x492   : > { %v6102_v13 = vpop.permute.xlu1 %6101  ;;  %v3540_v6 = vpack.c.bf16 %v3466_v30, %v3465_v4 }
 0x493   : > { %v8869_v1 = vpop.permute.xlu0 %6086  ;;  %v6104_v3 = vunpack.i.h.bf16 %v6102_v13  ;;  %v6103_v32 = vunpack.i.l.bf16 %v6102_v13 }
 0x494   : > { %4164 = vmatmul.mubr.bf16.gmra.mrb[60].mxu1 %v3540_v6 }
 0x495   : > { %v3499_v36 = vsel %vm1997_vm12, %v8831_v25, %v6103_v32  ;;  %v3500_v8 = vsel %vm1997_vm12, %v8833_v18, %v6104_v3  ;;  %v3445_v25 = vsel %vm1997_vm12, %v8695_v62, %v6038_v58  ;;  %v3446_v18 = vsel %vm1997_vm12, %v8697_v12, %v6039_v29 }
 0x496   : > { %4035 = vmatmul.mubr.bf16.gmra.mrb[44].mxu0 %v3558_v10  ;;  %v6112_v7 = vpop.permute.xlu1 %6111  ;;  %v3546_v16 = vpack.c.bf16 %v3500_v8, %v3499_v36  ;;  %v3569_v62 = vpack.c.bf16 %v3446_v18, %v3445_v25  ;;  %v6058_v12 = vunpack.i.l.bf16 %v8827_v27  ;;  %v3413_v27 = vsel %vm1997_vm12, %v8909_v48, %v6048_v28  ;;  %v8935_v36 = vld [vmem:[#allocation2 + $0xf0] sm:$0xff]  ;;  %v8937_v8 = vld [vmem:[#allocation2 + $0xf8] sm:$0xff] }
 0x497   : > { %v8877_v26 = vpop.permute.xlu0 %6096  ;;  %4042 = vmatprep.mubr.bf16.mxu0 %v3564_v40  ;;  %v6114_v52 = vunpack.i.h.bf16 %v6112_v7  ;;  %v6113_v39 = vunpack.i.l.bf16 %v6112_v7  ;;  %v3568_v10 = vpack.c.bf16 %v3414_v43, %v3413_v27  ;;  %v6079_v40 = vunpack.i.h.bf16 %v8851_v35  ;;  %v2734_v18 = vld [vmem:[#allocation2 + $0xa9] sm:$0xff] }
 0x498   : > { %4171 = vmatprep.mubr.bf16.mxu1 %v3546_v16  ;;  %v3416_v50 = vsel %vm1997_vm12, %v8937_v8, %v6069_v33  ;;  %v8967_v43 = vld [vmem:[#allocation2 + $0x110] sm:$0xff] }
 0x499   : > { %v3467_v0 = vsel %vm1997_vm12, %v2730_v20, %v6113_v39  ;;  %v3468_v23 = vsel %vm1997_vm12, %v2731_v31, %v6114_v52  ;;  %v8945_v52 = vld [vmem:[#allocation2 + $0x112] sm:$0xff] }
 0x49a   : > { %v6122_v59 = vpop.permute.xlu1 %6121  ;;  %v3545_v41 = vpack.c.bf16 %v3468_v23, %v3467_v0  ;;  %v3450_v25 = vsel %vm1997_vm12, %v8945_v52, %v6079_v40  ;;  %v2735_v20 = vld [vmem:[#allocation2 + $0xb1] sm:$0xff] }
 0x49b   : > { %v8895_v46 = vpop.permute.xlu0 %6106  ;;  %v6124_v22 = vunpack.i.h.bf16 %v6122_v59  ;;  %v6123_v11 = vunpack.i.l.bf16 %v6122_v59 }
 0x49c   : > { %4172 = vmatmul.mubr.bf16.gmra.mrb[64].mxu1 %v3545_v41  ;;  %v6089_v41 = vunpack.i.h.bf16 %v8869_v1 }
 0x49d   : > { %v3501_v2 = vsel %vm1997_vm12, %v8857_v51, %v6123_v11  ;;  %v3502_v54 = vsel %vm1997_vm12, %v8859_v44, %v6124_v22  ;;  %v3447_v51 = vsel %vm1997_vm12, %v8703_v45, %v6058_v12  ;;  %v3448_v44 = vsel %vm1997_vm12, %v8705_v15, %v6059_v53 }
 0x49e   : > { %4043 = vmatmul.mubr.bf16.gmra.mrb[48].mxu0 %v3563_v17  ;;  %v6132_v61 = vpop.permute.xlu1 %6131  ;;  %v3551_v5 = vpack.c.bf16 %v3502_v54, %v3501_v2  ;;  %v3574_v45 = vpack.c.bf16 %v3448_v44, %v3447_v51  ;;  %v6078_v15 = vunpack.i.l.bf16 %v8851_v35  ;;  %v3415_v35 = vsel %vm1997_vm12, %v8935_v36, %v6068_v24  ;;  %v8973_v44 = vld [vmem:[#allocation2 + $0x122] sm:$0xff] }
 0x49f   : > { %v8903_v63 = vpop.permute.xlu0 %6116  ;;  %4050 = vmatprep.mubr.bf16.mxu0 %v3569_v62  ;;  %v6134_v57 = vunpack.i.h.bf16 %v6132_v61  ;;  %v6133_v21 = vunpack.i.l.bf16 %v6132_v61  ;;  %v3573_v28 = vpack.c.bf16 %v3416_v50, %v3415_v35  ;;  %v6088_v62 = vunpack.i.l.bf16 %v8869_v1  ;;  %v8965_v1 = vld [vmem:[#allocation2 + $0x108] sm:$0xff] }
 0x4a0   : > { %4179 = vmatprep.mubr.bf16.mxu1 %v3551_v5  ;;  %v6099_v22 = vunpack.i.h.bf16 %v8877_v26  ;;  %v6098_v11 = vunpack.i.l.bf16 %v8877_v26  ;;  %v3418_v51 = vsel %vm1997_vm12, %v8967_v43, %v6089_v41 }
 0x4a1   : > { %v3469_v4 = vsel %vm1997_vm12, %v2732_v49, %v6133_v21  ;;  %v3470_v30 = vsel %vm1997_vm12, %v2733_v34, %v6134_v57  ;;  %v3417_v26 = vsel %vm1997_vm12, %v8965_v1, %v6088_v62  ;;  %v6108_v49 = vunpack.i.l.bf16 %v8895_v46  ;;  %v2736_v34 = vld [vmem:[#allocation2 + $0xc1] sm:$0xff] }
 0x4a2   : > { %v6142_v13 = vpop.permute.xlu1 %6141  ;;  %v3550_v6 = vpack.c.bf16 %v3470_v30, %v3469_v4  ;;  %v2737_v4 = vld [vmem:[#allocation2 + $0xc9] sm:$0xff]  ;;  %v3451_v30 = vsel %vm1997_vm12, %v8973_v44, %v6098_v11  ;;  %v3578_v40 = vpack.c.bf16 %v3418_v51, %v3417_v26  ;;  %v2620_v26 = vld [vmem:[#allocation2 + $0x138] sm:$0xff]  ;;  %v2621_v51 = vld [vmem:[#allocation2 + $0x140] sm:$0xff] }
 0x4a3   : > { %v8921_v56 = vpop.permute.xlu0 %6126  ;;  %v6144_v29 = vunpack.i.h.bf16 %v6142_v13  ;;  %v6143_v58 = vunpack.i.l.bf16 %v6142_v13 }
 0x4a4   : > { %4180 = vmatmul.mubr.bf16.gmra.mrb[68].mxu1 %v3550_v6  ;;  %v6129_v62 = vunpack.i.h.bf16 %v8921_v56 }
 0x4a5   : > { %v3503_v32 = vsel %vm1997_vm12, %v8883_v55, %v6143_v58  ;;  %v3504_v19 = vsel %vm1997_vm12, %v8885_v14, %v6144_v29  ;;  %v3449_v14 = vsel %vm1997_vm12, %v8943_v9, %v6078_v15  ;;  %v2618_v58 = vld [vmem:[#allocation2 + $0x120] sm:$0xff] }
 0x4a6   : > { %4051 = vmatmul.mubr.bf16.gmra.mrb[52].mxu0 %v3568_v10  ;;  %v6152_v7 = vpop.permute.xlu1 %6151  ;;  %v3556_v16 = vpack.c.bf16 %v3504_v19, %v3503_v32  ;;  %v3579_v59 = vpack.c.bf16 %v3450_v25, %v3449_v14  ;;  %v2619_v32 = vld [vmem:[#allocation2 + $0x128] sm:$0xff]  ;;  %v6119_v19 = vunpack.i.h.bf16 %v8903_v63  ;;  %v2738_v14 = vld [vmem:[#allocation2 + $0xd9] sm:$0xff] }
 0x4a7   : > { %v8929_v3 = vpop.permute.xlu0 %6136  ;;  %4058 = vmatprep.mubr.bf16.mxu0 %v3574_v45  ;;  %v6154_v55 = vunpack.i.h.bf16 %v6152_v7  ;;  %v6153_v39 = vunpack.i.l.bf16 %v6152_v7  ;;  %v6118_v7 = vunpack.i.l.bf16 %v8903_v63  ;;  %v2739_v25 = vld [vmem:[#allocation2 + $0xe1] sm:$0xff] }
 0x4a8   : > { %4187 = vmatprep.mubr.bf16.mxu1 %v3556_v16  ;;  %v3419_v16 = vsel %vm1997_vm12, %v2618_v58, %v6108_v49  ;;  %v8995_v63 = vld [vmem:[#allocation2 + $0x142] sm:$0xff] }
 0x4a9   : > { %v3471_v0 = vsel %vm1997_vm12, %v2734_v18, %v6153_v39  ;;  %v3472_v23 = vsel %vm1997_vm12, %v2735_v20, %v6154_v55  ;;  %v3454_v41 = vsel %vm1997_vm12, %v8995_v63, %v6119_v19 }
 0x4aa   : > { %v6162_v17 = vpop.permute.xlu1 %6161  ;;  %v3555_v38 = vpack.c.bf16 %v3472_v23, %v3471_v0  ;;  %v8993_v23 = vld [vmem:[#allocation2 + $0x13a] sm:$0xff] }
 0x4ab   : > { %v8951_v31 = vpop.permute.xlu0 %6146  ;;  %v6164_v53 = vunpack.i.h.bf16 %v6162_v17  ;;  %v6163_v12 = vunpack.i.l.bf16 %v6162_v17 }
 0x4ac   : > { %4188 = vmatmul.mubr.bf16.gmra.mrb[72].mxu1 %v3555_v38 }
 0x4ad   : > { %v3505_v54 = vsel %vm1997_vm12, %v8909_v48, %v6163_v12  ;;  %v3506_v61 = vsel %vm1997_vm12, %v8911_v37, %v6164_v53  ;;  %v8975_v48 = vld [vmem:[#allocation2 + $0x12a] sm:$0xff]  ;;  %v6109_v37 = vunpack.i.h.bf16 %v8895_v46  ;;  %v6128_v53 = vunpack.i.l.bf16 %v8921_v56 }
 0x4ae   : > { %4059 = vmatmul.mubr.bf16.gmra.mrb[56].mxu0 %v3573_v28  ;;  %v6172_v5 = vpop.permute.xlu1 %6171  ;;  %v3561_v27 = vpack.c.bf16 %v3506_v61, %v3505_v54  ;;  %v3452_v10 = vsel %vm1997_vm12, %v8975_v48, %v6099_v22  ;;  %v6139_v12 = vunpack.i.h.bf16 %v8929_v3  ;;  %v6138_v54 = vunpack.i.l.bf16 %v8929_v3 }
 0x4af   : > { %v8959_v2 = vpop.permute.xlu0 %6156  ;;  %4066 = vmatprep.mubr.bf16.mxu0 %v3579_v59  ;;  %v6174_v57 = vunpack.i.h.bf16 %v6172_v5  ;;  %v6173_v21 = vunpack.i.l.bf16 %v6172_v5  ;;  %v3584_v29 = vpack.c.bf16 %v3452_v10, %v3451_v30  ;;  %v3420_v35 = vsel %vm1997_vm12, %v2619_v32, %v6109_v37  ;;  %v9017_v30 = vld [vmem:[#allocation2 + $0x15a] sm:$0xff] }
 0x4b0   : > { %4195 = vmatprep.mubr.bf16.mxu1 %v3561_v27  ;;  %v3583_v18 = vpack.c.bf16 %v3420_v35, %v3419_v16  ;;  %v3453_v59 = vsel %vm1997_vm12, %v8993_v23, %v6118_v7  ;;  %v3421_v49 = vsel %vm1997_vm12, %v2620_v26, %v6128_v53  ;;  %v6149_v35 = vunpack.i.h.bf16 %v8951_v31 }
 0x4b1   : > { %v3473_v24 = vsel %vm1997_vm12, %v2736_v34, %v6173_v21  ;;  %v3474_v13 = vsel %vm1997_vm12, %v2737_v4, %v6174_v57  ;;  %v3589_v57 = vpack.c.bf16 %v3454_v41, %v3453_v59  ;;  %v3422_v34 = vsel %vm1997_vm12, %v2621_v51, %v6129_v62  ;;  %v9015_v4 = vld [vmem:[#allocation2 + $0x152] sm:$0xff]  ;;  %v6390_v62 = vld [vmem:[#allocation2 + $0x16a] sm:$0xff] }
 0x4b2   : > { %v6182_v6 = vpop.permute.xlu1 %6181  ;;  %v3560_v45 = vpack.c.bf16 %v3474_v13, %v3473_v24  ;;  %v2740_v13 = vld [vmem:[#allocation2 + $0xf1] sm:$0xff]  ;;  %v3588_v7 = vpack.c.bf16 %v3422_v34, %v3421_v49 }
 0x4b3   : > { %v8983_v33 = vpop.permute.xlu0 %6166  ;;  %v6184_v15 = vunpack.i.h.bf16 %v6182_v6  ;;  %v6183_v46 = vunpack.i.l.bf16 %v6182_v6  ;;  %v3456_v6 = vsel %vm1997_vm12, %v9017_v30, %v6139_v12  ;;  %v2743_v59 = vld [vmem:[#allocation2 + $0x111] sm:$0xff] }
 0x4b4   : > { %4196 = vmatmul.mubr.bf16.gmra.mrb[76].mxu1 %v3560_v45  ;;  %v6391_v12 = vld [vmem:[#allocation2 + $0x172] sm:$0xff] }
 0x4b5   : > { %v3475_v20 = vsel %vm1997_vm12, %v2738_v14, %v6183_v46  ;;  %v3476_v0 = vsel %vm1997_vm12, %v2739_v25, %v6184_v15  ;;  %v6158_v14 = vunpack.i.l.bf16 %v8959_v2 }
 0x4b6   : > { %4067 = vmatmul.mubr.bf16.gmra.mrb[60].mxu0 %v3578_v40  ;;  %v6192_v17 = vpop.permute.xlu1 %6191  ;;  %v3565_v5 = vpack.c.bf16 %v3476_v0, %v3475_v20 }
 0x4b7   : > { %v6177_v50 = vpop.permute.xlu0 %6176  ;;  %4074 = vmatprep.mubr.bf16.mxu0 %v3584_v29  ;;  %v6193_v27 = vunpack.i.l.bf16 %v6192_v17  ;;  %v3457_v53 = vsel %vm1997_vm12, %v6390_v62, %v6158_v14 }
 0x4b8   : > { %v6179_v55 = vunpack.i.h.bf16 %v6177_v50  ;;  %v6178_v39 = vunpack.i.l.bf16 %v6177_v50  ;;  %v6148_v50 = vunpack.i.l.bf16 %v8951_v31 }
 0x4b9   : > { %v3477_v45 = vsel %vm1997_vm12, %v2740_v13, %v6193_v27 }
 0x4ba   : > { %v3507_v38 = vsel %vm1997_vm12, %v8935_v36, %v6178_v39  ;;  %v3508_v28 = vsel %vm1997_vm12, %v8937_v8, %v6179_v55  ;;  %v6194_v8 = vunpack.i.h.bf16 %v6192_v17  ;;  %v6202_v15 = vpop.permute.xlu1 %6201  ;;  %v6159_v55 = vunpack.i.h.bf16 %v8959_v2 }
 0x4bb   : > { %v6187_v22 = vpop.permute.xlu0 %6186  ;;  %v3566_v11 = vpack.c.bf16 %v3508_v28, %v3507_v38  ;;  %v6204_v25 = vunpack.i.h.bf16 %v6202_v15  ;;  %v2742_v28 = vld [vmem:[#allocation2 + $0x109] sm:$0xff] }
 0x4bc   : > { %v6189_v36 = vunpack.i.h.bf16 %v6187_v22  ;;  %v6188_v61 = vunpack.i.l.bf16 %v6187_v22  ;;  %v3458_v22 = vsel %vm1997_vm12, %v6391_v12, %v6159_v55 }
 0x4bd   : > { %4203 = vmatprep.mubr.bf16.mxu1 %v3566_v11  ;;  %v3480_v2 = vsel %vm1997_vm12, %v2743_v59, %v6204_v25  ;;  %v2746_v25 = vld [vmem:[#allocation2 + $0x139] sm:$0xff]  ;;  %v2856_v59 = vld [vmem:[#allocation2 + $0x6a] sm:$0xff] }
 0x4be   : > { %4075 = vmatmul.mubr.bf16.gmra.mrb[64].mxu0 %v3583_v18  ;;  %4204 = vmatmul.mubr.bf16.gmra.mrb[80].mxu1 %v3565_v5  ;;  %v3509_v21 = vsel %vm1997_vm12, %v8965_v1, %v6188_v61  ;;  %v3510_v56 = vsel %vm1997_vm12, %v8967_v43, %v6189_v36  ;;  %v2741_v1 = vld [vmem:[#allocation2 + $0xf9] sm:$0xff]  ;;  %v3455_v43 = vsel %vm1997_vm12, %v9015_v4, %v6138_v54  ;;  %v6203_v18 = vunpack.i.l.bf16 %v6202_v15  ;;  %v6212_v11 = vpop.permute.xlu1 %6211 }
 0x4bf   : > { %v6197_v37 = vpop.permute.xlu0 %6196  ;;  %4082 = vmatprep.mubr.bf16.mxu0 %v3589_v57  ;;  %v3571_v3 = vpack.c.bf16 %v3510_v56, %v3509_v21  ;;  %v3478_v40 = vsel %vm1997_vm12, %v2741_v1, %v6194_v8  ;;  %v3594_v16 = vpack.c.bf16 %v3456_v6, %v3455_v43  ;;  %v6169_v5 = vunpack.i.h.bf16 %v8983_v33  ;;  %v2851_v15 = vld [vmem:[#allocation2 + $0x32] sm:$0xff] }
 0x4c0   : > { %v6199_v10 = vunpack.i.h.bf16 %v6197_v37  ;;  %v6198_v24 = vunpack.i.l.bf16 %v6197_v37  ;;  %v3570_v39 = vpack.c.bf16 %v3478_v40, %v3477_v45  ;;  %v3479_v41 = vsel %vm1997_vm12, %v2742_v28, %v6203_v18  ;;  %v2747_v18 = vld [vmem:[#allocation2 + $0x141] sm:$0xff] }
 0x4c1   : > { %4211 = vmatprep.mubr.bf16.mxu1 %v3571_v3  ;;  %v3575_v27 = vpack.c.bf16 %v3480_v2, %v3479_v41  ;;  %v3599_v57 = vpack.c.bf16 %v3458_v22, %v3457_v53  ;;  %v6168_v21 = vunpack.i.l.bf16 %v8983_v33  ;;  %v6214_v56 = vunpack.i.h.bf16 %v6212_v11  ;;  %v2855_v28 = vld [vmem:[#allocation2 + $0x62] sm:$0xff] }
 0x4c2   : > { %v3511_v46 = vsel %vm1997_vm12, %v2618_v58, %v6198_v24  ;;  %v3512_v29 = vsel %vm1997_vm12, %v2619_v32, %v6199_v10  ;;  %v2622_v58 = vld [vmem:[#allocation2 + $0x150] sm:$0xff]  ;;  %v2623_v32 = vld [vmem:[#allocation2 + $0x158] sm:$0xff]  ;;  %v6213_v37 = vunpack.i.l.bf16 %v6212_v11  ;;  %v6222_v6 = vpop.permute.xlu1 %6221  ;;  %v3537_v11 = vpack.c.bf16 %v2856_v59, %v2855_v28 }
 0x4c3   : > { %v6207_v19 = vpop.permute.xlu0 %6206  ;;  %v3576_v20 = vpack.c.bf16 %v3512_v29, %v3511_v46  ;;  %v3423_v38 = vsel %vm1997_vm12, %v2622_v58, %v6148_v50  ;;  %v3424_v31 = vsel %vm1997_vm12, %v2623_v32, %v6149_v35  ;;  %v2625_v10 = vld [vmem:[#allocation2 + $0x170] sm:$0xff]  ;;  %v2852_v46 = vld [vmem:[#allocation2 + $0x3a] sm:$0xff]  ;;  %v6223_v35 = vunpack.i.l.bf16 %v6222_v6 }
 0x4c4   : > { %v6209_v0 = vunpack.i.h.bf16 %v6207_v19  ;;  %v6208_v17 = vunpack.i.l.bf16 %v6207_v19  ;;  %v3593_v8 = vpack.c.bf16 %v3424_v31, %v3423_v38  ;;  %v2745_v24 = vld [vmem:[#allocation2 + $0x129] sm:$0xff]  ;;  %v3426_v1 = vsel %vm1997_vm12, %v2625_v10, %v6169_v5  ;;  %v2749_v5 = vld [vmem:[#allocation2 + $0x159] sm:$0xff] }
 0x4c5   : > { %v3482_v33 = vsel %vm1997_vm12, %v2745_v24, %v6214_v56  ;;  %v3527_v55 = vpack.c.bf16 %v2852_v46, %v2851_v15  ;;  %v2815_v56 = vld [vmem:[#allocation2 + $0x180] sm:$0xff]  ;;  %v2817_v15 = vld [vmem:[#allocation2 + $0x198] sm:$0xff]  ;;  %v2753_v28 = vld [vmem:[#allocation2 + $0x189] sm:$0xff] }
 0x4c6   : > { %4083 = vmatmul.mubr.bf16.gmra.mrb[68].mxu0 %v3588_v7  ;;  %4212 = vmatmul.mubr.bf16.gmra.mrb[84].mxu1 %v3570_v39  ;;  %v3513_v54 = vsel %vm1997_vm12, %v2620_v26, %v6208_v17  ;;  %v3514_v36 = vsel %vm1997_vm12, %v2621_v51, %v6209_v0  ;;  %v2624_v26 = vld [vmem:[#allocation2 + $0x168] sm:$0xff]  ;;  %v2818_v46 = vld [vmem:[#allocation2 + $0x1a0] sm:$0xff] }
 0x4c7   : > { %4090 = vmatprep.mubr.bf16.mxu0 %v3594_v16  ;;  %4219 = vmatprep.mubr.bf16.mxu1 %v3576_v20  ;;  %v6217_v61 = vpop.permute.xlu0 %6216  ;;  %v3581_v3 = vpack.c.bf16 %v3514_v36, %v3513_v54  ;;  %v2744_v51 = vld [vmem:[#allocation2 + $0x121] sm:$0xff]  ;;  %v3425_v13 = vsel %vm1997_vm12, %v2624_v26, %v6168_v21  ;;  %v6224_v16 = vunpack.i.h.bf16 %v6222_v6  ;;  %v3483_v20 = vsel %vm1997_vm12, %v2746_v25, %v6223_v35  ;;  %v2853_v17 = vld [vmem:[#allocation2 + $0x4a] sm:$0xff] }
 0x4c8   : > { %v6219_v49 = vunpack.i.h.bf16 %v6217_v61  ;;  %v6218_v34 = vunpack.i.l.bf16 %v6217_v61  ;;  %v3481_v43 = vsel %vm1997_vm12, %v2744_v51, %v6213_v37  ;;  %v3598_v19 = vpack.c.bf16 %v3426_v1, %v3425_v13  ;;  %v2748_v61 = vld [vmem:[#allocation2 + $0x151] sm:$0xff]  ;;  %v2858_v21 = vld [vmem:[#allocation2 + $0x82] sm:$0xff]  ;;  %v2860_v51 = vld [vmem:[#allocation2 + $0x9a] sm:$0xff] }
 0x4c9   : > { %v3580_v7 = vpack.c.bf16 %v3482_v33, %v3481_v43  ;;  %v3484_v0 = vsel %vm1997_vm12, %v2747_v18, %v6224_v16  ;;  %v2816_v37 = vld [vmem:[#allocation2 + $0x188] sm:$0xff] }
 0x4ca   : > { %v3515_v45 = vsel %vm1997_vm12, %v2622_v58, %v6218_v34  ;;  %v3516_v40 = vsel %vm1997_vm12, %v2623_v32, %v6219_v49  ;;  %v2854_v58 = vld [vmem:[#allocation2 + $0x52] sm:$0xff]  ;;  %v6232_v32 = vpop.permute.xlu1 %6231  ;;  %v3585_v2 = vpack.c.bf16 %v3484_v0, %v3483_v20  ;;  %v2863_v25 = vld [vmem:[#allocation2 + $0xc2] sm:$0xff]  ;;  %v2864_v18 = vld [vmem:[#allocation2 + $0xca] sm:$0xff] }
 0x4cb   : > { %v6227_v29 = vpop.permute.xlu0 %6226  ;;  %v3586_v50 = vpack.c.bf16 %v3516_v40, %v3515_v45  ;;  %v3532_v62 = vpack.c.bf16 %v2854_v58, %v2853_v17  ;;  %v6234_v53 = vunpack.i.h.bf16 %v6232_v32  ;;  %v6233_v12 = vunpack.i.l.bf16 %v6232_v32 }
 0x4cc   : > { %v6229_v39 = vunpack.i.h.bf16 %v6227_v29  ;;  %v6228_v14 = vunpack.i.l.bf16 %v6227_v29  ;;  %v2750_v29 = vld [vmem:[#allocation2 + $0x169] sm:$0xff] }
 0x4ce   : > { %4091 = vmatmul.mubr.bf16.gmra.mrb[72].mxu0 %v3593_v8  ;;  %4220 = vmatmul.mubr.bf16.gmra.mrb[88].mxu1 %v3575_v27  ;;  %v3517_v38 = vsel %vm1997_vm12, %v2624_v26, %v6228_v14  ;;  %v3518_v31 = vsel %vm1997_vm12, %v2625_v10, %v6229_v39  ;;  %v2857_v8 = vld [vmem:[#allocation2 + $0x7a] sm:$0xff]  ;;  %v3485_v27 = vsel %vm1997_vm12, %v2748_v61, %v6233_v12  ;;  %v6242_v49 = vpop.permute.xlu1 %6241  ;;  %v2859_v10 = vld [vmem:[#allocation2 + $0x92] sm:$0xff] }
 0x4cf   : > { %4098 = vmatprep.mubr.bf16.mxu0 %v3599_v57  ;;  %4227 = vmatprep.mubr.bf16.mxu1 %v3581_v3  ;;  %v6237_v41 = vpop.permute.xlu0 %6236  ;;  %v3591_v22 = vpack.c.bf16 %v3518_v31, %v3517_v38  ;;  %v3486_v57 = vsel %vm1997_vm12, %v2749_v5, %v6234_v53  ;;  %v3542_v13 = vpack.c.bf16 %v2858_v21, %v2857_v8  ;;  %v6244_v33 = vunpack.i.h.bf16 %v6242_v49  ;;  %v2862_v39 = vld [vmem:[#allocation2 + $0xb2] sm:$0xff]  ;;  %v2752_v31 = vld [vmem:[#allocation2 + $0x181] sm:$0xff] }
 0x4d0   : > { %v6239_v54 = vunpack.i.h.bf16 %v6237_v41  ;;  %v6238_v36 = vunpack.i.l.bf16 %v6237_v41  ;;  %v3590_v24 = vpack.c.bf16 %v3486_v57, %v3485_v27  ;;  %v6243_v6 = vunpack.i.l.bf16 %v6242_v49  ;;  %v2867_v53 = vld [vmem:[#allocation2 + $0xf2] sm:$0xff]  ;;  %v2868_v12 = vld [vmem:[#allocation2 + $0xfa] sm:$0xff]  ;;  %v2882_v27 = vld [vmem:[#allocation2 + $0x1a2] sm:$0xff] }
 0x4d1   : > { %v3547_v40 = vpack.c.bf16 %v2860_v51, %v2859_v10  ;;  %v3557_v38 = vpack.c.bf16 %v2864_v18, %v2863_v25  ;;  %v3577_v61 = vpack.c.bf16 %v8975_v48, %v8973_v44  ;;  %v3582_v5 = vpack.c.bf16 %v8995_v63, %v8993_v23  ;;  %v2879_v23 = vld [vmem:[#allocation2 + $0x182] sm:$0xff]  ;;  %v2880_v63 = vld [vmem:[#allocation2 + $0x18a] sm:$0xff] }
 0x4d2   : > { %v3519_v34 = vsel %vm1997_vm12, %v2815_v56, %v6238_v36  ;;  %v3520_v26 = vsel %vm1997_vm12, %v2816_v37, %v6239_v54  ;;  %v3487_v35 = vsel %vm1997_vm12, %v2750_v29, %v6243_v6  ;;  %v6252_v14 = vpop.permute.xlu1 %6251  ;;  %v3567_v54 = vpack.c.bf16 %v2868_v12, %v2867_v53  ;;  %v4501_v21 = vld [vmem:[%s9395_s7 + $0x10] sm:$0xff]  ;;  %v4502_v56 = vld [vmem:[%s9395_s7 + $0x18] sm:$0xff]  ;;  %v4507_v25 = vld [vmem:[%s9395_s7 + $0x40] sm:$0xff] }
 0x4d3   : > { %v6247_v3 = vpop.permute.xlu0 %6246  ;;  %v3596_v45 = vpack.c.bf16 %v3520_v26, %v3519_v34  ;;  %v6254_v58 = vunpack.i.h.bf16 %v6252_v14  ;;  %v6253_v32 = vunpack.i.l.bf16 %v6252_v14  ;;  %v3572_v36 = vpack.c.bf16 %v8945_v52, %v8943_v9  ;;  %v4499_v9 = vld [vmem:[%s9395_s7] sm:$0xff]  ;;  %v4500_v52 = vld [vmem:[%s9395_s7 + $0x8] sm:$0xff]  ;;  %v4506_v6 = vld [vmem:[%s9395_s7 + $0x38] sm:$0xff] }
 0x4d4   : > { %v6249_v1 = vunpack.i.h.bf16 %v6247_v3  ;;  %v6248_v43 = vunpack.i.l.bf16 %v6247_v3  ;;  %v3587_v8 = vpack.c.bf16 %v9017_v30, %v9015_v4  ;;  %v6466_v44 = vmov 0.0|0.0   ;;  %v2881_v30 = vld [vmem:[#allocation2 + $0x19a] sm:$0xff]  ;;  %v4508_v18 = vld [vmem:[%s9395_s7 + $0x48] sm:$0xff] }
 0x4d5   : > { %v3489_v59 = vsel %vm1997_vm12, %v2752_v31, %v6253_v32  ;;  %v3490_v41 = vsel %vm1997_vm12, %v2753_v28, %v6254_v58  ;;  %5211 = vmatprep.subr.bf16.mxu1 %v6466_v44  ;;  %v5212_v48 = vpack.c.bf16 %v4500_v52, %v4499_v9  ;;  %v3597_v4 = vpack.c.bf16 %v2880_v63, %v2879_v23  ;;  %v9131_v58 = vld [vmem:[%s9394_s6] ss:$0 sm:$0xff] }
 0x4d6   : > { %4099 = vmatmul.mubr.bf16.gmra.mrb[76].mxu0 %v3598_v19  ;;  %4228 = vmatmul.mubr.bf16.gmra.mrb[92].mxu1 %v3580_v7  ;;  %v2751_v19 = vld [vmem:[#allocation2 + $0x171] sm:$0xff]  ;;  %v3521_v7 = vsel %vm1997_vm12, %v2817_v15, %v6248_v43  ;;  %v3522_v16 = vsel %vm1997_vm12, %v2818_v46, %v6249_v1  ;;  %v3602_v57 = vpack.c.bf16 %v2882_v27, %v2881_v30 }
 0x4d7   : > { %4235 = vmatprep.mubr.bf16.mxu1 %v3586_v50  ;;  %5144 = vmatprep.mubr.msk.bf16.mxu0 %vm1997_vm12, %v3527_v55  ;;  %v3488_v50 = vsel %vm1997_vm12, %v2751_v19, %v6244_v33  ;;  %v2861_v55 = vld [vmem:[#allocation2 + $0xaa] sm:$0xff]  ;;  %v3601_v20 = vpack.c.bf16 %v3522_v16, %v3521_v7  ;;  %v5215_v37 = vpack.c.bf16 %v4502_v56, %v4501_v21  ;;  %v4510_v21 = vld [vmem:[%s9395_s7 + $0x58] sm:$0xff] }
 0x4d8   : > { %v3595_v0 = vpack.c.bf16 %v3488_v50, %v3487_v35  ;;  %v3552_v17 = vpack.c.bf16 %v2862_v39, %v2861_v55  ;;  %5213 = vmatpush3.bf16.msra.mxu1 %v5212_v48  ;;  %v4505_v33 = vld [vmem:[%s9395_s7 + $0x30] sm:$0xff] }
 0x4d9   : > { %5214 = vmatprep.subr.bf16.mxu1 %v6466_v44 }
 0x4dc   : > { %5216 = vmatpush3.bf16.msra.mxu1 %v5215_v37 }
 0x4dd   : > { %5217 = vmatprep.subr.bf16.mxu1 %v6466_v44 }
 0x4de   : > { %4236 = vmatmul.mubr.bf16.gmra.mrb[96].mxu1 %v3585_v2  ;;  %5145 = vmatmul.mubr.msk.bf16.vlgmr.msra.gmra.mrb[80].mxu0 %vm1997_vm12, %v3532_v62  ;;  %v2865_v2 = vld [vmem:[#allocation2 + $0xda] sm:$0xff]  ;;  %v2866_v62 = vld [vmem:[#allocation2 + $0xe2] sm:$0xff] }
 0x4df   : > { %4243 = vmatprep.mubr.bf16.mxu1 %v3591_v22  ;;  %5148 = vmatprep.mubr.msk.bf16.mxu0 %vm1997_vm12, %v3537_v11  ;;  %v3600_v22 = vpack.c.bf16 %v3490_v41, %v3489_v59  ;;  %v3562_v11 = vpack.c.bf16 %v2866_v62, %v2865_v2 }
 0x4e6   : > { %4244 = vmatmul.mubr.bf16.gmra.mrb[100].mxu1 %v3590_v24  ;;  %5149 = vmatmul.mubr.msk.bf16.gmra.mrb[84].mxu0 %vm1997_vm12, %v3542_v13 }
 0x4e7   : > { %4251 = vmatprep.mubr.bf16.mxu1 %v3596_v45  ;;  %5152 = vmatprep.mubr.msk.bf16.mxu0 %vm1997_vm12, %v3547_v40  ;;  %v5221_v40 = vpack.c.bf16 %v4506_v6, %v4505_v33 }
 0x4ee   : > { %4252 = vmatmul.mubr.bf16.gmra.mrb[104].mxu1 %v3595_v0  ;;  %5153 = vmatmul.mubr.msk.bf16.gmra.mrb[88].mxu0 %vm1997_vm12, %v3552_v17  ;;  %v5224_v0 = vpack.c.bf16 %v4508_v18, %v4507_v25 }
 0x4ef   : > { %5156 = vmatprep.mubr.msk.bf16.mxu0 %vm1997_vm12, %v3557_v38  ;;  %4259 = vmatprep.mubr.bf16.mxu1 %v3601_v20 }
 0x4f6   : > { %4260 = vmatmul.mubr.bf16.gmra.mrb[108].mxu1 %v3600_v22  ;;  %5157 = vmatmul.mubr.msk.bf16.gmra.mrb[92].mxu0 %vm1997_vm12, %v3562_v11 }
 0x4f7   : > { %5160 = vmatprep.mubr.msk.bf16.mxu0 %vm1997_vm12, %v3567_v54 }
 0x4fe   : > { %5161 = vmatmul.mubr.msk.bf16.gmra.mrb[96].mxu0 %vm1997_vm12, %v3572_v36 }
 0x4ff   : > { %5164 = vmatprep.mubr.msk.bf16.mxu0 %vm1997_vm12, %v3577_v61 }
 0x506   : > { %5165 = vmatmul.mubr.msk.bf16.gmra.mrb[100].mxu0 %vm1997_vm12, %v3582_v5 }
 0x507   : > { %5168 = vmatprep.mubr.msk.bf16.mxu0 %vm1997_vm12, %v3587_v8 }
 0x50e   : > { %5169 = vmatmul.mubr.msk.bf16.gmra.mrb[104].mxu0 %vm1997_vm12, %v3592_v60  ;;  %v5218_v60 = vpack.c.bf16 %v4504_v47, %v4503_v42 }
 0x50f   : > { %5172 = vmatprep.mubr.msk.bf16.mxu0 %vm1997_vm12, %v3597_v4 }
 0x510   : > { %5219 = vmatpush3.bf16.msra.mxu1 %v5218_v60 }
 0x511   : > { %5220 = vmatprep.subr.bf16.mxu1 %v6466_v44 }
 0x514   : > { %5222 = vmatpush3.bf16.msra.mxu1 %v5221_v40 }
 0x515   : > { %5223 = vmatprep.subr.bf16.mxu1 %v6466_v44 }
 0x516   : > { %5173 = vmatmul.mubr.msk.bf16.gmra.mrb[108].mxu0 %vm1997_vm12, %v3602_v57  ;;  %v4509_v57 = vld [vmem:[%s9395_s7 + $0x50] sm:$0xff] }
 0x517   : > { %v5227_v42 = vpack.c.bf16 %v4510_v21, %v4509_v57 }
 0x518   : > { %5225 = vmatpush3.bf16.msra.mxu1 %v5224_v0 }
 0x519   : > { %5226 = vmatprep.subr.bf16.mxu1 %v6466_v44 }
 0x51c   : > { %5228 = vmatpush3.bf16.msra.mxu1 %v5227_v42 }
 0x51d   : > { %5229 = vmatprep.subr.bf16.mxu1 %v6466_v44 }
 0x531   : > { %v4813_v3 = vpop.f32.mrb[16].mxu0 }
 0x532   : > { %v4814_v49 = vpop.f32.mrb[17].mxu0 }
 0x533   : > { %v4815_v34 = vadd.f32 %v4814_v49, %v4813_v3  ;;  %v4816_v26 = vpop.f32.mrb[18].mxu0 }
 0x534   : > { %v4817_v10 = vpop.f32.mrb[19].mxu0 }
 0x535   : > { %v4818_v51 = vadd.f32 %v4817_v10, %v4816_v26  ;;  %v3981_v59 = vadd.f32 %v4815_v34, %v9131_v58 }
 0x537   : > { %v3984_v11 = vadd.f32 %v4818_v51, %v9131_v58 }
 0x539   : > { %v4819_v24 = vpop.f32.mrb[20].mxu0 }
 0x53a   : > { %v4820_v13 = vpop.f32.mrb[21].mxu0 }
 0x53b   : > { %v4821_v1 = vadd.f32 %v4820_v13, %v4819_v24  ;;  %v4822_v43 = vpop.f32.mrb[22].mxu0 }
 0x53c   : > { %v4823_v45 = vpop.f32.mrb[23].mxu0 }
 0x53d   : > { %v4824_v15 = vadd.f32 %v4823_v45, %v4822_v43  ;;  %v3989_v23 = vadd.f32 %v4821_v1, %v9131_v58 }
 0x53f   : > { %v3992_v47 = vadd.f32 %v4824_v15, %v9131_v58 }
 0x541   : > { %v4825_v46 = vpop.f32.mrb[24].mxu0 }
 0x542   : > { %v4826_v29 = vpop.f32.mrb[25].mxu0 }
 0x543   : > { %v4827_v19 = vadd.f32 %v4826_v29, %v4825_v46  ;;  %v4828_v7 = vpop.f32.mrb[26].mxu0 }
 0x544   : > { %v4829_v16 = vpop.f32.mrb[27].mxu0 }
 0x545   : > { %v4830_v35 = vadd.f32 %v4829_v16, %v4828_v7  ;;  %v3997_v13 = vadd.f32 %v4827_v19, %v9131_v58 }
 0x547   : > { %v4000_v15 = vadd.f32 %v4830_v35, %v9131_v58  ;;  %v4511_v35 = vld [vmem:[%s9395_s7 + $0x60] sm:$0xff] }
 0x549   : > { %v4831_v50 = vpop.f32.mrb[28].mxu0 }
 0x54a   : > { %v4832_v55 = vpop.f32.mrb[29].mxu0 }
 0x54b   : > { %v9117_v39 = vadd.f32 %v4832_v55, %v4831_v50  ;;  %v4834_v14 = vpop.f32.mrb[30].mxu0 }
 0x54c   : > { %v4835_v20 = vpop.f32.mrb[31].mxu0 }
 0x54d   : > { %v9125_v17 = vadd.f32 %v4835_v20, %v4834_v14  ;;  %v4005_v25 = vadd.f32 %v9117_v39, %v9131_v58 }
 0x54f   : > { %v4925_v32 = vpop.f32.mrb[48].mxu1 }
 0x550   : > { %v4926_v31 = vpop.f32.mrb[49].mxu1 }
 0x551   : > { %v4837_v38 = vpop.f32.mrb[32].mxu0  ;;  %v4927_v41 = vadd.f32 %v4926_v31, %v4925_v32  ;;  %v4928_v62 = vpop.f32.mrb[50].mxu1 }
 0x552   : > { %v4838_v28 = vpop.f32.mrb[33].mxu0  ;;  %v4929_v12 = vpop.f32.mrb[51].mxu1 }
 0x553   : > { %v9134_v2 = vadd.f32 %v4838_v28, %v4837_v38  ;;  %v4840_v53 = vpop.f32.mrb[34].mxu0  ;;  %v4930_v54 = vadd.f32 %v4929_v12, %v4928_v62  ;;  %v9139_v61 = vadd.f32 %v4927_v41, %v3981_v59  ;;  %v4512_v38 = vld [vmem:[%s9395_s7 + $0x68] sm:$0xff]  ;;  %v4008_v41 = vadd.f32 %v9125_v17, %v9131_v58 }
 0x554   : > { %v4841_v22 = vpop.f32.mrb[35].mxu0  ;;  %v5230_v59 = vpack.c.bf16 %v4512_v38, %v4511_v35 }
 0x555   : > { %v9137_v36 = vadd.f32 %v4841_v22, %v4840_v53  ;;  %v9141_v5 = vadd.f32 %v4930_v54, %v3984_v11 }
 0x556   : > { %5231 = vmatpush3.bf16.msra.mxu1 %v5230_v59 }
 0x557   : > { %v4931_v8 = vpop.f32.mrb[52].mxu1  ;;  %5232 = vmatprep.subr.bf16.mxu1 %v6466_v44 }
 0x558   : > { %v4932_v52 = vpop.f32.mrb[53].mxu1 }
 0x559   : > { %v4843_v9 = vpop.f32.mrb[36].mxu0  ;;  %v4933_v63 = vadd.f32 %v4932_v52, %v4931_v8  ;;  %v4934_v30 = vpop.f32.mrb[54].mxu1 }
 0x55a   : > { %v4844_v48 = vpop.f32.mrb[37].mxu0  ;;  %v4935_v56 = vpop.f32.mrb[55].mxu1 }
 0x55b   : > { %v9144_v4 = vadd.f32 %v4844_v48, %v4843_v9  ;;  %v4846_v27 = vpop.f32.mrb[38].mxu0  ;;  %v4936_v60 = vadd.f32 %v4935_v56, %v4934_v30  ;;  %v9155_v49 = vadd.f32 %v4933_v63, %v3989_v23  ;;  %v4013_v9 = vadd.f32 %v9134_v2, %v9131_v58 }
 0x55c   : > { %v4847_v37 = vpop.f32.mrb[39].mxu0 }
 0x55d   : > { %v9153_v3 = vadd.f32 %v4847_v37, %v4846_v27  ;;  %v9157_v34 = vadd.f32 %v4936_v60, %v3992_v47  ;;  %v4016_v27 = vadd.f32 %v9137_v36, %v9131_v58  ;;  %v4021_v60 = vadd.f32 %v9144_v4, %v9131_v58  ;;  %v4513_v4 = vld [vmem:[%s9395_s7 + $0x70] sm:$0xff] }
 0x55f   : > { %v4937_v26 = vpop.f32.mrb[56].mxu1 }
 0x560   : > { %v4938_v51 = vpop.f32.mrb[57].mxu1 }
 0x561   : > { %v4849_v10 = vpop.f32.mrb[40].mxu0  ;;  %v4939_v1 = vadd.f32 %v4938_v51, %v4937_v26  ;;  %v4940_v33 = vpop.f32.mrb[58].mxu1 }
 0x562   : > { %v4850_v24 = vpop.f32.mrb[41].mxu0  ;;  %v4941_v45 = vpop.f32.mrb[59].mxu1 }
 0x563   : > { %v9161_v43 = vadd.f32 %v4850_v24, %v4849_v10  ;;  %v4852_v6 = vpop.f32.mrb[42].mxu0  ;;  %v4942_v46 = vadd.f32 %v4941_v45, %v4940_v33  ;;  %v9166_v7 = vadd.f32 %v4939_v1, %v3997_v13  ;;  %v4024_v1 = vadd.f32 %v9153_v3, %v9131_v58 }
 0x564   : > { %v4853_v40 = vpop.f32.mrb[43].mxu0 }
 0x565   : > { %v9164_v29 = vadd.f32 %v4853_v40, %v4852_v6  ;;  %v9168_v16 = vadd.f32 %v4942_v46, %v4000_v15  ;;  %v4514_v15 = vld [vmem:[%s9395_s7 + $0x78] sm:$0xff] }
 0x566   : > { %v5233_v46 = vpack.c.bf16 %v4514_v15, %v4513_v4 }
 0x567   : > { %v4943_v50 = vpop.f32.mrb[60].mxu1 }
 0x568   : > { %v4944_v14 = vpop.f32.mrb[61].mxu1  ;;  %5234 = vmatpush3.bf16.msra.mxu1 %v5233_v46 }
 0x569   : > { %v4855_v55 = vpop.f32.mrb[44].mxu0  ;;  %v4945_v18 = vadd.f32 %v4944_v14, %v4943_v50  ;;  %v4946_v0 = vpop.f32.mrb[62].mxu1  ;;  %v9532_v50 = vmov 0.0  }
 0x56a   : > { %v4856_v19 = vpop.f32.mrb[45].mxu0  ;;  %v4947_v31 = vpop.f32.mrb[63].mxu1  ;;  %5208 = vmatprep.mubr.msk.f32.mxu1 %vm6467_vm14, %v9532_v50 }
 0x56b   : > { %v9172_v20 = vadd.f32 %v4856_v19, %v4855_v55  ;;  %v4858_v32 = vpop.f32.mrb[46].mxu0  ;;  %v4948_v39 = vadd.f32 %v4947_v31, %v4946_v0  ;;  %v9184_v53 = vadd.f32 %v4945_v18, %v4005_v25  ;;  %v4029_v25 = vadd.f32 %v9161_v43, %v9131_v58 }
 0x56c   : > { %v4859_v28 = vpop.f32.mrb[47].mxu0 }
 0x56d   : > { %v9182_v62 = vadd.f32 %v4859_v28, %v4858_v32  ;;  %v9186_v12 = vadd.f32 %v4948_v39, %v4008_v41  ;;  %v4032_v28 = vadd.f32 %v9164_v29, %v9131_v58  ;;  %v4037_v43 = vadd.f32 %v9172_v20, %v9131_v58 }
 0x56f   : > { %v4949_v22 = vpop.f32.mrb[64].mxu1  ;;  %v4040_v29 = vadd.f32 %v9182_v62, %v9131_v58 }
 0x570   : > { %v4950_v54 = vpop.f32.mrb[65].mxu1 }
 0x571   : > { %v4861_v11 = vpop.f32.mrb[48].mxu0  ;;  %v4951_v52 = vadd.f32 %v4950_v54, %v4949_v22  ;;  %v4952_v17 = vpop.f32.mrb[66].mxu1 }
 0x572   : > { %v4862_v8 = vpop.f32.mrb[49].mxu0  ;;  %v4953_v63 = vpop.f32.mrb[67].mxu1 }
 0x573   : > { %v9191_v48 = vadd.f32 %v4862_v8, %v4861_v11  ;;  %v4864_v23 = vpop.f32.mrb[50].mxu0  ;;  %v4954_v57 = vadd.f32 %v4953_v63, %v4952_v17  ;;  %v9197_v44 = vadd.f32 %v4951_v52, %v4013_v9 }
 0x574   : > { %v4865_v30 = vpop.f32.mrb[51].mxu0 }
 0x575   : > { %v9195_v21 = vadd.f32 %v4865_v30, %v4864_v23  ;;  %v9199_v56 = vadd.f32 %v4954_v57, %v4016_v27  ;;  %v4045_v20 = vadd.f32 %v9191_v48, %v9131_v58 }
 0x577   : > { %v4955_v37 = vpop.f32.mrb[68].mxu1  ;;  %v4048_v4 = vadd.f32 %v9195_v21, %v9131_v58 }
 0x578   : > { %v4956_v2 = vpop.f32.mrb[69].mxu1 }
 0x579   : > { %v4867_v42 = vpop.f32.mrb[52].mxu0  ;;  %v4957_v26 = vadd.f32 %v4956_v2, %v4955_v37  ;;  %v4958_v51 = vpop.f32.mrb[70].mxu1 }
 0x57a   : > { %v4868_v47 = vpop.f32.mrb[53].mxu0  ;;  %v4959_v36 = vpop.f32.mrb[71].mxu1 }
 0x57b   : > { %v9203_v10 = vadd.f32 %v4868_v47, %v4867_v42  ;;  %v4870_v24 = vpop.f32.mrb[54].mxu0  ;;  %v4960_v33 = vadd.f32 %v4959_v36, %v4958_v51  ;;  %v9209_v45 = vadd.f32 %v4957_v26, %v4021_v60 }
 0x57c   : > { %v4871_v13 = vpop.f32.mrb[55].mxu0 }
 0x57d   : > { %v9207_v6 = vadd.f32 %v4871_v13, %v4870_v24  ;;  %v9211_v40 = vadd.f32 %v4960_v33, %v4024_v1 }
 0x57f   : > { %v4961_v3 = vpop.f32.mrb[72].mxu1 }
 0x580   : > { %v4962_v14 = vpop.f32.mrb[73].mxu1 }
 0x581   : > { %v4873_v55 = vpop.f32.mrb[56].mxu0  ;;  %v4963_v18 = vadd.f32 %v4962_v14, %v4961_v3  ;;  %v4964_v32 = vpop.f32.mrb[74].mxu1 }
 0x582   : > { %v4874_v19 = vpop.f32.mrb[57].mxu0  ;;  %v4965_v38 = vpop.f32.mrb[75].mxu1 }
 0x583   : > { %v4875_v0 = vadd.f32 %v4874_v19, %v4873_v55  ;;  %v4876_v35 = vpop.f32.mrb[58].mxu0  ;;  %v4966_v59 = vadd.f32 %v4965_v38, %v4964_v32  ;;  %v9224_v39 = vadd.f32 %v4963_v18, %v4029_v25  ;;  %v4053_v25 = vadd.f32 %v9203_v10, %v9131_v58 }
 0x584   : > { %v4877_v31 = vpop.f32.mrb[59].mxu0 }
 0x585   : > { %v4878_v41 = vadd.f32 %v4877_v31, %v4876_v35  ;;  %v9226_v22 = vadd.f32 %v4966_v59, %v4032_v28  ;;  %v4056_v28 = vadd.f32 %v9207_v6, %v9131_v58 }
 0x587   : > { %v4967_v11 = vpop.f32.mrb[76].mxu1 }
 0x588   : > { %v4968_v8 = vpop.f32.mrb[77].mxu1 }
 0x589   : > { %v4879_v54 = vpop.f32.mrb[60].mxu0  ;;  %v4969_v52 = vadd.f32 %v4968_v8, %v4967_v11  ;;  %v4970_v23 = vpop.f32.mrb[78].mxu1 }
 0x58a   : > { %v4880_v9 = vpop.f32.mrb[61].mxu0  ;;  %v4971_v30 = vpop.f32.mrb[79].mxu1 }
 0x58b   : > { %v4881_v17 = vadd.f32 %v4880_v9, %v4879_v54  ;;  %v4882_v63 = vpop.f32.mrb[62].mxu0  ;;  %v4972_v57 = vadd.f32 %v4971_v30, %v4970_v23  ;;  %v9232_v42 = vadd.f32 %v4969_v52, %v4037_v43  ;;  %v4061_v23 = vadd.f32 %v4875_v0, %v9131_v58 }
 0x58c   : > { %v4883_v27 = vpop.f32.mrb[63].mxu0 }
 0x58d   : > { %v4884_v37 = vadd.f32 %v4883_v27, %v4882_v63  ;;  %v9234_v2 = vadd.f32 %v4972_v57, %v4040_v29 }
 0x591   : > { %v4885_v47 = vpop.f32.mrb[64].mxu0  ;;  %v4973_v60 = vpop.f32.mrb[80].mxu1 }
 0x592   : > { %v4886_v26 = vpop.f32.mrb[65].mxu0  ;;  %v4974_v51 = vpop.f32.mrb[81].mxu1 }
 0x593   : > { %v9238_v24 = vadd.f32 %v4886_v26, %v4885_v47  ;;  %v4975_v36 = vadd.f32 %v4974_v51, %v4973_v60  ;;  %v4888_v13 = vpop.f32.mrb[66].mxu0  ;;  %v4976_v1 = vpop.f32.mrb[82].mxu1  ;;  %v4064_v47 = vadd.f32 %v4878_v41, %v9131_v58 }
 0x594   : > { %v4889_v33 = vpop.f32.mrb[67].mxu0  ;;  %v4977_v62 = vpop.f32.mrb[83].mxu1 }
 0x595   : > { %v9242_v15 = vadd.f32 %v4889_v33, %v4888_v13  ;;  %v4978_v46 = vadd.f32 %v4977_v62, %v4976_v1  ;;  %v9244_v50 = vadd.f32 %v4975_v36, %v4045_v20  ;;  %v4069_v33 = vadd.f32 %v4881_v17, %v9131_v58 }
 0x597   : > { %v9246_v3 = vadd.f32 %v4978_v46, %v4048_v4 }
 0x599   : > { %v4891_v55 = vpop.f32.mrb[68].mxu0  ;;  %v4979_v14 = vpop.f32.mrb[84].mxu1 }
 0x59a   : > { %v4892_v48 = vpop.f32.mrb[69].mxu0  ;;  %v4980_v19 = vpop.f32.mrb[85].mxu1 }
 0x59b   : > { %v9250_v18 = vadd.f32 %v4892_v48, %v4891_v55  ;;  %v4981_v32 = vadd.f32 %v4980_v19, %v4979_v14  ;;  %v4894_v35 = vpop.f32.mrb[70].mxu0  ;;  %v4982_v38 = vpop.f32.mrb[86].mxu1  ;;  %v4072_v48 = vadd.f32 %v4884_v37, %v9131_v58 }
 0x59c   : > { %v4895_v21 = vpop.f32.mrb[71].mxu0  ;;  %v4983_v31 = vpop.f32.mrb[87].mxu1 }
 0x59d   : > { %v9254_v59 = vadd.f32 %v4895_v21, %v4894_v35  ;;  %v4984_v11 = vadd.f32 %v4983_v31, %v4982_v38  ;;  %v9256_v54 = vadd.f32 %v4981_v32, %v4053_v25 }
 0x59f   : > { %v9258_v8 = vadd.f32 %v4984_v11, %v4056_v28  ;;  %v4077_v11 = vadd.f32 %v9238_v24, %v9131_v58 }
 0x5a1   : > { %v4897_v9 = vpop.f32.mrb[72].mxu0  ;;  %v4985_v43 = vpop.f32.mrb[88].mxu1 }
 0x5a2   : > { %v4898_v10 = vpop.f32.mrb[73].mxu0  ;;  %v4986_v52 = vpop.f32.mrb[89].mxu1 }
 0x5a3   : > { %v9261_v63 = vadd.f32 %v4898_v10, %v4897_v9  ;;  %v4987_v30 = vadd.f32 %v4986_v52, %v4985_v43  ;;  %v4900_v27 = vpop.f32.mrb[74].mxu0  ;;  %v4988_v29 = vpop.f32.mrb[90].mxu1 }
 0x5a4   : > { %v4901_v57 = vpop.f32.mrb[75].mxu0  ;;  %v4989_v6 = vpop.f32.mrb[91].mxu1 }
 0x5a5   : > { %v9264_v60 = vadd.f32 %v4901_v57, %v4900_v27  ;;  %v4990_v26 = vadd.f32 %v4989_v6, %v4988_v29  ;;  %v9266_v51 = vadd.f32 %v4987_v30, %v4061_v23  ;;  %v4080_v27 = vadd.f32 %v9242_v15, %v9131_v58 }
 0x5a7   : > { %v9268_v20 = vadd.f32 %v4990_v26, %v4064_v47 }
 0x5a9   : > { %v4903_v36 = vpop.f32.mrb[76].mxu0  ;;  %v4991_v13 = vpop.f32.mrb[92].mxu1 }
 0x5aa   : > { %v4904_v1 = vpop.f32.mrb[77].mxu0  ;;  %v4992_v0 = vpop.f32.mrb[93].mxu1 }
 0x5ab   : > { %v9271_v62 = vadd.f32 %v4904_v1, %v4903_v36  ;;  %v4993_v4 = vadd.f32 %v4992_v0, %v4991_v13  ;;  %v4906_v46 = vpop.f32.mrb[78].mxu0  ;;  %v4994_v55 = vpop.f32.mrb[94].mxu1 }
 0x5ac   : > { %v4907_v14 = vpop.f32.mrb[79].mxu0  ;;  %v4995_v41 = vpop.f32.mrb[95].mxu1 }
 0x5ad   : > { %v9274_v19 = vadd.f32 %v4907_v14, %v4906_v46  ;;  %v4996_v25 = vadd.f32 %v4995_v41, %v4994_v55  ;;  %v9276_v32 = vadd.f32 %v4993_v4, %v4069_v33  ;;  %v4085_v14 = vadd.f32 %v9250_v18, %v9131_v58 }
 0x5ae   : > { %v4088_v41 = vadd.f32 %v9254_v59, %v9131_v58 }
 0x5af   : > { %v9278_v35 = vadd.f32 %v4996_v25, %v4072_v48 }
 0x5b1   : > { %v4997_v38 = vpop.f32.mrb[96].mxu1  ;;  %v5146_v21 = vpop.f32.mrb[80].mxu0 }
 0x5b2   : > { %v4311_v17 = vadd.f32 %v5146_v21, %v9155_v49  ;;  %v4998_v31 = vpop.f32.mrb[97].mxu1  ;;  %v4302_v28 = vpop.f32.mrb[81].mxu0 }
 0x5b3   : > { %v4999_v9 = vadd.f32 %v4998_v31, %v4997_v38  ;;  %v4303_v43 = vadd.f32 %v4302_v28, %v9139_v61  ;;  %v5000_v37 = vpop.f32.mrb[98].mxu1  ;;  %v5147_v10 = vpop.f32.mrb[82].mxu0 }
 0x5b4   : > { %v4314_v52 = vadd.f32 %v5147_v10, %v9157_v34  ;;  %v5001_v23 = vpop.f32.mrb[99].mxu1  ;;  %v4305_v30 = vpop.f32.mrb[83].mxu0  ;;  %v4431_v26 = vmax.f32 %v4311_v17, 0.0 }
 0x5b5   : > { %v5002_v29 = vadd.f32 %v5001_v23, %v5000_v37  ;;  %v4306_v49 = vadd.f32 %v4305_v30, %v9141_v5  ;;  %v9288_v57 = vadd.f32 %v4999_v9, %v4077_v11  ;;  %v4429_v6 = vmax.f32 %v4303_v43, 0.0 }
 0x5b6   : > { %v4432_v33 = vmax.f32 %v4314_v52, 0.0 }
 0x5b7   : > { %v4430_v47 = vmax.f32 %v4306_v49, 0.0  ;;  %v9290_v24 = vadd.f32 %v5002_v29, %v4080_v27 }
 0x5b9   : > { %v4461_v61 = vadd.f32 %v4430_v47, %v4429_v6  ;;  %v5003_v36 = vpop.f32.mrb[100].mxu1  ;;  %v5150_v13 = vpop.f32.mrb[84].mxu0  ;;  %v4093_v6 = vadd.f32 %v9261_v63, %v9131_v58  ;;  %v4096_v47 = vadd.f32 %v9264_v60, %v9131_v58 }
 0x5ba   : > { %v4327_v34 = vadd.f32 %v5150_v13, %v9184_v53  ;;  %v5004_v1 = vpop.f32.mrb[101].mxu1  ;;  %v4318_v0 = vpop.f32.mrb[85].mxu0 }
 0x5bb   : > { %v4462_v4 = vadd.f32 %v4461_v61, %v4431_v26  ;;  %v5005_v15 = vadd.f32 %v5004_v1, %v5003_v36  ;;  %v4319_v46 = vadd.f32 %v4318_v0, %v9166_v7  ;;  %v5006_v5 = vpop.f32.mrb[102].mxu1  ;;  %v5151_v55 = vpop.f32.mrb[86].mxu0 }
 0x5bc   : > { %v4330_v48 = vadd.f32 %v5151_v55, %v9186_v12  ;;  %v5007_v25 = vpop.f32.mrb[103].mxu1  ;;  %v4321_v38 = vpop.f32.mrb[87].mxu0  ;;  %v4435_v43 = vmax.f32 %v4327_v34, 0.0 }
 0x5bd   : > { %v4433_v53 = vmax.f32 %v4319_v46, 0.0  ;;  %v4463_v21 = vadd.f32 %v4462_v4, %v4432_v33  ;;  %v5008_v17 = vadd.f32 %v5007_v25, %v5006_v5  ;;  %v4322_v31 = vadd.f32 %v4321_v38, %v9168_v16 }
 0x5be   : > { %v9300_v28 = vadd.f32 %v5005_v15, %v4085_v14  ;;  %v4436_v23 = vmax.f32 %v4330_v48, 0.0 }
 0x5bf   : > { %v4464_v7 = vadd.f32 %v4463_v21, %v4433_v53  ;;  %v4434_v11 = vmax.f32 %v4322_v31, 0.0  ;;  %v9302_v9 = vadd.f32 %v5008_v17, %v4088_v41  ;;  %v4101_v53 = vadd.f32 %v9271_v62, %v9131_v58 }
 0x5c0   : > { %v4104_v21 = vadd.f32 %v9274_v19, %v9131_v58 }
 0x5c1   : > { %v4465_v18 = vadd.f32 %v4464_v7, %v4434_v11  ;;  %v5009_v37 = vpop.f32.mrb[104].mxu1  ;;  %v5154_v10 = vpop.f32.mrb[88].mxu0 }
 0x5c2   : > { %v4343_v59 = vadd.f32 %v5154_v10, %v9209_v45  ;;  %v5010_v12 = vpop.f32.mrb[105].mxu1  ;;  %v4334_v52 = vpop.f32.mrb[89].mxu0 }
 0x5c3   : > { %v4466_v30 = vadd.f32 %v4465_v18, %v4435_v43  ;;  %v5011_v27 = vadd.f32 %v5010_v12, %v5009_v37  ;;  %v4335_v29 = vadd.f32 %v4334_v52, %v9197_v44  ;;  %v5012_v16 = vpop.f32.mrb[106].mxu1  ;;  %v5155_v49 = vpop.f32.mrb[90].mxu0 }
 0x5c4   : > { %v4346_v26 = vadd.f32 %v5155_v49, %v9211_v40  ;;  %v5013_v61 = vpop.f32.mrb[107].mxu1  ;;  %v4337_v36 = vpop.f32.mrb[91].mxu0  ;;  %v4439_v15 = vmax.f32 %v4343_v59, 0.0 }
 0x5c5   : > { %v4437_v45 = vmax.f32 %v4335_v29, 0.0  ;;  %v4467_v13 = vadd.f32 %v4466_v30, %v4436_v23  ;;  %v5014_v34 = vadd.f32 %v5013_v61, %v5012_v16  ;;  %v4338_v1 = vadd.f32 %v4337_v36, %v9199_v56 }
 0x5c6   : > { %v9312_v0 = vadd.f32 %v5011_v27, %v4093_v6  ;;  %v4440_v14 = vmax.f32 %v4346_v26, 0.0 }
 0x5c7   : > { %v4468_v44 = vadd.f32 %v4467_v13, %v4437_v45  ;;  %v4438_v33 = vmax.f32 %v4338_v1, 0.0  ;;  %v9314_v4 = vadd.f32 %v5014_v34, %v4096_v47 }
 0x5c9   : > { %v4469_v63 = vadd.f32 %v4468_v44, %v4438_v33  ;;  %v5015_v46 = vpop.f32.mrb[108].mxu1  ;;  %v5158_v5 = vpop.f32.mrb[92].mxu0 }
 0x5ca   : > { %v4359_v60 = vadd.f32 %v5158_v5, %v9232_v42  ;;  %v5016_v40 = vpop.f32.mrb[109].mxu1  ;;  %v4350_v55 = vpop.f32.mrb[93].mxu0 }
 0x5cb   : > { %v4470_v41 = vadd.f32 %v4469_v63, %v4439_v15  ;;  %v5017_v48 = vadd.f32 %v5016_v40, %v5015_v46  ;;  %v4351_v25 = vadd.f32 %v4350_v55, %v9224_v39  ;;  %v5018_v56 = vpop.f32.mrb[110].mxu1  ;;  %v5159_v38 = vpop.f32.mrb[94].mxu0 }
 0x5cc   : > { %v4362_v17 = vadd.f32 %v5159_v38, %v9234_v2  ;;  %v5019_v31 = vpop.f32.mrb[111].mxu1  ;;  %v4353_v7 = vpop.f32.mrb[95].mxu0  ;;  %v4443_v12 = vmax.f32 %v4359_v60, 0.0 }
 0x5cd   : > { %v4441_v42 = vmax.f32 %v4351_v25, 0.0  ;;  %v4471_v11 = vadd.f32 %v4470_v41, %v4440_v14  ;;  %v5020_v43 = vadd.f32 %v5019_v31, %v5018_v56  ;;  %v4354_v18 = vadd.f32 %v4353_v7, %v9226_v22 }
 0x5ce   : > { %v4262_v37 = vadd.f32 %v5017_v48, %v4101_v53  ;;  %v4444_v58 = vmax.f32 %v4362_v17, 0.0 }
 0x5cf   : > { %v4472_v10 = vadd.f32 %v4471_v11, %v4441_v42  ;;  %v4442_v39 = vmax.f32 %v4354_v18, 0.0  ;;  %v4265_v59 = vadd.f32 %v5020_v43, %v4104_v21 }
 0x5d1   : > { %v4473_v52 = vadd.f32 %v4472_v10, %v4442_v39  ;;  %v5162_v23 = vpop.f32.mrb[96].mxu0 }
 0x5d2   : > { %v4375_v62 = vadd.f32 %v5162_v23, %v9256_v54  ;;  %v4366_v30 = vpop.f32.mrb[97].mxu0 }
 0x5d3   : > { %v4474_v19 = vadd.f32 %v4473_v52, %v4443_v12  ;;  %v4367_v2 = vadd.f32 %v4366_v30, %v9244_v50  ;;  %v5163_v27 = vpop.f32.mrb[98].mxu0 }
 0x5d4   : > { %v4378_v29 = vadd.f32 %v5163_v27, %v9258_v8  ;;  %v4369_v16 = vpop.f32.mrb[99].mxu0  ;;  %v4447_v61 = vmax.f32 %v4375_v62, 0.0 }
 0x5d5   : > { %v4445_v49 = vmax.f32 %v4367_v2, 0.0  ;;  %v4475_v22 = vadd.f32 %v4474_v19, %v4444_v58  ;;  %v4370_v6 = vadd.f32 %v4369_v16, %v9246_v3 }
 0x5d6   : > { %v4448_v34 = vmax.f32 %v4378_v29, 0.0 }
 0x5d7   : > { %v4476_v47 = vadd.f32 %v4475_v22, %v4445_v49  ;;  %v4446_v26 = vmax.f32 %v4370_v6, 0.0 }
 0x5d9   : > { %v4477_v36 = vadd.f32 %v4476_v47, %v4446_v26  ;;  %v5166_v45 = vpop.f32.mrb[100].mxu0 }
 0x5da   : > { %v4391_v54 = vadd.f32 %v5166_v45, %v9276_v32  ;;  %v4382_v13 = vpop.f32.mrb[101].mxu0 }
 0x5db   : > { %v4478_v1 = vadd.f32 %v4477_v36, %v4447_v61  ;;  %v4383_v50 = vadd.f32 %v4382_v13, %v9266_v51  ;;  %v5167_v44 = vpop.f32.mrb[102].mxu0 }
 0x5dc   : > { %v4394_v8 = vadd.f32 %v5167_v44, %v9278_v35  ;;  %v4385_v33 = vpop.f32.mrb[103].mxu0  ;;  %v4451_v60 = vmax.f32 %v4391_v54, 0.0 }
 0x5dd   : > { %v4449_v15 = vmax.f32 %v4383_v50, 0.0  ;;  %v4479_v63 = vadd.f32 %v4478_v1, %v4448_v34  ;;  %v4386_v3 = vadd.f32 %v4385_v33, %v9268_v20 }
 0x5de   : > { %v4452_v41 = vmax.f32 %v4394_v8, 0.0 }
 0x5df   : > { %v4480_v46 = vadd.f32 %v4479_v63, %v4449_v15  ;;  %v4450_v5 = vmax.f32 %v4386_v3, 0.0 }
 0x5e1   : > { %v4481_v40 = vadd.f32 %v4480_v46, %v4450_v5  ;;  %v5170_v55 = vpop.f32.mrb[104].mxu0 }
 0x5e2   : > { %v4407_v32 = vadd.f32 %v5170_v55, %v9300_v28  ;;  %v4398_v14 = vpop.f32.mrb[105].mxu0 }
 0x5e3   : > { %v4482_v48 = vadd.f32 %v4481_v40, %v4451_v60  ;;  %v4399_v51 = vadd.f32 %v4398_v14, %v9288_v57  ;;  %v5171_v25 = vpop.f32.mrb[106].mxu0 }
 0x5e4   : > { %v4410_v35 = vadd.f32 %v5171_v25, %v9302_v9  ;;  %v4401_v56 = vpop.f32.mrb[107].mxu0  ;;  %v4455_v31 = vmax.f32 %v4407_v32, 0.0 }
 0x5e5   : > { %v4453_v38 = vmax.f32 %v4399_v51, 0.0  ;;  %v4483_v53 = vadd.f32 %v4482_v48, %v4452_v41  ;;  %v4402_v20 = vadd.f32 %v4401_v56, %v9290_v24 }
 0x5e6   : > { %v4456_v43 = vmax.f32 %v4410_v35, 0.0 }
 0x5e7   : > { %v4484_v21 = vadd.f32 %v4483_v53, %v4453_v38  ;;  %v4454_v17 = vmax.f32 %v4402_v20, 0.0 }
 0x5e9   : > { %v4485_v7 = vadd.f32 %v4484_v21, %v4454_v17  ;;  %v5174_v42 = vpop.f32.mrb[108].mxu0 }
 0x5ea   : > { %v4423_v11 = vadd.f32 %v5174_v42, %v4262_v37  ;;  %v4414_v28 = vpop.f32.mrb[109].mxu0 }
 0x5eb   : > { %v4486_v18 = vadd.f32 %v4485_v7, %v4455_v31  ;;  %v4415_v10 = vadd.f32 %v4414_v28, %v9312_v0  ;;  %v5175_v57 = vpop.f32.mrb[110].mxu0 }
 0x5ec   : > { %v4426_v39 = vadd.f32 %v5175_v57, %v4265_v59  ;;  %v4417_v12 = vpop.f32.mrb[111].mxu0  ;;  %v4459_v30 = vmax.f32 %v4423_v11, 0.0 }
 0x5ed   : > { %v4457_v9 = vmax.f32 %v4415_v10, 0.0  ;;  %v4487_v52 = vadd.f32 %v4486_v18, %v4456_v43  ;;  %v4418_v23 = vadd.f32 %v4417_v12, %v9314_v4  ;;  %v4515_v4 = vld [vmem:[%s9396_s8] sm:$0x1] }
 0x5ee   : > { %v4460_v19 = vmax.f32 %v4426_v39, 0.0 }
 0x5ef   : > { %v4488_v24 = vadd.f32 %v4487_v52, %v4457_v9  ;;  %v4458_v62 = vmax.f32 %v4418_v23, 0.0 }
 0x5f1   : > { %v4489_v58 = vadd.f32 %v4488_v24, %v4458_v62 }
 0x5f3   : > { %v4490_v37 = vadd.f32 %v4489_v58, %v4459_v30 }
 0x5f5   : > { %v4491_v2 = vadd.f32 %v4490_v37, %v4460_v19 }
 0x5f7   : > { %v4492_v27 = vrot.slane %v4491_v2, 4 }
 0x5f9   : > { %v4493_v29 = vadd.f32 %v4492_v27, %v4491_v2 }
 0x5fb   : > { %v4494_v16 = vrot.slane %v4493_v29, 2 }
 0x5fd   : > { %v4495_v0 = vadd.f32 %v4494_v16, %v4493_v29 }
 0x5ff   : > { %v4496_v49 = vrot.slane %v4495_v0, 1 }
 0x601   : > { %v4497_v59 = vadd.f32 %v4496_v49, %v4495_v0 }
 0x603   : > { %v4498_v22 = vmul.f32 0.00390625, %v4497_v59 }
 0x605   : > { %5209 = vmatmul.mubr.f32.vlgmr.msra.gmra.mrb[112].mxu1 %v4498_v22 }
 0x6d8   : > { %v4582_v6 = vpop.f32.mrb[112].mxu1 }
 0x6d9   : > { %v4583_v47 = vadd.f32 %v4582_v6, %v4515_v4  ;;  %v5210_v26 = vpop.f32.mrb[113].mxu1 }
 0x6db   : > { %4587 = vst.msk [vmem:[%s324_s25] sm:$0x1] %vm4586_vm15, %v4583_v47 }
 0x6dc   : > { %6405 = shalt.err (!%p6402_p3)
}
 0x6dd   : > { %s6406_s22 = scalar_lea.hbm %s9346_s27, 16  ;;  %s6410_s25 = scalar_lea.hbm %s9397_s9, 32 }
 0x6de   : > { %p6407_p4 = scmp.ne.s32.totalorder %s9346_s27, %s6406_s22  ;;  %p6411_p9 = scmp.lt.u32.totalorder %s9346_s27, %s9397_s9 }
 0x6df   : > { %p6412_p10 = scmp.lt.u32.totalorder %s6410_s25, %s6406_s22  ;;  %p6414_p12 = scmp.lt.u32.totalorder %s6406_s22, %s9346_s27 }
 0x6e0   : > { %p6408_p7 = pnand %p6407_p4, %p6557_p5 }
 0x6e1   : > { %p6413_p11 = por %p6412_p10, %p6411_p9 }
 0x6e2   : > { %p6409_p8 = pneg %p6408_p7 }
 0x6e3   : > { %p6415_p13 = por %p6414_p12, %p6413_p11 }
 0x6e5   : > { %p6416_p0 = pnand %p6415_p13, %p6409_p8 }
 0x6e7   : > { %6419 = shalt.err (!%p6416_p0)
}
 0x6e8   : > { %5244 = dma.vmem_to_hbm [thread:$0]  (%p6557_p5), %s9348_s29, 16, %s9346_s27, %s4589_s28  }
 0x6e9 PF: > { %p5250_p1 = scmp.ge.s32.totalorder %s6454_s12, 2  ;;  %s4613_s16 = sand.u32 1, %s6442_s30  }
 0x6ea   : > { %s4614_s13 = scalar_lea.sflag [#allocation4], %s4613_s16 }
 0x6eb   : > { %p5247_p2 = pnand %p5250_p1, %p6561_p6 }
 0x6ed   : > { %6437 = dma.done.wait (!%p5247_p2), %s4614_s13, 16  }
 0x6ee   : > { %6439 = vsyncadd (!%p5247_p2), %s4614_s13, 4294967280  ;;  %p19_p3 = scmp.ge.s32.totalorder %s6544_s15, 4   ;;  %s9533_s30 = smov %s6446_s10 }
 0x6ef   : > { %s9534_s10 = smov %s6450_s11  ;;  %s9535_s11 = smov %s6555_s18 }
 0x6f0   : > { %s9536_s12 = smov %s6544_s15  ;;  %21 = sbr.rel (!%p19_p3) target bundleno = 3 (0x3), region = 93 }
 0x6f7   :  { %4618 = vsyncpa [#allocation4], 1 }
 0x6f8   :  { %4620 = vsyncpa [#allocation4 + $0x1], 1 }

</bundles_post_ra>
